<compile_context>
chip_gen: v5e
topology: v5e:2x2
jax: 0.10.0
libtpu: 0.0.40
codegen_flags: <defaults>
</compile_context>

<pallas_src>
import functools

import jax
import jax.numpy as jnp
from jax.experimental import pallas as pl
from jax.experimental.pallas import tpu as pltpu

# Below physical VMEM on v5e/v6e/v7x, above the scoped defaults.
_VMEM_LIMIT = 48 * 1024 * 1024


def _round_up(a, m):
    return (a + m - 1) // m * m


def _pad2d(a, shape, dtype):
    """Zero-pad a 2-D array to `shape` and cast to `dtype` (no-op if already)."""
    if a.shape == shape and a.dtype == jnp.dtype(dtype):
        return a
    out = jnp.zeros(shape, dtype)
    return out.at[: a.shape[0], : a.shape[1]].set(a.astype(dtype))


# ----------------------- 1x1x1 conv + BN + ReLU (tiled matmul) -----------------------

def _mm_bn_relu_kernel(x_ref, w_ref, s_ref, b_ref, o_ref, acc_ref):
    k = pl.program_id(1)

    @pl.when(k == 0)
    def _():
        acc_ref[...] = jnp.zeros_like(acc_ref)

    acc_ref[...] += jnp.dot(x_ref[...], w_ref[...],
                            preferred_element_type=jnp.float32)

    @pl.when(k == pl.num_programs(1) - 1)
    def _():
        y = acc_ref[...] * s_ref[...] + b_ref[...]
        o_ref[...] = jnp.maximum(y, 0.0).astype(o_ref.dtype)


def _mm_bn_relu_res_kernel(x_ref, w_ref, s_ref, b_ref, r_ref, o_ref, acc_ref):
    k = pl.program_id(1)

    @pl.when(k == 0)
    def _():
        acc_ref[...] = jnp.zeros_like(acc_ref)

    acc_ref[...] += jnp.dot(x_ref[...], w_ref[...],
                            preferred_element_type=jnp.float32)

    @pl.when(k == pl.num_programs(1) - 1)
    def _():
        y = acc_ref[...] * s_ref[...] + b_ref[...] + r_ref[...].astype(jnp.float32)
        o_ref[...] = jnp.maximum(y, 0.0).astype(o_ref.dtype)


def fused_matmul_bn_relu(x, w, scale, bias, residual=None, *,
                         out_dtype=jnp.bfloat16, tm=512, tk=512):
    """relu((x @ w) * scale + bias [+ residual]); bf16 operands, f32 accumulate."""
    M, K = x.shape
    Kw, N = w.shape
    assert Kw == K

    tm_eff = min(tm, _round_up(M, 8))
    tk_eff = min(tk, _round_up(K, 128))
    Mp = _round_up(M, tm_eff)
    Kp = _round_up(K, tk_eff)
    Np = _round_up(N, 128)          # lane-dense output stores

    xb = _pad2d(x, (Mp, Kp), jnp.bfloat16)
    wb = _pad2d(w, (Kp, Np), jnp.bfloat16)
    sb = _pad2d(scale.reshape(1, N), (1, Np), jnp.float32)
    bb = _pad2d(bias.reshape(1, N), (1, Np), jnp.float32)

    in_specs = [
        pl.BlockSpec((tm_eff, tk_eff), lambda i, k: (i, k)),
        pl.BlockSpec((tk_eff, Np), lambda i, k: (k, 0)),
        pl.BlockSpec((1, Np), lambda i, k: (0, 0)),
        pl.BlockSpec((1, Np), lambda i, k: (0, 0)),
    ]
    args = [xb, wb, sb, bb]
    kernel = _mm_bn_relu_kernel
    res_bytes = 0
    if residual is not None:
        rb = _pad2d(residual, (Mp, Np), jnp.bfloat16)
        in_specs.append(pl.BlockSpec((tm_eff, Np), lambda i, k: (i, 0)))
        args.append(rb)
        kernel = _mm_bn_relu_res_kernel
        res_bytes = Mp * Np * 2

    out = pl.pallas_call(
        kernel,
        out_shape=jax.ShapeDtypeStruct((Mp, Np), out_dtype),
        grid_spec=pltpu.PrefetchScalarGridSpec(
            num_scalar_prefetch=0,
            grid=(Mp // tm_eff, Kp // tk_eff),
            in_specs=in_specs,
            out_specs=pl.BlockSpec((tm_eff, Np), lambda i, k: (i, 0)),
            scratch_shapes=[pltpu.VMEM((tm_eff, Np), jnp.float32)],
        ),
        compiler_params=pltpu.CompilerParams(
            dimension_semantics=("parallel", "arbitrary"),
            vmem_limit_bytes=_VMEM_LIMIT,
        ),
        cost_estimate=pl.CostEstimate(
            flops=2 * Mp * Kp * Np,
            transcendentals=0,
            bytes_accessed=Mp * Kp * 2 + Kp * Np * 2 + res_bytes
            + Mp * Np * jnp.dtype(out_dtype).itemsize,
        ),
    )(*args)
    return out[:M, :N]


# ----------------------- 3x3x3 conv + BN + ReLU (fused, no im2col) -----------------------

def _conv3x3x3_kernel(xp_ref, w_ref, s_ref, b_ref, o_ref, acc_ref, *, Wp, M):
    kd = pl.program_id(2)

    @pl.when(kd == 0)
    def _():
        acc_ref[...] = jnp.zeros_like(acc_ref)

    x = xp_ref[...]                    # (P, C): flattened, padded (Hp, Wp) plane
    partial = None
    for kh in range(3):
        for kw in range(3):
            off = kh * Wp + kw         # static sublane offset for this tap
            d = jnp.dot(x[off:off + M, :], w_ref[kh, kw],
                        preferred_element_type=jnp.float32)
            partial = d if partial is None else partial + d
    acc_ref[...] += partial

    @pl.when(kd == pl.num_programs(2) - 1)
    def _():
        y = acc_ref[...] * s_ref[...] + b_ref[...]
        o_ref[...] = jnp.maximum(y, 0.0).astype(o_ref.dtype)


def conv3x3x3_bn_relu(x_ndhwc, w_taps, scale, bias, *, out_dtype=jnp.bfloat16):
    """3x3x3 conv (pad=1, stride=1) + folded BN + ReLU, channels-last.

    w_taps: (3, 3, 3, Cin, Cout).  The 3 D-taps form the reduction grid axis
    (input block shifted along the padded-D axis); the 9 (kh, kw) taps are
    in-kernel offset matmuls on the flattened padded plane, so the 27x im2col
    tensor is never materialized in HBM.
    """
    N, D, H, W, C = x_ndhwc.shape
    Cw = w_taps.shape[-1]
    Hp, Wp = H + 2, W + 2
    M = H * Wp                         # output rows per plane (2 junk cols/row)
    P = _round_up(Hp * Wp + 2, 8)      # input rows needed per shifted plane

    xp = jnp.zeros((N, D + 2, Hp, Wp, C), jnp.bfloat16)
    xp = xp.at[:, 1:D + 1, 1:H + 1, 1:W + 1, :].set(x_ndhwc.astype(jnp.bfloat16))
    xpf = xp.reshape(N, D + 2, Hp * Wp, C)
    xpf = jnp.pad(xpf, ((0, 0), (0, 0), (0, P - Hp * Wp), (0, 0)))

    wb = w_taps.astype(jnp.bfloat16)
    sb = scale.reshape(1, Cw).astype(jnp.float32)
    bb = bias.reshape(1, Cw).astype(jnp.float32)

    kernel = functools.partial(_conv3x3x3_kernel, Wp=Wp, M=M)
    out = pl.pallas_call(
        kernel,
        out_shape=jax.ShapeDtypeStruct((N, D, M, Cw), out_dtype),
        grid_spec=pltpu.PrefetchScalarGridSpec(
            num_scalar_prefetch=0,
            grid=(N, D, 3),
            in_specs=[
                pl.BlockSpec((None, None, P, C),
                             lambda n, d, kd: (n, d + kd, 0, 0)),
                pl.BlockSpec((None, 3, 3, C, Cw),
                             lambda n, d, kd: (kd, 0, 0, 0, 0)),
                pl.BlockSpec((1, Cw), lambda n, d, kd: (0, 0)),
                pl.BlockSpec((1, Cw), lambda n, d, kd: (0, 0)),
            ],
            out_specs=pl.BlockSpec((None, None, M, Cw),
                                   lambda n, d, kd: (n, d, 0, 0)),
            scratch_shapes=[pltpu.VMEM((M, Cw), jnp.float32)],
        ),
        compiler_params=pltpu.CompilerParams(
            dimension_semantics=("parallel", "parallel", "arbitrary"),
            vmem_limit_bytes=_VMEM_LIMIT,
        ),
        cost_estimate=pl.CostEstimate(
            flops=2 * N * D * 27 * M * C * Cw,
            transcendentals=0,
            bytes_accessed=N * D * 3 * P * C * 2 + 27 * C * Cw * 2
            + N * D * M * Cw * 2,
        ),
    )(xpf, wb, sb, bb)

    # Drop the 2 junk columns introduced by computing on the padded-width grid.
    return out.reshape(N, D, H, Wp, Cw)[:, :, :, :W, :]


# ----------------------- module forward (channels-last) -----------------------

def bn_fold(gamma, beta, mean, var, eps=1e-5):
    scale = gamma / jnp.sqrt(var + eps)
    bias = beta - mean * scale
    return scale, bias


def bottleneck_forward(x_ndhwc, params):
    """Pallas implementation of Bottleneck.forward (NDHWC input)."""
    N, D, H, W, Cin = x_ndhwc.shape
    M = N * D * H * W
    x_rows = x_ndhwc.reshape(M, Cin).astype(jnp.bfloat16)

    # conv1 (1x1x1) + bn1 + relu
    s1, b1 = bn_fold(*params["bn1"])
    width = params["conv1"].shape[1]
    out1 = fused_matmul_bn_relu(x_rows, params["conv1"], s1, b1,
                                out_dtype=jnp.bfloat16)

    # conv2 (3x3x3, pad=1) + bn2 + relu  (fused, no HBM im2col)
    s2, b2 = bn_fold(*params["bn2"])
    out2 = conv3x3x3_bn_relu(out1.reshape(N, D, H, W, width), params["conv2"],
                             s2, b2, out_dtype=jnp.bfloat16)

    # conv3 (1x1x1) + bn3 + identity add + relu
    s3, b3 = bn_fold(*params["bn3"])
    out3 = fused_matmul_bn_relu(out2.reshape(M, width), params["conv3"], s3, b3,
                                residual=x_rows, out_dtype=jnp.float32)
    Cout = params["conv3"].shape[1]
    return out3.reshape(N, D, H, W, Cout)


# ----------------------- parameter init -----------------------

def init_params(key, inplanes, planes, base_width=64, groups=1):
    width = int(planes * (base_width / 64.0)) * groups
    out_ch = planes * 4  # expansion = 4
    ks = jax.random.split(key, 15)

    def kaiming(k, shape, fan_in):
        return jax.random.normal(k, shape, jnp.float32) * jnp.sqrt(2.0 / fan_in)

    # PyTorch-layout weights (Cout, Cin, kD, kH, kW), kept f32 for the reference
    w1_t = kaiming(ks[0], (width, inplanes, 1, 1, 1), inplanes)
    w2_t = kaiming(ks[1], (width, width, 3, 3, 3), width * 27)
    w3_t = kaiming(ks[2], (out_ch, width, 1, 1, 1), width)

    def bn_init(kg, kb, km, kv, c):
        gamma = 1.0 + 0.1 * jax.random.normal(kg, (c,), jnp.float32)
        beta = 0.1 * jax.random.normal(kb, (c,), jnp.float32)
        mean = 0.1 * jax.random.normal(km, (c,), jnp.float32)
        var = 1.0 + 0.1 * jax.random.uniform(kv, (c,), jnp.float32)
        return gamma, beta, mean, var

    bn1 = bn_init(ks[3], ks[4], ks[5], ks[6], width)
    bn2 = bn_init(ks[7], ks[8], ks[9], ks[10], width)
    bn3 = bn_init(ks[11], ks[12], ks[13], ks[14], out_ch)

    kernel_params = {
        # matmul-ready bf16 weights
        "conv1": jnp.transpose(w1_t[:, :, 0, 0, 0], (1, 0)).astype(jnp.bfloat16),
        "conv2": jnp.transpose(w2_t, (2, 3, 4, 1, 0)).astype(jnp.bfloat16),  # (3,3,3,Cin,Cout)
        "conv3": jnp.transpose(w3_t[:, :, 0, 0, 0], (1, 0)).astype(jnp.bfloat16),
        "bn1": bn1, "bn2": bn2, "bn3": bn3,
    }
    torch_weights = {"w1": w1_t, "w2": w2_t, "w3": w3_t}
    return kernel_params, torch_weights


# ----------------------- pure-JAX reference -----------------------

def reference_forward(x_ncdhw, tw, params):
    """NCDHW reference with the same bf16-operand / f32-accumulate numerics."""
    def q(a):  # bf16 rounding, as the kernels see their operands
        return a.astype(jnp.bfloat16).astype(jnp.float32)

    def bn(x, gamma, beta, mean, var, eps=1e-5):
        s = gamma / jnp.sqrt(var + eps)
        b = beta - mean * s
        return x * s.reshape(1, -1, 1, 1, 1) + b.reshape(1, -1, 1, 1, 1)

    def conv(x, w, pad):
        return jax.lax.conv_general_dilated(
            q(x), q(w), window_strides=(1, 1, 1), padding=pad,
            dimension_numbers=("NCDHW", "OIDHW", "NCDHW"),
            precision=jax.lax.Precision.HIGHEST)

    identity = q(x_ncdhw)
    out = jax.nn.relu(bn(conv(x_ncdhw, tw["w1"], [(0, 0)] * 3), *params["bn1"]))
    out = jax.nn.relu(bn(conv(out, tw["w2"], [(1, 1)] * 3), *params["bn2"]))
    out = bn(conv(out, tw["w3"], [(0, 0)] * 3), *params["bn3"])
    return jax.nn.relu(out + identity)


# ----------------------- main -----------------------

if __name__ == "__main__":
    # Small shapes: inplanes == planes*expansion so the identity add is valid
    # (downsample=None, stride=[1,1,1] defaults); channel dims chosen lane-dense
    # (width=128, out_ch=256).
    N, D, H, W = 2, 4, 8, 8
    inplanes, planes, base_width = 256, 64, 128

    key = jax.random.PRNGKey(0)
    kx, kp = jax.random.split(key)
    x_ncdhw = jax.random.normal(kx, (N, inplanes, D, H, W), jnp.float32)
    params, torch_weights = init_params(kp, inplanes, planes, base_width=base_width)

    # channels-last for the Pallas path
    x_ndhwc = jnp.transpose(x_ncdhw, (0, 2, 3, 4, 1))

    fwd = jax.jit(bottleneck_forward)
    out_ndhwc = jax.block_until_ready(fwd(x_ndhwc, params))

    # correctness check against a pure-JAX NCDHW reference
    ref = reference_forward(x_ncdhw, torch_weights, params)
    out_ncdhw = jnp.transpose(out_ndhwc, (0, 4, 1, 2, 3))
    assert out_ncdhw.shape == ref.shape == (N, planes * 4, D, H, W)
    if not jnp.allclose(out_ncdhw, ref, rtol=5e-3, atol=5e-3):
        max_err = jnp.max(jnp.abs(out_ncdhw - ref))
        raise AssertionError(f"mismatch vs reference, max abs err = {max_err}")

    print("KERNEL_OK")
</pallas_src>

<mosaic_0001>
module attributes {stable_mosaic.version = 11 : i64} {
  func.func @_mm_bn_relu_kernel(%arg0: i32, %arg1: i32, %arg2: memref<512x256xbf16, #tpu.memory_space<vmem>>, %arg3: memref<256x128xbf16, #tpu.memory_space<vmem>>, %arg4: memref<1x128xf32, #tpu.memory_space<vmem>>, %arg5: memref<1x128xf32, #tpu.memory_space<vmem>>, %arg6: memref<512x128xbf16, #tpu.memory_space<vmem>>, %arg7: memref<512x128xf32, #tpu.memory_space<vmem>>) attributes {dimension_semantics = [#tpu.dimension_semantics<parallel>, #tpu.dimension_semantics<arbitrary>], iteration_bounds = array<i64: 1, 1>, scalar_prefetch = 0 : i64, scratch_operands = 1 : i64, tpu.core_type = #tpu.core_type<tc>, window_params = [{transform_indices = @transform_0, window_bounds = array<i64: 512, 256>}, {transform_indices = @transform_1, window_bounds = array<i64: 256, 128>}, {pipeline_mode = #tpu.pipeline_mode<synchronous>, transform_indices = @transform_2, window_bounds = array<i64: 1, 128>}, {pipeline_mode = #tpu.pipeline_mode<synchronous>, transform_indices = @transform_3, window_bounds = array<i64: 1, 128>}, {transform_indices = @transform_4, window_bounds = array<i64: 512, 128>}]} {
    %c0_i32 = arith.constant 0 : i32
    %0 = arith.cmpi eq, %arg1, %c0_i32 : i32
    %1 = arith.extui %0 : i1 to i32
    %c0_i32_0 = arith.constant 0 : i32
    %2 = arith.cmpi ne, %1, %c0_i32_0 : i32
    scf.if %2 {
      %cst_10 = arith.constant 0.000000e+00 : f32
      %12 = vector.broadcast %cst_10 : f32 to vector<512x128xf32>
      %c0_11 = arith.constant 0 : index
      %c0_12 = arith.constant 0 : index
      %13 = vector.load %arg7[%c0_11, %c0_12] : memref<512x128xf32, #tpu.memory_space<vmem>>, vector<512x128xf32>
      tpu.vector_store %arg7[%c0_11, %c0_12], %12 {strides = array<i32>} : memref<512x128xf32, #tpu.memory_space<vmem>>, vector<512x128xf32>,
    } else {
    }
    %c0 = arith.constant 0 : index
    %c0_1 = arith.constant 0 : index
    %3 = vector.load %arg7[%c0, %c0_1] : memref<512x128xf32, #tpu.memory_space<vmem>>, vector<512x128xf32>
    %c0_2 = arith.constant 0 : index
    %c0_3 = arith.constant 0 : index
    %4 = vector.load %arg2[%c0_2, %c0_3] : memref<512x256xbf16, #tpu.memory_space<vmem>>, vector<512x256xbf16>
    %c0_4 = arith.constant 0 : index
    %c0_5 = arith.constant 0 : index
    %5 = vector.load %arg3[%c0_4, %c0_5] : memref<256x128xbf16, #tpu.memory_space<vmem>>, vector<256x128xbf16>
    %cst = arith.constant dense<0.000000e+00> : vector<512x128xf32>
    %6 = tpu.matmul %4, %5, %cst {dimension_numbers = #tpu.dot_dimension_numbers<[1], [0], [0], [1], [0, 0, 1, 1], [], []>} : vector<512x256xbf16>, vector<256x128xbf16>, vector<512x128xf32> -> vector<512x128xf32>
    %7 = arith.addf %3, %6 : vector<512x128xf32>
    %c0_6 = arith.constant 0 : index
    %c0_7 = arith.constant 0 : index
    %8 = vector.load %arg7[%c0_6, %c0_7] : memref<512x128xf32, #tpu.memory_space<vmem>>, vector<512x128xf32>
    tpu.vector_store %arg7[%c0_6, %c0_7], %7 {strides = array<i32>} : memref<512x128xf32, #tpu.memory_space<vmem>>, vector<512x128xf32>,
    %c0_i32_8 = arith.constant 0 : i32
    %9 = arith.cmpi eq, %arg1, %c0_i32_8 : i32
    %10 = arith.extui %9 : i1 to i32
    %c0_i32_9 = arith.constant 0 : i32
    %11 = arith.cmpi ne, %10, %c0_i32_9 : i32
    scf.if %11 {
      %c0_10 = arith.constant 0 : index
      %c0_11 = arith.constant 0 : index
      %12 = vector.load %arg7[%c0_10, %c0_11] : memref<512x128xf32, #tpu.memory_space<vmem>>, vector<512x128xf32>
      %c0_12 = arith.constant 0 : index
      %c0_13 = arith.constant 0 : index
      %13 = vector.load %arg4[%c0_12, %c0_13] : memref<1x128xf32, #tpu.memory_space<vmem>>, vector<1x128xf32>
      %14 = vector.broadcast %13 : vector<1x128xf32> to vector<512x128xf32>
      %15 = arith.mulf %12, %14 : vector<512x128xf32>
      %c0_14 = arith.constant 0 : index
      %c0_15 = arith.constant 0 : index
      %16 = vector.load %arg5[%c0_14, %c0_15] : memref<1x128xf32, #tpu.memory_space<vmem>>, vector<1x128xf32>
      %17 = vector.broadcast %16 : vector<1x128xf32> to vector<512x128xf32>
      %18 = arith.addf %15, %17 : vector<512x128xf32>
      %cst_16 = arith.constant 0.000000e+00 : f32
      %19 = vector.broadcast %cst_16 : f32 to vector<512x128xf32>
      %20 = arith.maximumf %18, %19 : vector<512x128xf32>
      %21 = arith.truncf %20 : vector<512x128xf32> to vector<512x128xbf16>
      %c0_17 = arith.constant 0 : index
      %c0_18 = arith.constant 0 : index
      %22 = vector.load %arg6[%c0_17, %c0_18] : memref<512x128xbf16, #tpu.memory_space<vmem>>, vector<512x128xbf16>
      tpu.vector_store %arg6[%c0_17, %c0_18], %21 {strides = array<i32>} : memref<512x128xbf16, #tpu.memory_space<vmem>>, vector<512x128xbf16>,
    } else {
    }
    return
  }
  func.func @transform_0(%arg0: i32, %arg1: i32) -> (i32, i32) {
    %c0_i32 = arith.constant 0 : i32
    return %arg0, %arg1 : i32, i32
  }
  func.func @transform_1(%arg0: i32, %arg1: i32) -> (i32, i32) {
    %c0_i32 = arith.constant 0 : i32
    %c0_i32_0 = arith.constant 0 : i32
    return %arg1, %c0_i32 : i32, i32
  }
  func.func @transform_2(%arg0: i32, %arg1: i32) -> (i32, i32) {
    %c0_i32 = arith.constant 0 : i32
    %c0_i32_0 = arith.constant 0 : i32
    %c0_i32_1 = arith.constant 0 : i32
    return %c0_i32, %c0_i32_0 : i32, i32
  }
  func.func @transform_3(%arg0: i32, %arg1: i32) -> (i32, i32) {
    %c0_i32 = arith.constant 0 : i32
    %c0_i32_0 = arith.constant 0 : i32
    %c0_i32_1 = arith.constant 0 : i32
    return %c0_i32, %c0_i32_0 : i32, i32
  }
  func.func @transform_4(%arg0: i32, %arg1: i32) -> (i32, i32) {
    %c0_i32 = arith.constant 0 : i32
    %c0_i32_0 = arith.constant 0 : i32
    return %arg0, %c0_i32 : i32, i32
  }
}

module attributes {stable_mosaic.version = 11 : i64} {
  func.func @_conv3x3x3_kernel(%arg0: i32, %arg1: i32, %arg2: i32, %arg3: memref<1x1x104x128xbf16, #tpu.memory_space<vmem>>, %arg4: memref<1x3x3x128x128xbf16, #tpu.memory_space<vmem>>, %arg5: memref<1x128xf32, #tpu.memory_space<vmem>>, %arg6: memref<1x128xf32, #tpu.memory_space<vmem>>, %arg7: memref<1x1x80x128xbf16, #tpu.memory_space<vmem>>, %arg8: memref<80x128xf32, #tpu.memory_space<vmem>>) attributes {dimension_semantics = [#tpu.dimension_semantics<parallel>, #tpu.dimension_semantics<parallel>, #tpu.dimension_semantics<arbitrary>], iteration_bounds = array<i64: 2, 4, 3>, scalar_prefetch = 0 : i64, scratch_operands = 1 : i64, tpu.core_type = #tpu.core_type<tc>, window_params = [{transform_indices = @transform_0, window_bounds = array<i64: 1, 1, 104, 128>}, {transform_indices = @transform_1, window_bounds = array<i64: 1, 3, 3, 128, 128>}, {pipeline_mode = #tpu.pipeline_mode<synchronous>, transform_indices = @transform_2, window_bounds = array<i64: 1, 128>}, {pipeline_mode = #tpu.pipeline_mode<synchronous>, transform_indices = @transform_3, window_bounds = array<i64: 1, 128>}, {transform_indices = @transform_4, window_bounds = array<i64: 1, 1, 80, 128>}]} {
    %c0_i32 = arith.constant 0 : i32
    %0 = arith.cmpi eq, %arg2, %c0_i32 : i32
    %1 = arith.extui %0 : i1 to i32
    %c0_i32_0 = arith.constant 0 : i32
    %2 = arith.cmpi ne, %1, %c0_i32_0 : i32
    scf.if %2 {
      %cst_60 = arith.constant 0.000000e+00 : f32
      %55 = vector.broadcast %cst_60 : f32 to vector<80x128xf32>
      %c0_61 = arith.constant 0 : index
      %c0_62 = arith.constant 0 : index
      %56 = vector.load %arg8[%c0_61, %c0_62] : memref<80x128xf32, #tpu.memory_space<vmem>>, vector<80x128xf32>
      tpu.vector_store %arg8[%c0_61, %c0_62], %55 {strides = array<i32>} : memref<80x128xf32, #tpu.memory_space<vmem>>, vector<80x128xf32>,
    } else {
    }
    %c0 = arith.constant 0 : index
    %c0_1 = arith.constant 0 : index
    %c0_2 = arith.constant 0 : index
    %c0_3 = arith.constant 0 : index
    %3 = vector.load %arg3[%c0, %c0_1, %c0_2, %c0_3] : memref<1x1x104x128xbf16, #tpu.memory_space<vmem>>, vector<1x1x104x128xbf16>
    %4 = vector.shape_cast %3 : vector<1x1x104x128xbf16> to vector<104x128xbf16>
    %5 = vector.extract_strided_slice %4 {offsets = [0, 0], sizes = [80, 128], strides = [1, 1]} : vector<104x128xbf16> to vector<80x128xbf16>
    %c0_4 = arith.constant 0 : index
    %c0_5 = arith.constant 0 : index
    %c0_6 = arith.constant 0 : index
    %c0_7 = arith.constant 0 : index
    %c0_8 = arith.constant 0 : index
    %6 = vector.load %arg4[%c0_4, %c0_5, %c0_6, %c0_7, %c0_8] : memref<1x3x3x128x128xbf16, #tpu.memory_space<vmem>>, vector<1x1x1x128x128xbf16>
    %7 = vector.shape_cast %6 : vector<1x1x1x128x128xbf16> to vector<128x128xbf16>
    %cst = arith.constant dense<0.000000e+00> : vector<80x128xf32>
    %8 = tpu.matmul %5, %7, %cst {dimension_numbers = #tpu.dot_dimension_numbers<[1], [0], [0], [1], [0, 0, 1, 1], [], []>} : vector<80x128xbf16>, vector<128x128xbf16>, vector<80x128xf32> -> vector<80x128xf32>
    %9 = vector.extract_strided_slice %4 {offsets = [1, 0], sizes = [80, 128], strides = [1, 1]} : vector<104x128xbf16> to vector<80x128xbf16>
    %c0_9 = arith.constant 0 : index
    %c0_10 = arith.constant 0 : index
    %c1 = arith.constant 1 : index
    %c0_11 = arith.constant 0 : index
    %c0_12 = arith.constant 0 : index
    %10 = vector.load %arg4[%c0_9, %c0_10, %c1, %c0_11, %c0_12] : memref<1x3x3x128x128xbf16, #tpu.memory_space<vmem>>, vector<1x1x1x128x128xbf16>
    %11 = vector.shape_cast %10 : vector<1x1x1x128x128xbf16> to vector<128x128xbf16>
    %cst_13 = arith.constant dense<0.000000e+00> : vector<80x128xf32>
    %12 = tpu.matmul %9, %11, %cst_13 {dimension_numbers = #tpu.dot_dimension_numbers<[1], [0], [0], [1], [0, 0, 1, 1], [], []>} : vector<80x128xbf16>, vector<128x128xbf16>, vector<80x128xf32> -> vector<80x128xf32>
    %13 = arith.addf %8, %12 : vector<80x128xf32>
    %14 = vector.extract_strided_slice %4 {offsets = [2, 0], sizes = [80, 128], strides = [1, 1]} : vector<104x128xbf16> to vector<80x128xbf16>
    %c0_14 = arith.constant 0 : index
    %c0_15 = arith.constant 0 : index
    %c2 = arith.constant 2 : index
    %c0_16 = arith.constant 0 : index
    %c0_17 = arith.constant 0 : index
    %15 = vector.load %arg4[%c0_14, %c0_15, %c2, %c0_16, %c0_17] : memref<1x3x3x128x128xbf16, #tpu.memory_space<vmem>>, vector<1x1x1x128x128xbf16>
    %16 = vector.shape_cast %15 : vector<1x1x1x128x128xbf16> to vector<128x128xbf16>
    %cst_18 = arith.constant dense<0.000000e+00> : vector<80x128xf32>
    %17 = tpu.matmul %14, %16, %cst_18 {dimension_numbers = #tpu.dot_dimension_numbers<[1], [0], [0], [1], [0, 0, 1, 1], [], []>} : vector<80x128xbf16>, vector<128x128xbf16>, vector<80x128xf32> -> vector<80x128xf32>
    %18 = arith.addf %13, %17 : vector<80x128xf32>
    %19 = vector.extract_strided_slice %4 {offsets = [10, 0], sizes = [80, 128], strides = [1, 1]} : vector<104x128xbf16> to vector<80x128xbf16>
    %c0_19 = arith.constant 0 : index
    %c1_20 = arith.constant 1 : index
    %c0_21 = arith.constant 0 : index
    %c0_22 = arith.constant 0 : index
    %c0_23 = arith.constant 0 : index
    %20 = vector.load %arg4[%c0_19, %c1_20, %c0_21, %c0_22, %c0_23] : memref<1x3x3x128x128xbf16, #tpu.memory_space<vmem>>, vector<1x1x1x128x128xbf16>
    %21 = vector.shape_cast %20 : vector<1x1x1x128x128xbf16> to vector<128x128xbf16>
    %cst_24 = arith.constant dense<0.000000e+00> : vector<80x128xf32>
    %22 = tpu.matmul %19, %21, %cst_24 {dimension_numbers = #tpu.dot_dimension_numbers<[1], [0], [0], [1], [0, 0, 1, 1], [], []>} : vector<80x128xbf16>, vector<128x128xbf16>, vector<80x128xf32> -> vector<80x128xf32>
    %23 = arith.addf %18, %22 : vector<80x128xf32>
    %24 = vector.extract_strided_slice %4 {offsets = [11, 0], sizes = [80, 128], strides = [1, 1]} : vector<104x128xbf16> to vector<80x128xbf16>
    %c0_25 = arith.constant 0 : index
    %c1_26 = arith.constant 1 : index
    %c1_27 = arith.constant 1 : index
    %c0_28 = arith.constant 0 : index
    %c0_29 = arith.constant 0 : index
    %25 = vector.load %arg4[%c0_25, %c1_26, %c1_27, %c0_28, %c0_29] : memref<1x3x3x128x128xbf16, #tpu.memory_space<vmem>>, vector<1x1x1x128x128xbf16>
    %26 = vector.shape_cast %25 : vector<1x1x1x128x128xbf16> to vector<128x128xbf16>
    %cst_30 = arith.constant dense<0.000000e+00> : vector<80x128xf32>
    %27 = tpu.matmul %24, %26, %cst_30 {dimension_numbers = #tpu.dot_dimension_numbers<[1], [0], [0], [1], [0, 0, 1, 1], [], []>} : vector<80x128xbf16>, vector<128x128xbf16>, vector<80x128xf32> -> vector<80x128xf32>
    %28 = arith.addf %23, %27 : vector<80x128xf32>
    %29 = vector.extract_strided_slice %4 {offsets = [12, 0], sizes = [80, 128], strides = [1, 1]} : vector<104x128xbf16> to vector<80x128xbf16>
    %c0_31 = arith.constant 0 : index
    %c1_32 = arith.constant 1 : index
    %c2_33 = arith.constant 2 : index
    %c0_34 = arith.constant 0 : index
    %c0_35 = arith.constant 0 : index
    %30 = vector.load %arg4[%c0_31, %c1_32, %c2_33, %c0_34, %c0_35] : memref<1x3x3x128x128xbf16, #tpu.memory_space<vmem>>, vector<1x1x1x128x128xbf16>
    %31 = vector.shape_cast %30 : vector<1x1x1x128x128xbf16> to vector<128x128xbf16>
    %cst_36 = arith.constant dense<0.000000e+00> : vector<80x128xf32>
    %32 = tpu.matmul %29, %31, %cst_36 {dimension_numbers = #tpu.dot_dimension_numbers<[1], [0], [0], [1], [0, 0, 1, 1], [], []>} : vector<80x128xbf16>, vector<128x128xbf16>, vector<80x128xf32> -> vector<80x128xf32>
    %33 = arith.addf %28, %32 : vector<80x128xf32>
    %34 = vector.extract_strided_slice %4 {offsets = [20, 0], sizes = [80, 128], strides = [1, 1]} : vector<104x128xbf16> to vector<80x128xbf16>
    %c0_37 = arith.constant 0 : index
    %c2_38 = arith.constant 2 : index
    %c0_39 = arith.constant 0 : index
    %c0_40 = arith.constant 0 : index
    %c0_41 = arith.constant 0 : index
    %35 = vector.load %arg4[%c0_37, %c2_38, %c0_39, %c0_40, %c0_41] : memref<1x3x3x128x128xbf16, #tpu.memory_space<vmem>>, vector<1x1x1x128x128xbf16>
    %36 = vector.shape_cast %35 : vector<1x1x1x128x128xbf16> to vector<128x128xbf16>
    %cst_42 = arith.constant dense<0.000000e+00> : vector<80x128xf32>
    %37 = tpu.matmul %34, %36, %cst_42 {dimension_numbers = #tpu.dot_dimension_numbers<[1], [0], [0], [1], [0, 0, 1, 1], [], []>} : vector<80x128xbf16>, vector<128x128xbf16>, vector<80x128xf32> -> vector<80x128xf32>
    %38 = arith.addf %33, %37 : vector<80x128xf32>
    %39 = vector.extract_strided_slice %4 {offsets = [21, 0], sizes = [80, 128], strides = [1, 1]} : vector<104x128xbf16> to vector<80x128xbf16>
    %c0_43 = arith.constant 0 : index
    %c2_44 = arith.constant 2 : index
    %c1_45 = arith.constant 1 : index
    %c0_46 = arith.constant 0 : index
    %c0_47 = arith.constant 0 : index
    %40 = vector.load %arg4[%c0_43, %c2_44, %c1_45, %c0_46, %c0_47] : memref<1x3x3x128x128xbf16, #tpu.memory_space<vmem>>, vector<1x1x1x128x128xbf16>
    %41 = vector.shape_cast %40 : vector<1x1x1x128x128xbf16> to vector<128x128xbf16>
    %cst_48 = arith.constant dense<0.000000e+00> : vector<80x128xf32>
    %42 = tpu.matmul %39, %41, %cst_48 {dimension_numbers = #tpu.dot_dimension_numbers<[1], [0], [0], [1], [0, 0, 1, 1], [], []>} : vector<80x128xbf16>, vector<128x128xbf16>, vector<80x128xf32> -> vector<80x128xf32>
    %43 = arith.addf %38, %42 : vector<80x128xf32>
    %44 = vector.extract_strided_slice %4 {offsets = [22, 0], sizes = [80, 128], strides = [1, 1]} : vector<104x128xbf16> to vector<80x128xbf16>
    %c0_49 = arith.constant 0 : index
    %c2_50 = arith.constant 2 : index
    %c2_51 = arith.constant 2 : index
    %c0_52 = arith.constant 0 : index
    %c0_53 = arith.constant 0 : index
    %45 = vector.load %arg4[%c0_49, %c2_50, %c2_51, %c0_52, %c0_53] : memref<1x3x3x128x128xbf16, #tpu.memory_space<vmem>>, vector<1x1x1x128x128xbf16>
    %46 = vector.shape_cast %45 : vector<1x1x1x128x128xbf16> to vector<128x128xbf16>
    %cst_54 = arith.constant dense<0.000000e+00> : vector<80x128xf32>
    %47 = tpu.matmul %44, %46, %cst_54 {dimension_numbers = #tpu.dot_dimension_numbers<[1], [0], [0], [1], [0, 0, 1, 1], [], []>} : vector<80x128xbf16>, vector<128x128xbf16>, vector<80x128xf32> -> vector<80x128xf32>
    %48 = arith.addf %43, %47 : vector<80x128xf32>
    %c0_55 = arith.constant 0 : index
    %c0_56 = arith.constant 0 : index
    %49 = vector.load %arg8[%c0_55, %c0_56] : memref<80x128xf32, #tpu.memory_space<vmem>>, vector<80x128xf32>
    %50 = arith.addf %49, %48 : vector<80x128xf32>
    %c0_57 = arith.constant 0 : index
    %c0_58 = arith.constant 0 : index
    %51 = vector.load %arg8[%c0_57, %c0_58] : memref<80x128xf32, #tpu.memory_space<vmem>>, vector<80x128xf32>
    tpu.vector_store %arg8[%c0_57, %c0_58], %50 {strides = array<i32>} : memref<80x128xf32, #tpu.memory_space<vmem>>, vector<80x128xf32>,
    %c2_i32 = arith.constant 2 : i32
    %52 = arith.cmpi eq, %arg2, %c2_i32 : i32
    %53 = arith.extui %52 : i1 to i32
    %c0_i32_59 = arith.constant 0 : i32
    %54 = arith.cmpi ne, %53, %c0_i32_59 : i32
    scf.if %54 {
      %c0_60 = arith.constant 0 : index
      %c0_61 = arith.constant 0 : index
      %55 = vector.load %arg8[%c0_60, %c0_61] : memref<80x128xf32, #tpu.memory_space<vmem>>, vector<80x128xf32>
      %c0_62 = arith.constant 0 : index
      %c0_63 = arith.constant 0 : index
      %56 = vector.load %arg5[%c0_62, %c0_63] : memref<1x128xf32, #tpu.memory_space<vmem>>, vector<1x128xf32>
      %57 = vector.broadcast %56 : vector<1x128xf32> to vector<80x128xf32>
      %58 = arith.mulf %55, %57 : vector<80x128xf32>
      %c0_64 = arith.constant 0 : index
      %c0_65 = arith.constant 0 : index
      %59 = vector.load %arg6[%c0_64, %c0_65] : memref<1x128xf32, #tpu.memory_space<vmem>>, vector<1x128xf32>
      %60 = vector.broadcast %59 : vector<1x128xf32> to vector<80x128xf32>
      %61 = arith.addf %58, %60 : vector<80x128xf32>
      %cst_66 = arith.constant 0.000000e+00 : f32
      %62 = vector.broadcast %cst_66 : f32 to vector<80x128xf32>
      %63 = arith.maximumf %61, %62 : vector<80x128xf32>
      %64 = arith.truncf %63 : vector<80x128xf32> to vector<80x128xbf16>
      %c0_67 = arith.constant 0 : index
      %c0_68 = arith.constant 0 : index
      %c0_69 = arith.constant 0 : index
      %c0_70 = arith.constant 0 : index
      %65 = vector.load %arg7[%c0_67, %c0_68, %c0_69, %c0_70] : memref<1x1x80x128xbf16, #tpu.memory_space<vmem>>, vector<1x1x80x128xbf16>
      %66 = vector.shape_cast %65 : vector<1x1x80x128xbf16> to vector<80x128xbf16>
      %67 = vector.shape_cast %64 : vector<80x128xbf16> to vector<1x1x80x128xbf16>
      tpu.vector_store %arg7[%c0_67, %c0_68, %c0_69, %c0_70], %67 {strides = array<i32>} : memref<1x1x80x128xbf16, #tpu.memory_space<vmem>>, vector<1x1x80x128xbf16>,
    } else {
    }
    return
  }
  func.func @transform_0(%arg0: i32, %arg1: i32, %arg2: i32) -> (i32, i32, i32, i32) {
    %0 = arith.addi %arg1, %arg2 : i32
    %c0_i32 = arith.constant 0 : i32
    %c0_i32_0 = arith.constant 0 : i32
    %c0_i32_1 = arith.constant 0 : i32
    return %arg0, %0, %c0_i32, %c0_i32_0 : i32, i32, i32, i32
  }
  func.func @transform_1(%arg0: i32, %arg1: i32, %arg2: i32) -> (i32, i32, i32, i32, i32) {
    %c0_i32 = arith.constant 0 : i32
    %c0_i32_0 = arith.constant 0 : i32
    %c0_i32_1 = arith.constant 0 : i32
    %c0_i32_2 = arith.constant 0 : i32
    %c0_i32_3 = arith.constant 0 : i32
    return %arg2, %c0_i32, %c0_i32_0, %c0_i32_1, %c0_i32_2 : i32, i32, i32, i32, i32
  }
  func.func @transform_2(%arg0: i32, %arg1: i32, %arg2: i32) -> (i32, i32) {
    %c0_i32 = arith.constant 0 : i32
    %c0_i32_0 = arith.constant 0 : i32
    %c0_i32_1 = arith.constant 0 : i32
    return %c0_i32, %c0_i32_0 : i32, i32
  }
  func.func @transform_3(%arg0: i32, %arg1: i32, %arg2: i32) -> (i32, i32) {
    %c0_i32 = arith.constant 0 : i32
    %c0_i32_0 = arith.constant 0 : i32
    %c0_i32_1 = arith.constant 0 : i32
    return %c0_i32, %c0_i32_0 : i32, i32
  }
  func.func @transform_4(%arg0: i32, %arg1: i32, %arg2: i32) -> (i32, i32, i32, i32) {
    %c0_i32 = arith.constant 0 : i32
    %c0_i32_0 = arith.constant 0 : i32
    %c0_i32_1 = arith.constant 0 : i32
    return %arg0, %arg1, %c0_i32, %c0_i32_0 : i32, i32, i32, i32
  }
}

module attributes {stable_mosaic.version = 11 : i64} {
  func.func @_mm_bn_relu_res_kernel(%arg0: i32, %arg1: i32, %arg2: memref<512x128xbf16, #tpu.memory_space<vmem>>, %arg3: memref<128x256xbf16, #tpu.memory_space<vmem>>, %arg4: memref<1x256xf32, #tpu.memory_space<vmem>>, %arg5: memref<1x256xf32, #tpu.memory_space<vmem>>, %arg6: memref<512x256xbf16, #tpu.memory_space<vmem>>, %arg7: memref<512x256xf32, #tpu.memory_space<vmem>>, %arg8: memref<512x256xf32, #tpu.memory_space<vmem>>) attributes {dimension_semantics = [#tpu.dimension_semantics<parallel>, #tpu.dimension_semantics<arbitrary>], iteration_bounds = array<i64: 1, 1>, scalar_prefetch = 0 : i64, scratch_operands = 1 : i64, tpu.core_type = #tpu.core_type<tc>, window_params = [{transform_indices = @transform_0, window_bounds = array<i64: 512, 128>}, {transform_indices = @transform_1, window_bounds = array<i64: 128, 256>}, {pipeline_mode = #tpu.pipeline_mode<synchronous>, transform_indices = @transform_2, window_bounds = array<i64: 1, 256>}, {pipeline_mode = #tpu.pipeline_mode<synchronous>, transform_indices = @transform_3, window_bounds = array<i64: 1, 256>}, {transform_indices = @transform_4, window_bounds = array<i64: 512, 256>}, {transform_indices = @transform_5, window_bounds = array<i64: 512, 256>}]} {
    %c0_i32 = arith.constant 0 : i32
    %0 = arith.cmpi eq, %arg1, %c0_i32 : i32
    %1 = arith.extui %0 : i1 to i32
    %c0_i32_0 = arith.constant 0 : i32
    %2 = arith.cmpi ne, %1, %c0_i32_0 : i32
    scf.if %2 {
      %cst_10 = arith.constant 0.000000e+00 : f32
      %12 = vector.broadcast %cst_10 : f32 to vector<512x256xf32>
      %c0_11 = arith.constant 0 : index
      %c0_12 = arith.constant 0 : index
      %13 = vector.load %arg8[%c0_11, %c0_12] : memref<512x256xf32, #tpu.memory_space<vmem>>, vector<512x256xf32>
      tpu.vector_store %arg8[%c0_11, %c0_12], %12 {strides = array<i32>} : memref<512x256xf32, #tpu.memory_space<vmem>>, vector<512x256xf32>,
    } else {
    }
    %c0 = arith.constant 0 : index
    %c0_1 = arith.constant 0 : index
    %3 = vector.load %arg8[%c0, %c0_1] : memref<512x256xf32, #tpu.memory_space<vmem>>, vector<512x256xf32>
    %c0_2 = arith.constant 0 : index
    %c0_3 = arith.constant 0 : index
    %4 = vector.load %arg2[%c0_2, %c0_3] : memref<512x128xbf16, #tpu.memory_space<vmem>>, vector<512x128xbf16>
    %c0_4 = arith.constant 0 : index
    %c0_5 = arith.constant 0 : index
    %5 = vector.load %arg3[%c0_4, %c0_5] : memref<128x256xbf16, #tpu.memory_space<vmem>>, vector<128x256xbf16>
    %cst = arith.constant dense<0.000000e+00> : vector<512x256xf32>
    %6 = tpu.matmul %4, %5, %cst {dimension_numbers = #tpu.dot_dimension_numbers<[1], [0], [0], [1], [0, 0, 1, 1], [], []>} : vector<512x128xbf16>, vector<128x256xbf16>, vector<512x256xf32> -> vector<512x256xf32>
    %7 = arith.addf %3, %6 : vector<512x256xf32>
    %c0_6 = arith.constant 0 : index
    %c0_7 = arith.constant 0 : index
    %8 = vector.load %arg8[%c0_6, %c0_7] : memref<512x256xf32, #tpu.memory_space<vmem>>, vector<512x256xf32>
    tpu.vector_store %arg8[%c0_6, %c0_7], %7 {strides = array<i32>} : memref<512x256xf32, #tpu.memory_space<vmem>>, vector<512x256xf32>,
    %c0_i32_8 = arith.constant 0 : i32
    %9 = arith.cmpi eq, %arg1, %c0_i32_8 : i32
    %10 = arith.extui %9 : i1 to i32
    %c0_i32_9 = arith.constant 0 : i32
    %11 = arith.cmpi ne, %10, %c0_i32_9 : i32
    scf.if %11 {
      %c0_10 = arith.constant 0 : index
      %c0_11 = arith.constant 0 : index
      %12 = vector.load %arg8[%c0_10, %c0_11] : memref<512x256xf32, #tpu.memory_space<vmem>>, vector<512x256xf32>
      %c0_12 = arith.constant 0 : index
      %c0_13 = arith.constant 0 : index
      %13 = vector.load %arg4[%c0_12, %c0_13] : memref<1x256xf32, #tpu.memory_space<vmem>>, vector<1x256xf32>
      %14 = vector.broadcast %13 : vector<1x256xf32> to vector<512x256xf32>
      %15 = arith.mulf %12, %14 : vector<512x256xf32>
      %c0_14 = arith.constant 0 : index
      %c0_15 = arith.constant 0 : index
      %16 = vector.load %arg5[%c0_14, %c0_15] : memref<1x256xf32, #tpu.memory_space<vmem>>, vector<1x256xf32>
      %17 = vector.broadcast %16 : vector<1x256xf32> to vector<512x256xf32>
      %18 = arith.addf %15, %17 : vector<512x256xf32>
      %c0_16 = arith.constant 0 : index
      %c0_17 = arith.constant 0 : index
      %19 = vector.load %arg6[%c0_16, %c0_17] : memref<512x256xbf16, #tpu.memory_space<vmem>>, vector<512x256xbf16>
      %20 = arith.extf %19 : vector<512x256xbf16> to vector<512x256xf32>
      %21 = arith.addf %18, %20 : vector<512x256xf32>
      %cst_18 = arith.constant 0.000000e+00 : f32
      %22 = vector.broadcast %cst_18 : f32 to vector<512x256xf32>
      %23 = arith.maximumf %21, %22 : vector<512x256xf32>
      %c0_19 = arith.constant 0 : index
      %c0_20 = arith.constant 0 : index
      %24 = vector.load %arg7[%c0_19, %c0_20] : memref<512x256xf32, #tpu.memory_space<vmem>>, vector<512x256xf32>
      tpu.vector_store %arg7[%c0_19, %c0_20], %23 {strides = array<i32>} : memref<512x256xf32, #tpu.memory_space<vmem>>, vector<512x256xf32>,
    } else {
    }
    return
  }
  func.func @transform_0(%arg0: i32, %arg1: i32) -> (i32, i32) {
    %c0_i32 = arith.constant 0 : i32
    return %arg0, %arg1 : i32, i32
  }
  func.func @transform_1(%arg0: i32, %arg1: i32) -> (i32, i32) {
    %c0_i32 = arith.constant 0 : i32
    %c0_i32_0 = arith.constant 0 : i32
    return %arg1, %c0_i32 : i32, i32
  }
  func.func @transform_2(%arg0: i32, %arg1: i32) -> (i32, i32) {
    %c0_i32 = arith.constant 0 : i32
    %c0_i32_0 = arith.constant 0 : i32
    %c0_i32_1 = arith.constant 0 : i32
    return %c0_i32, %c0_i32_0 : i32, i32
  }
  func.func @transform_3(%arg0: i32, %arg1: i32) -> (i32, i32) {
    %c0_i32 = arith.constant 0 : i32
    %c0_i32_0 = arith.constant 0 : i32
    %c0_i32_1 = arith.constant 0 : i32
    return %c0_i32, %c0_i32_0 : i32, i32
  }
  func.func @transform_4(%arg0: i32, %arg1: i32) -> (i32, i32) {
    %c0_i32 = arith.constant 0 : i32
    %c0_i32_0 = arith.constant 0 : i32
    return %arg0, %c0_i32 : i32, i32
  }
  func.func @transform_5(%arg0: i32, %arg1: i32) -> (i32, i32) {
    %c0_i32 = arith.constant 0 : i32
    %c0_i32_0 = arith.constant 0 : i32
    return %arg0, %c0_i32 : i32, i32
  }
}

</mosaic_0001>

<bundles_post_ra>
// kernel: bottleneck_forward.4
= control target key start
LH: loop header
LB: loop body
LE: loop exit
PB: predicated region body
PF: predicated region fallthrough
CT: control target
= control target key end

     0   :  { %s2494_s15 = smov 0   ;;  %s2496_s16 = smov 0   ;;  %s2902_s0 = inlined_call_operand.vmem [shape: bf16[2,6,104,128], index: 0, kind: input, shape index: {}]   ;;  %s2903_s1 = inlined_call_operand.vmem [shape: bf16[3,3,3,128,128], index: 1, kind: input, shape index: {}]   ;;  %s2904_s2 = inlined_call_operand.vmem [shape: f32[1,128], index: 2, kind: input, shape index: {}]   ;;  %s2905_s3 = inlined_call_operand.vmem [shape: f32[1,128], index: 3, kind: input, shape index: {}]   ;;  %s2906_s4 = inlined_call_operand.vmem [shape: bf16[2,4,80,128], index: 4, kind: output, shape index: {}]  }
   0x1   :  { %s2498_s17 = smov 0   ;;  %s2500_s18 = smov 0  }
   0x2   :  { %s2502_s19 = smov 0   ;;  %s2504_s20 = smov 0  }
   0x3   :  { %s2506_s21 = smov 0  }
   0x4 LB: > { %s26_s22 = sadd.s32 1, %s2454_s18  ;;  %s29_s23 = sadd.s32 1, %s2458_s19  ;;  %s2466_s21 = sphi %s2506_s21, %s14_s21   ;;  %s2462_s20 = sphi %s2504_s20, %s2914_s20   ;;  %s2458_s19 = sphi %s2502_s19, %s2913_s19   ;;  %s2454_s18 = sphi %s2500_s18, %s2912_s18   ;;  %s2450_s17 = sphi %s2498_s17, %s2911_s17   ;;  %s2446_s16 = sphi %s2496_s16, %s2910_s16   ;;  %s2442_s15 = sphi %s2494_s15, %s2909_s15  }
   0x5   : > { %p27_p0 = scmp.ge.s32.totalorder %s26_s22, 3  ;;  %p1750_p1 = scmp.ge.s32.totalorder %s2466_s21, 1 }
   0x6   : > { %p203_p2 = scmp.lt.s32.totalorder %s2466_s21, 25  ;;  %s33_s24 = sadd.s32 1, %s2462_s20 }
   0x7   : > { %s2916_s22 = smov (%p27_p0, %s26_s22), 0  ;;  %s2918_s23 = smov (!%p27_p0, %s29_s23), %s2458_s19 }
   0x8   : > { %p204_p3 = pnand %p1750_p1, %p203_p2  ;;  %p31_p4 = scmp.ge.s32.totalorder %s2918_s23, 4 }
   0x9   : > { %s243_s25 = sadd.s32 (!%p204_p3), %s2442_s15, %s2446_s16  ;;  %p244_p6 = scmp.lt.s32.totalorder (!%p204_p3), %s2450_s17, 1 }
   0xa   : > { %s2920_s23 = smov (%p31_p4, %s2918_s23), 0  ;;  %s2922_s24 = smov (!%p31_p4, %s33_s24), %s2462_s20 }
   0xb   : > { %p35_p5 = scmp.ge.s32.totalorder %s2922_s24, 2  ;;  %207 = sbr.rel (%p204_p3) target bundleno = 417 (0x1a1), region = 36 }
   0xc   : > { %p246_p7 = scmp.lt.s32.totalorder (!%p204_p3), %s243_s25, 5  ;;  %p254_p8 = scmp.lt.s32.totalorder (!%p204_p3), %s2442_s15, 2 }
   0xd   : > { %s2924_s24 = smov (%p35_p5, %s2922_s24), 0  ;;  %p261_p9 = scmp.lt.s32.totalorder (!%p204_p3), %s2446_s16, 3 }
   0xe   : > { %2907 = sst [smem:[#allocation3_spill]] %s2924_s24  ;;  %p1754_p10 = scmp.ne.s32.totalorder (!%p204_p3), %s2442_s15, 0 }
  0x10   : > { %s2926_s17 = smov (!%p244_p6, %s2450_s17), 1  ;;  %s2928_s25 = smov (!%p246_p7, %s243_s25), 5 }
  0x11   : > { %s2349_s26 = smul.u32 78, %s2926_s17  ;;  %s2930_s16 = smov (!%p261_p9, %s2446_s16), 3 }
  0x12   : > { %s2348_s27 = smul.u32 13, %s2928_s25 }
  0x13   : > { %s255_s28 = scalar_select %p254_p8, %s2442_s15, 2 }
  0x14   : > { %s250_s29 = sadd.s32 %s2349_s26, %s2348_s27  ;;  %s2352_s12 = smul.u32 40, %s2926_s17 }
  0x15   : > { %s1751_s30 = sshll.u32 %s250_s29, 2  ;;  %s2350_s5 = smul.u32 576, %s255_s28 }
  0x16   : > { %s2548_s8 = scalar_lea.vmem %s2902_s0, %s1751_s30  ;;  %s2351_s13 = smul.u32 10, %s2930_s16 }
  0x17   : > { %s2553_s11 = scalar_lea.vmem %s2903_s1, %s2350_s5  ;;  %271 = sbr.rel (%p1754_p10) target bundleno = 39 (0x27), region = 40 }
  0x18   : > { %s265_s14 = sadd.s32 %s2352_s12, %s2351_s13 }
  0x19   : > { %s1753_s25 = sshll.u32 %s265_s14, 2 }
  0x1a   : > { %s2559_s27 = scalar_lea.vmem %s2906_s4, %s1753_s25 }
  0x1c   : > { %v2468_v0 = vmov 0.0  }
  0x1d   : > { %272 = vst [vmem:[#allocation2 + $0x30] sm:$0xff] %v2468_v0 }
  0x1e   : > { %273 = vst [vmem:[#allocation2] sm:$0xff] %v2468_v0 }
  0x1f   : > { %274 = vst [vmem:[#allocation2 + $0x18] sm:$0xff] %v2468_v0 }
  0x20   : > { %275 = vst [vmem:[#allocation2 + $0x10] sm:$0xff] %v2468_v0 }
  0x21   : > { %276 = vst [vmem:[#allocation2 + $0x48] sm:$0xff] %v2468_v0 }
  0x22   : > { %277 = vst [vmem:[#allocation2 + $0x28] sm:$0xff] %v2468_v0 }
  0x23   : > { %278 = vst [vmem:[#allocation2 + $0x8] sm:$0xff] %v2468_v0 }
  0x24   : > { %279 = vst [vmem:[#allocation2 + $0x20] sm:$0xff] %v2468_v0 }
  0x25   : > { %280 = vst [vmem:[#allocation2 + $0x40] sm:$0xff] %v2468_v0 }
  0x26   : > { %281 = vst [vmem:[#allocation2 + $0x38] sm:$0xff] %v2468_v0 }
  0x27 PF: > { %v2189_v1 = vld [vmem:[%s2553_s11 + $0x78] sm:$0xff]  ;;  %v2188_v2 = vld [vmem:[%s2553_s11 + $0x70] sm:$0xff]  ;;  %v2187_v5 = vld [vmem:[%s2553_s11 + $0x68] sm:$0xff]  ;;  %vm356_vm0 = vsmask.f32 7424  ;;  %vm592_vm1 = vcmask 1046528  }
  0x28   : > { %454 = vmatpush.bf16.msra.mxu0 %v2189_v1  ;;  %2332 = vmatpush.bf16.msra.mxu1 %v2189_v1  ;;  %v2205_v3 = vld [vmem:[%s2553_s11 + $0xf8] sm:$0xff]  ;;  %v2204_v4 = vld [vmem:[%s2553_s11 + $0xf0] sm:$0xff]  ;;  %v2203_v6 = vld [vmem:[%s2553_s11 + $0xe8] sm:$0xff]  ;;  %vm851_vm2 = vsmask.f32 6400  ;;  %vm1019_vm4 = vcmask 1045504  }
  0x29   : > { %2333 = vmatpush.bf16.msra.mxu2 %v2189_v1  ;;  %790 = vmatpush.bf16.msra.mxu3 %v2205_v3  ;;  %v2186_v7 = vld [vmem:[%s2553_s11 + $0x60] sm:$0xff]  ;;  %v2571_v9 = vld [vmem:[%s2548_s8 + $0x28] sm:$0xff]   ;;  %v2185_v10 = vld [vmem:[%s2553_s11 + $0x58] sm:$0xff]  ;;  %vm1274_vm3 = vsmask.f32 5376  ;;  %vm1422_vm5 = vcmask 1044480  }
  0x2a   : > { %v2202_v8 = vld [vmem:[%s2553_s11 + $0xe0] sm:$0xff]  ;;  %v2578_v12 = vld [vmem:[%s2548_s8 + $0x10] sm:$0xff]   ;;  %v2581_v13 = vunpack.c.l.b16 %v2571_v9  ;;  %v2201_v15 = vld [vmem:[%s2553_s11 + $0xd8] sm:$0xff]  ;;  %p2171_p11 = scmp.ne.s32.totalorder %s2442_s15, 2 }
  0x2b   : > { %v2575_v11 = vld [vmem:[%s2548_s8] sm:$0xff]   ;;  %v2184_v16 = vld [vmem:[%s2553_s11 + $0x50] sm:$0xff]  ;;  %v2589_v17 = vld [vmem:[%s2548_s8 + $0x8] sm:$0xff]   ;;  %v373_v19 = vshll.u32 %v2578_v12, 16  ;;  %v377_v29 = vshrl.u32 %v2578_v12, 16 }
  0x2c   : > { %455 = vmatpush.bf16.msra.mxu0 %v2188_v2  ;;  %2334 = vmatpush.bf16.msra.mxu1 %v2188_v2  ;;  %v2584_v14 = vld [vmem:[%s2548_s8 + $0x20] sm:$0xff]   ;;  %v360_v18 = vshll.u32 %v2575_v11, 16  ;;  %v2594_v20 = vld [vmem:[%s2548_s8 + $0x18] sm:$0xff]   ;;  %v2598_v21 = vpack.c.b16 %v2581_v13, %v2581_v13  ;;  %v2200_v23 = vld [vmem:[%s2553_s11 + $0xd0] sm:$0xff]  ;;  %v358_v24 = vshrl.u32 %v2575_v11, 16  ;;  %v365_v25 = vshll.u32 %v2589_v17, 16 }
  0x2d   : > { %2335 = vmatpush.bf16.msra.mxu2 %v2188_v2  ;;  %791 = vmatpush.bf16.msra.mxu3 %v2204_v4  ;;  %v389_v22 = vshll.u32 %v2584_v14, 16  ;;  %v2183_v26 = vld [vmem:[%s2553_s11 + $0x48] sm:$0xff]  ;;  %v2607_v28 = vrot.slane %v373_v19, 1  ;;  %v381_v30 = vshll.u32 %v2594_v20, 16  ;;  %v393_v32 = vshrl.u32 %v2584_v14, 16  ;;  %v2182_v35 = vld [vmem:[%s2553_s11 + $0x40] sm:$0xff] }
  0x2e   : > { %v362_v27 = vrot.slane %v360_v18, 1  ;;  %v397_v33 = vshll.u32 %v2598_v21, 16  ;;  %v2199_v34 = vld [vmem:[%s2553_s11 + $0xc8] sm:$0xff]  ;;  %v367_v37 = vrot.slane %v365_v25, 1  ;;  %v2181_v42 = vld [vmem:[%s2553_s11 + $0x38] sm:$0xff]  ;;  %v2198_v49 = vld [vmem:[%s2553_s11 + $0xc0] sm:$0xff] }
  0x2f   : > { %v2613_v31 = vrot.slane %v389_v22, 1  ;;  %v379_v38 = vor.u32 %v377_v29, %v2607_v28  ;;  %v383_v39 = vrot.slane %v381_v30, 1  ;;  %v2627_v40 = vld [vmem:[%s2548_s8 + $0x4] sm:$0xff]   ;;  %v2630_v41 = vld [vmem:[%s2548_s8 + $0xc] sm:$0xff]   ;;  %v2197_v45 = vld [vmem:[%s2553_s11 + $0xb8] sm:$0xff]  ;;  %v369_v62 = vshrl.u32 %v2589_v17, 16 }
  0x30   : > { %456 = vmatpush.bf16.msra.mxu0 %v2187_v5  ;;  %2336 = vmatpush.bf16.msra.mxu1 %v2187_v5  ;;  %v363_v36 = vor.u32 %v362_v27, %v358_v24  ;;  %v399_v44 = vrot.slane %v397_v33, 1  ;;  %v2213_v46 = vld [vmem:[%s2553_s11 + $0x138] sm:$0xff]  ;;  %v726_v50 = vrot.slane %v2627_v40, 1  ;;  %v727_v51 = vrot.slane %v2630_v41, 1  ;;  %v2180_v53 = vld [vmem:[%s2553_s11 + $0x30] sm:$0xff]  ;;  %v2179_v58 = vld [vmem:[%s2553_s11 + $0x28] sm:$0xff] }
  0x31   : > { %2337 = vmatpush.bf16.msra.mxu2 %v2187_v5  ;;  %792 = vmatpush.bf16.msra.mxu3 %v2203_v6  ;;  %v395_v43 = vor.u32 %v393_v32, %v2613_v31  ;;  %v384_v48 = vsel %vm356_vm0, %v379_v38, %v383_v39  ;;  %v2237_v54 = vld [vmem:[%s2553_s11 + $0x1f8] sm:$0xff]  ;;  %v2196_v55 = vld [vmem:[%s2553_s11 + $0xb0] sm:$0xff]  ;;  %v2195_v60 = vld [vmem:[%s2553_s11 + $0xa8] sm:$0xff]  ;;  %v385_v63 = vshrl.u32 %v2594_v20, 16  ;;  %v371_v3 = vor.u32 %v369_v62, %v367_v37 }
  0x32   : > { %v368_v47 = vsel %vm356_vm0, %v363_v36, %v367_v37  ;;  %v2212_v56 = vld [vmem:[%s2553_s11 + $0x130] sm:$0xff]  ;;  %v728_v57 = vsel %vm592_vm1, %v726_v50, %v727_v51  ;;  %v2211_v61 = vld [vmem:[%s2553_s11 + $0x128] sm:$0xff]  ;;  %v2178_v0 = vld [vmem:[%s2553_s11 + $0x20] sm:$0xff]  ;;  %v864_v33 = vshll.u32 %v2630_v41, 16 }
  0x33   : > { %v400_v52 = vsel %vm356_vm0, %v395_v43, %v399_v44  ;;  %v2236_v59 = vld [vmem:[%s2553_s11 + $0x1f0] sm:$0xff]  ;;  %v2194_v1 = vld [vmem:[%s2553_s11 + $0xa0] sm:$0xff]  ;;  %v387_v4 = vor.u32 %v385_v63, %v383_v39  ;;  %v2177_v6 = vld [vmem:[%s2553_s11 + $0x18] sm:$0xff] }
  0x34   : > { %457 = vmatpush.bf16.msra.mxu0 %v2186_v7  ;;  %2338 = vmatpush.bf16.msra.mxu1 %v2186_v7  ;;  %v2210_v2 = vld [vmem:[%s2553_s11 + $0x120] sm:$0xff]  ;;  %v2663_v5 = vld [vmem:[%s2548_s8 + $0x14] sm:$0xff]   ;;  %v2235_v27 = vld [vmem:[%s2553_s11 + $0x1e8] sm:$0xff]  ;;  %v866_v43 = vrot.slane %v864_v33, 2 }
  0x35   : > { %2339 = vmatpush.bf16.msra.mxu2 %v2186_v7  ;;  %793 = vmatpush.bf16.msra.mxu3 %v2202_v8  ;;  %v2193_v7 = vld [vmem:[%s2553_s11 + $0x98] sm:$0xff]  ;;  %v2176_v18 = vld [vmem:[%s2553_s11 + $0x10] sm:$0xff]  ;;  %v2191_v36 = vld [vmem:[%s2553_s11 + $0x88] sm:$0xff] }
  0x36   : > { %v2209_v8 = vld [vmem:[%s2553_s11 + $0x118] sm:$0xff]  ;;  %v2208_v24 = vld [vmem:[%s2553_s11 + $0x110] sm:$0xff]  ;;  %v2207_v37 = vld [vmem:[%s2553_s11 + $0x108] sm:$0xff] }
  0x37   : > { %v2174_v44 = vld [vmem:[%s2553_s11] sm:$0xff]  ;;  %v2221_v50 = vld [vmem:[%s2553_s11 + $0x178] sm:$0xff] }
  0x38   : > { %458 = vmatpush.bf16.msra.mxu0 %v2185_v10  ;;  %2340 = vmatpush.bf16.msra.mxu1 %v2185_v10 }
  0x39   : > { %2341 = vmatpush.bf16.msra.mxu2 %v2185_v10  ;;  %794 = vmatpush.bf16.msra.mxu3 %v2201_v15  ;;  %v376_v10 = vsel %vm356_vm0, %v371_v3, %v2607_v28  ;;  %v392_v15 = vsel %vm356_vm0, %v387_v4, %v2613_v31  ;;  %v856_v28 = vshll.u32 %v2627_v40, 16  ;;  %v861_v31 = vshrl.u32 %v2630_v41, 16  ;;  %v2219_v3 = vld [vmem:[%s2553_s11 + $0x168] sm:$0xff] }
  0x3b   : > { %v858_v39 = vrot.slane %v856_v28, 2  ;;  %v2217_v28 = vld [vmem:[%s2553_s11 + $0x158] sm:$0xff] }
  0x3c   : > { %459 = vmatpush.bf16.msra.mxu0 %v2184_v16  ;;  %2342 = vmatpush.bf16.msra.mxu1 %v2184_v16 }
  0x3d   : > { %2343 = vmatpush.bf16.msra.mxu2 %v2184_v16  ;;  %795 = vmatpush.bf16.msra.mxu3 %v2200_v23  ;;  %v729_v16 = vrot.slane %v2663_v5, 1  ;;  %v2192_v23 = vld [vmem:[%s2553_s11 + $0x90] sm:$0xff] }
  0x40   : > { %460 = vmatpush.bf16.msra.mxu0 %v2183_v26  ;;  %2344 = vmatpush.bf16.msra.mxu1 %v2183_v26 }
  0x41   : > { %2345 = vmatpush.bf16.msra.mxu2 %v2183_v26  ;;  %796 = vmatpush.bf16.msra.mxu3 %v2199_v34  ;;  %v853_v26 = vshrl.u32 %v2627_v40, 16  ;;  %v730_v34 = vsel %vm592_vm1, %v727_v51, %v729_v16 }
  0x43   : > { %v855_v38 = vrot.slane %v853_v26, 1 }
  0x44   : > { %461 = vmatpush.bf16.msra.mxu0 %v2182_v35  ;;  %2346 = vmatpush.bf16.msra.mxu1 %v2182_v35 }
  0x45   : > { %2347 = vmatpush.bf16.msra.mxu2 %v2182_v35  ;;  %797 = vmatpush.bf16.msra.mxu3 %v2198_v49  ;;  %v2175_v35 = vld [vmem:[%s2553_s11 + $0x8] sm:$0xff]  ;;  %v2229_v49 = vld [vmem:[%s2553_s11 + $0x1b8] sm:$0xff]  ;;  %v859_v51 = vor.u32 %v858_v39, %v855_v38 }
  0x47   : > { %462 = vmatmul.bf16.vlgmr.msra.gmra.mxu0 %v368_v47  ;;  %472 = vmatmul.bf16.vlgmr.msra.gmra.mxu1 %v384_v48  ;;  %v594_v47 = vrot.slane %v2589_v17, 1  ;;  %v2206_v48 = vld [vmem:[%s2553_s11 + $0x100] sm:$0xff] }
  0x48   : > { %541 = vmatpush.bf16.msrb.mxu1 %v2181_v42  ;;  %958 = vmatpush.bf16.msrb.mxu0 %v2213_v46  ;;  %v863_v42 = vrot.slane %v861_v31, 1  ;;  %v593_v46 = vrot.slane %v2575_v11, 1 }
  0x49   : > { %657 = vmatpush.bf16.msrb.mxu2 %v2197_v45  ;;  %1361 = vmatpush.bf16.msrb.mxu3 %v2237_v54  ;;  %v2190_v45 = vld [vmem:[%s2553_s11 + $0x80] sm:$0xff] }
  0x4a   : > { %482 = vmatmul.bf16.vlgmr.msra.gmra.mxu2 %v400_v52  ;;  %798 = vmatmul.bf16.vlgmr.msra.gmra.mxu3 %v728_v57  ;;  %v867_v52 = vor.u32 %v866_v43, %v863_v42  ;;  %v2696_v54 = vld [vmem:[%s2548_s8 + $0x1c] sm:$0xff]   ;;  %v2228_v57 = vld [vmem:[%s2553_s11 + $0x1b0] sm:$0xff]  ;;  %v2223_v43 = vld [vmem:[%s2553_s11 + $0x188] sm:$0xff] }
  0x4b   : > { %v879_v38 = vshrl.u32 %v2696_v54, 16  ;;  %v882_v39 = vshll.u32 %v2696_v54, 16 }
  0x4c   : > { %542 = vmatpush.bf16.msrb.mxu1 %v2180_v53  ;;  %959 = vmatpush.bf16.msrb.mxu0 %v2212_v56  ;;  %v2245_v53 = vld [vmem:[%s2553_s11 + $0x238] sm:$0xff]  ;;  %v868_v56 = vsel %vm851_vm2, %v859_v51, %v867_v52 }
  0x4d   : > { %658 = vmatpush.bf16.msrb.mxu2 %v2196_v55  ;;  %1362 = vmatpush.bf16.msrb.mxu3 %v2236_v59  ;;  %v595_v55 = vsel %vm592_vm1, %v593_v46, %v594_v47  ;;  %v731_v59 = vrot.slane %v2696_v54, 1  ;;  %v881_v46 = vrot.slane %v879_v38, 1  ;;  %v1150_v38 = vrot.slane %v2578_v12, 2 }
  0x4f   : > { %v732_v4 = vsel %vm592_vm1, %v729_v16, %v731_v59  ;;  %v596_v16 = vrot.slane %v2578_v12, 1 }
  0x50   : > { %543 = vmatpush.bf16.msrb.mxu1 %v2179_v58  ;;  %960 = vmatpush.bf16.msrb.mxu0 %v2211_v61  ;;  %v2220_v58 = vld [vmem:[%s2553_s11 + $0x170] sm:$0xff]  ;;  %v2234_v61 = vld [vmem:[%s2553_s11 + $0x1e0] sm:$0xff] }
  0x51   : > { %659 = vmatpush.bf16.msrb.mxu2 %v2195_v60  ;;  %1363 = vmatpush.bf16.msrb.mxu3 %v2235_v27  ;;  %v2244_v60 = vld [vmem:[%s2553_s11 + $0x230] sm:$0xff]  ;;  %v2225_v27 = vld [vmem:[%s2553_s11 + $0x198] sm:$0xff]  ;;  %v597_v31 = vsel %vm592_vm1, %v594_v47, %v596_v16  ;;  %v884_v47 = vrot.slane %v882_v39, 2  ;;  %v1423_v39 = vrot.slane %v2589_v17, 3 }
  0x54   : > { %544 = vmatpush.bf16.msrb.mxu1 %v2178_v0  ;;  %961 = vmatpush.bf16.msrb.mxu0 %v2210_v2  ;;  %v870_v0 = vshrl.u32 %v2663_v5, 16  ;;  %v2227_v2 = vld [vmem:[%s2553_s11 + $0x1a8] sm:$0xff] }
  0x55   : > { %660 = vmatpush.bf16.msrb.mxu2 %v2194_v1  ;;  %v873_v1 = vshll.u32 %v2663_v5, 16  ;;  %1364 = vmatpush.bf16.msrb.mxu3 %v2234_v61  ;;  %v2230_v61 = vld [vmem:[%s2553_s11 + $0x1c0] sm:$0xff] }
  0x57   : > { %467 = vmatmul.bf16.gmra.mxu0 %v376_v10  ;;  %477 = vmatmul.bf16.gmra.mxu1 %v392_v15  ;;  %v875_v10 = vrot.slane %v873_v1, 2  ;;  %v2226_v15 = vld [vmem:[%s2553_s11 + $0x1a0] sm:$0xff] }
  0x58   : > { %545 = vmatpush.bf16.msrb.mxu1 %v2177_v6  ;;  %962 = vmatpush.bf16.msrb.mxu0 %v2209_v8  ;;  %v2243_v6 = vld [vmem:[%s2553_s11 + $0x228] sm:$0xff]  ;;  %v872_v8 = vrot.slane %v870_v0, 1  ;;  %v2214_v1 = vld [vmem:[%s2553_s11 + $0x140] sm:$0xff] }
  0x59   : > { %661 = vmatpush.bf16.msrb.mxu2 %v2193_v7  ;;  %v2265_v7 = vunpack.c.h.b16 %v2584_v14 }
  0x5a   : > { %803 = vmatmul.bf16.gmra.mxu3 %v730_v34  ;;  %v876_v26 = vor.u32 %v875_v10, %v872_v8  ;;  %v1278_v8 = vrot.slane %v377_v29, 2  ;;  %v1279_v10 = vrot.slane %v373_v19, 3 }
  0x5c   : > { %546 = vmatpush.bf16.msrb.mxu1 %v2176_v18  ;;  %963 = vmatpush.bf16.msrb.mxu0 %v2208_v24  ;;  %v2218_v18 = vld [vmem:[%s2553_s11 + $0x160] sm:$0xff]  ;;  %v2721_v24 = vpack.c.b16 %v2581_v13, %v2265_v7  ;;  %v877_v33 = vsel %vm851_vm2, %v867_v52, %v876_v26  ;;  %v2224_v13 = vld [vmem:[%s2553_s11 + $0x190] sm:$0xff]  ;;  %v1276_v7 = vrot.slane %v365_v25, 3 }
  0x5d   : > { %662 = vmatpush.bf16.msrb.mxu2 %v2192_v23  ;;  %v2242_v23 = vld [vmem:[%s2553_s11 + $0x220] sm:$0xff] }
  0x5e   : > { %v733_v34 = vrot.slane %v2721_v24, 1 }
  0x60   : > { %547 = vmatpush.bf16.msrb.mxu1 %v2175_v35  ;;  %964 = vmatpush.bf16.msrb.mxu0 %v2207_v37  ;;  %v2241_v35 = vld [vmem:[%s2553_s11 + $0x218] sm:$0xff]  ;;  %v2216_v37 = vld [vmem:[%s2553_s11 + $0x150] sm:$0xff]  ;;  %v734_v42 = vsel %vm592_vm1, %v731_v59, %v733_v34  ;;  %v2222_v59 = vld [vmem:[%s2553_s11 + $0x180] sm:$0xff] }
  0x61   : > { %663 = vmatpush.bf16.msrb.mxu2 %v2191_v36  ;;  %v2232_v36 = vld [vmem:[%s2553_s11 + $0x1d0] sm:$0xff] }
  0x64   : > { %548 = vmatpush.bf16.msrb.mxu1 %v2174_v44  ;;  %965 = vmatpush.bf16.msrb.mxu0 %v2206_v48  ;;  %v2240_v44 = vld [vmem:[%s2553_s11 + $0x210] sm:$0xff]  ;;  %v2269_v48 = vunpack.c.h.b16 %v2571_v9 }
  0x65   : > { %664 = vmatpush.bf16.msrb.mxu2 %v2190_v45  ;;  %v2231_v45 = vld [vmem:[%s2553_s11 + $0x1c8] sm:$0xff] }
  0x66   : > { %v2741_v51 = vpack.c.b16 %v2269_v48, %v2269_v48  ;;  %v1426_v48 = vrot.slane %v2594_v20, 3 }
  0x67   : > { %549 = vmatmul.bf16.vlgmr.msrb.gmra.mxu1 %v2575_v11  ;;  %966 = vmatmul.bf16.vlgmr.msrb.gmra.mxu0 %v868_v56  ;;  %v2233_v11 = vld [vmem:[%s2553_s11 + $0x1d8] sm:$0xff]  ;;  %v2215_v56 = vld [vmem:[%s2553_s11 + $0x148] sm:$0xff] }
  0x68   : > { %1084 = vmatpush.bf16.msra.mxu1 %v2221_v50  ;;  %1487 = vmatpush.bf16.msra.mxu0 %v2245_v53  ;;  %v885_v50 = vor.u32 %v884_v47, %v881_v46  ;;  %v897_v25 = vshrl.u32 %v2741_v51, 16  ;;  %v900_v29 = vshll.u32 %v2741_v51, 16 }
  0x69   : > { %1213 = vmatpush.bf16.msra.mxu2 %v2229_v49  ;;  %1365 = vmatpush.bf16.msrb.mxu3 %v2233_v11  ;;  %v598_v49 = vrot.slane %v2594_v20, 1  ;;  %v1275_v11 = vrot.slane %v369_v62, 2 }
  0x6a   : > { %665 = vmatmul.bf16.vlgmr.msrb.gmra.mxu2 %v595_v55  ;;  %808 = vmatmul.bf16.gmra.mxu3 %v732_v4  ;;  %v886_v53 = vsel %vm851_vm2, %v876_v26, %v885_v50  ;;  %v735_v55 = vrot.slane %v2741_v51, 1  ;;  %v600_v4 = vrot.slane %v2584_v14, 1  ;;  %v1280_v26 = vor.u32 %v1279_v10, %v1278_v8 }
  0x6b   : > { %v599_v52 = vsel %vm592_vm1, %v596_v16, %v598_v49  ;;  %v1277_v16 = vor.u32 %v1276_v7, %v1275_v11  ;;  %v899_v19 = vrot.slane %v897_v25, 1  ;;  %v1428_v11 = vrot.slane %v2584_v14, 3 }
  0x6c   : > { %1085 = vmatpush.bf16.msra.mxu1 %v2220_v58  ;;  %1488 = vmatpush.bf16.msra.mxu0 %v2244_v60  ;;  %v891_v58 = vshll.u32 %v2721_v24, 16  ;;  %v2239_v60 = vld [vmem:[%s2553_s11 + $0x208] sm:$0xff]  ;;  %v736_v0 = vsel %vm592_vm1, %v733_v34, %v735_v55  ;;  %v1283_v34 = vrot.slane %v381_v30, 3  ;;  %v1021_v30 = vrot.slane %v2630_v41, 2 }
  0x6d   : > { %1214 = vmatpush.bf16.msra.mxu2 %v2228_v57  ;;  %1366 = vmatpush.bf16.msrb.mxu3 %v2232_v36  ;;  %v888_v57 = vshrl.u32 %v2721_v24, 16  ;;  %v1281_v62 = vsel %vm1274_vm3, %v1277_v16, %v1280_v26  ;;  %v1023_v41 = vrot.slane %v2663_v5, 2  ;;  %v1429_v16 = vsel %vm1422_vm5, %v1426_v48, %v1428_v11 }
  0x70   : > { %1086 = vmatpush.bf16.msra.mxu1 %v2219_v3  ;;  %1489 = vmatpush.bf16.msra.mxu0 %v2243_v6  ;;  %v893_v3 = vrot.slane %v891_v58, 2 }
  0x71   : > { %1215 = vmatpush.bf16.msra.mxu2 %v2227_v2  ;;  %1367 = vmatpush.bf16.msrb.mxu3 %v2231_v45  ;;  %v890_v2 = vrot.slane %v888_v57, 1  ;;  %v1024_v57 = vsel %vm1019_vm4, %v1021_v30, %v1023_v41 }
  0x73   : > { %v894_v6 = vor.u32 %v893_v3, %v890_v2  ;;  %v1154_v3 = vrot.slane %v2584_v14, 2 }
  0x74   : > { %1087 = vmatpush.bf16.msra.mxu1 %v2218_v18  ;;  %1490 = vmatpush.bf16.msra.mxu0 %v2242_v23  ;;  %v2238_v18 = vld [vmem:[%s2553_s11 + $0x200] sm:$0xff] }
  0x75   : > { %1216 = vmatpush.bf16.msra.mxu2 %v2226_v15  ;;  %1368 = vmatpush.bf16.msrb.mxu3 %v2230_v61  ;;  %v601_v15 = vsel %vm592_vm1, %v598_v49, %v600_v4  ;;  %v895_v23 = vsel %vm851_vm2, %v885_v50, %v894_v6 }
  0x77   : > { %554 = vmatmul.bf16.gmra.mxu1 %v2589_v17  ;;  %971 = vmatmul.bf16.gmra.mxu0 %v877_v33  ;;  %v1282_v33 = vrot.slane %v385_v63, 2  ;;  %v1020_v63 = vrot.slane %v2627_v40, 2 }
  0x78   : > { %1088 = vmatpush.bf16.msra.mxu1 %v2217_v28  ;;  %1491 = vmatpush.bf16.msra.mxu0 %v2241_v35  ;;  %v602_v28 = vrot.slane %v2598_v21, 1  ;;  %v1149_v21 = vrot.slane %v2589_v17, 2  ;;  %v1291_v17 = vshrl.u32 %v2571_v9, 16 }
  0x79   : > { %1217 = vmatpush.bf16.msra.mxu2 %v2225_v27  ;;  %v902_v27 = vrot.slane %v900_v29, 2  ;;  %v1284_v36 = vor.u32 %v1283_v34, %v1282_v33  ;;  %v1022_v46 = vsel %vm1019_vm4, %v1020_v63, %v1021_v30  ;;  %v1430_v33 = vrot.slane %v2571_v9, 3 }
  0x7a   : > { %670 = vmatmul.bf16.gmra.mxu2 %v597_v31  ;;  %813 = vmatmul.bf16.gmra.mxu3 %v734_v42  ;;  %v1424_v42 = vrot.slane %v2578_v12, 3  ;;  %v1151_v45 = vsel %vm1019_vm4, %v1149_v21, %v1150_v38  ;;  %v1293_v49 = vrot.slane %v1291_v17, 2 }
  0x7b   : > { %v903_v31 = vor.u32 %v902_v27, %v899_v19  ;;  %v1156_v19 = vrot.slane %v2571_v9, 2 }
  0x7c   : > { %1089 = vmatpush.bf16.msra.mxu1 %v2216_v37  ;;  %1492 = vmatpush.bf16.msra.mxu0 %v2240_v44  ;;  %v1285_v37 = vsel %vm1274_vm3, %v1280_v26, %v1284_v36  ;;  %v1287_v44 = vrot.slane %v389_v22, 3  ;;  %v1425_v40 = vsel %vm1422_vm5, %v1423_v39, %v1424_v42  ;;  %v1152_v22 = vrot.slane %v2594_v20, 2 }
  0x7d   : > { %1218 = vmatpush.bf16.msra.mxu2 %v2224_v13  ;;  %v603_v13 = vsel %vm592_vm1, %v600_v4, %v602_v28  ;;  %v904_v35 = vsel %vm851_vm2, %v894_v6, %v903_v31  ;;  %v1427_v58 = vsel %vm1422_vm5, %v1424_v42, %v1426_v48  ;;  %v1025_v6 = vrot.slane %v2696_v54, 2 }
  0x7e   : > { %v1155_v10 = vsel %vm1019_vm4, %v1152_v22, %v1154_v3  ;;  %v1027_v31 = vrot.slane %v2721_v24, 2  ;;  %v1157_v34 = vsel %vm1019_vm4, %v1154_v3, %v1156_v19 }
  0x80   : > { %1090 = vmatpush.bf16.msra.mxu1 %v2215_v56  ;;  %1493 = vmatpush.bf16.msra.mxu0 %v2239_v60 }
  0x81   : > { %1219 = vmatpush.bf16.msra.mxu2 %v2223_v43  ;;  %v1286_v43 = vrot.slane %v393_v32, 2  ;;  %v1294_v32 = vshll.u32 %v2571_v9, 16 }
  0x83   : > { %v1288_v47 = vor.u32 %v1287_v44, %v1286_v43  ;;  %v1296_v50 = vrot.slane %v1294_v32, 3 }
  0x84   : > { %1091 = vmatpush.bf16.msra.mxu1 %v2214_v1  ;;  %1494 = vmatpush.bf16.msra.mxu0 %v2238_v18 }
  0x85   : > { %1220 = vmatpush.bf16.msra.mxu2 %v2222_v59  ;;  %v1297_v59 = vor.u32 %v1296_v50, %v1293_v49 }
  0x87   : > { %559 = vmatmul.bf16.gmra.mxu1 %v2578_v12  ;;  %976 = vmatmul.bf16.gmra.mxu0 %v886_v53  ;;  %v1289_v12 = vsel %vm1274_vm3, %v1284_v36, %v1288_v47  ;;  %v294_v53 = vld [vmem:[%s2548_s8 + $0x30] sm:$0xf]  ;;  %v1298_v5 = vsel %vm1274_vm3, %v1288_v47, %v1297_v59  ;;  %v1028_v36 = vsel %vm1019_vm4, %v1025_v6, %v1027_v31 }
  0x88   : > { %v1146_v60 = vunpack.c.l.b16 %v294_v53 }
  0x8a   : > { %675 = vmatmul.bf16.gmra.mxu2 %v599_v52  ;;  %818 = vmatmul.bf16.gmra.mxu3 %v736_v0  ;;  %v1153_v52 = vsel %vm1019_vm4, %v1150_v38, %v1152_v22 }
  0x97   : > { %564 = vmatmul.bf16.gmra.mxu1 %v2594_v20  ;;  %981 = vmatmul.bf16.gmra.mxu0 %v895_v23  ;;  %v1148_v20 = vpack.c.b16 %v1146_v60, %v1146_v60  ;;  %v1026_v23 = vsel %vm1019_vm4, %v1023_v41, %v1025_v6 }
  0x99   : > { %v1300_v1 = vshrl.u32 %v1148_v20, 16  ;;  %v1303_v2 = vshll.u32 %v1148_v20, 16  ;;  %v1158_v44 = vrot.slane %v1148_v20, 2  ;;  %v1432_v47 = vrot.slane %v1148_v20, 3 }
  0x9a   : > { %680 = vmatmul.bf16.gmra.mxu2 %v601_v15  ;;  %1369 = vmatmul.bf16.vlgmr.msrb.gmra.mxu3 %v1281_v62 }
  0x9b   : > { %v1302_v7 = vrot.slane %v1300_v1, 2  ;;  %v1305_v8 = vrot.slane %v1303_v2, 3  ;;  %v1159_v17 = vsel %vm1019_vm4, %v1156_v19, %v1158_v44  ;;  %v1433_v49 = vsel %vm1422_vm5, %v1430_v33, %v1432_v47 }
  0x9d   : > { %v1306_v26 = vor.u32 %v1305_v8, %v1302_v7 }
  0xa7   : > { %569 = vmatmul.bf16.gmra.mxu1 %v2584_v14  ;;  %986 = vmatmul.bf16.gmra.mxu0 %v904_v35  ;;  %v1307_v14 = vsel %vm1274_vm3, %v1297_v59, %v1306_v26 }
  0xaa   : > { %685 = vmatmul.bf16.gmra.mxu2 %v603_v13  ;;  %1374 = vmatmul.bf16.gmra.mxu3 %v1285_v37  ;;  %v1431_v37 = vsel %vm1422_vm5, %v1428_v11, %v1430_v33 }
  0xb7   : > { %1092 = vmatmul.bf16.vlgmr.msra.gmra.mxu1 %v1022_v46  ;;  %1495 = vmatmul.bf16.vlgmr.msra.gmra.mxu0 %v1425_v40  ;;  %v1029_v40 = vrot.slane %v2741_v51, 2 }
  0xb9   : > { %v1030_v48 = vsel %vm1019_vm4, %v1027_v31, %v1029_v40 }
  0xba   : > { %1221 = vmatmul.bf16.vlgmr.msra.gmra.mxu2 %v1151_v45  ;;  %1379 = vmatmul.bf16.gmra.mxu3 %v1289_v12 }
  0xc4   : > { %v463_v55 = vpop.f32.mrf.mxu0  ;;  %v2801_v56 = vpop.f32.mrf.mxu1 }
  0xc7   : > { %1097 = vmatmul.bf16.gmra.mxu1 %v1024_v57  ;;  %1500 = vmatmul.bf16.gmra.mxu0 %v1427_v58 }
  0xca   : > { %1226 = vmatmul.bf16.gmra.mxu2 %v1153_v52  ;;  %1384 = vmatmul.bf16.gmra.mxu3 %v1298_v5 }
  0xcc   : > { %v465_v61 = vpop.f32.mrf.mxu0  ;;  %v2806_v0 = vpop.f32.mrf.mxu1 }
  0xcd   : > { %v799_v4 = vpop.f32.mrf.mxu3  ;;  %v2816_v25 = vpop.f32.mrf.mxu2 }
  0xd4   : > { %v468_v15 = vpop.f32.mrf.mxu0  ;;  %v2812_v18 = vpop.f32.mrf.mxu1 }
  0xd5   : > { %v801_v29 = vpop.f32.mrf.mxu3  ;;  %v2822_v28 = vpop.f32.mrf.mxu2 }
  0xd7   : > { %1102 = vmatmul.bf16.gmra.mxu1 %v1026_v23  ;;  %1505 = vmatmul.bf16.gmra.mxu0 %v1429_v16 }
  0xda   : > { %1231 = vmatmul.bf16.gmra.mxu2 %v1155_v10  ;;  %1389 = vmatmul.bf16.gmra.mxu3 %v1307_v14 }
  0xdc   : > { %v470_v54 = vpop.f32.mrf.mxu0  ;;  %v2819_v62 = vpop.f32.mrf.mxu1 }
  0xdd   : > { %v804_v27 = vpop.f32.mrf.mxu3 }
  0xe4   : > { %v550_v13 = vpop.f32.mrf.mxu1  ;;  %v967_v35 = vpop.f32.mrf.mxu0 }
  0xe5   : > { %v551_v21 = vadd.f32 %v550_v13, %v463_v55  ;;  %v806_v38 = vpop.f32.mrf.mxu3 }
  0xe7   : > { %1107 = vmatmul.bf16.gmra.mxu1 %v1028_v36  ;;  %1510 = vmatmul.bf16.gmra.mxu0 %v1431_v37 }
  0xea   : > { %1236 = vmatmul.bf16.gmra.mxu2 %v1157_v34 }
  0xec   : > { %v552_v42 = vpop.f32.mrf.mxu1  ;;  %v969_v24 = vpop.f32.mrf.mxu0 }
  0xed   : > { %v666_v63 = vpop.f32.mrf.mxu2  ;;  %v553_v43 = vadd.f32 %v552_v42, %v465_v61  ;;  %v809_v45 = vpop.f32.mrf.mxu3 }
  0xee   : > { %v691_v30 = vadd.f32 %v666_v63, %v551_v21 }
  0xf0   : > { %v824_v39 = vadd.f32 %v799_v4, %v691_v30 }
  0xf2   : > { %v2829_v9 = vadd.f32 %v967_v35, %v824_v39 }
  0xf4   : > { %v555_v22 = vpop.f32.mrf.mxu1  ;;  %v972_v41 = vpop.f32.mrf.mxu0 }
  0xf5   : > { %v668_v46 = vpop.f32.mrf.mxu2  ;;  %v556_v50 = vadd.f32 %v555_v22, %v468_v15  ;;  %v811_v53 = vpop.f32.mrf.mxu3 }
  0xf6   : > { %v692_v12 = vadd.f32 %v668_v46, %v553_v43 }
  0xf7   : > { %1112 = vmatmul.bf16.gmra.mxu1 %v1030_v48  ;;  %1515 = vmatmul.bf16.gmra.mxu0 %v1433_v49 }
  0xf8   : > { %v825_v32 = vadd.f32 %v801_v29, %v692_v12 }
  0xfa   : > { %1241 = vmatmul.bf16.gmra.mxu2 %v1159_v17  ;;  %v2835_v52 = vadd.f32 %v969_v24, %v825_v32 }
  0xfc   : > { %v557_v58 = vpop.f32.mrf.mxu1  ;;  %v974_v59 = vpop.f32.mrf.mxu0 }
  0xfd   : > { %v671_v55 = vpop.f32.mrf.mxu2  ;;  %v558_v60 = vadd.f32 %v557_v58, %v470_v54  ;;  %v814_v20 = vpop.f32.mrf.mxu3 }
  0xfe   : > { %v693_v51 = vadd.f32 %v671_v55, %v556_v50 }
 0x100   : > { %v826_v57 = vadd.f32 %v804_v27, %v693_v51 }
 0x102   : > { %v2837_v5 = vadd.f32 %v972_v41, %v826_v57 }
 0x104   : > { %v560_v3 = vpop.f32.mrf.mxu1  ;;  %v977_v4 = vpop.f32.mrf.mxu0 }
 0x105   : > { %v673_v61 = vpop.f32.mrf.mxu2  ;;  %v561_v6 = vadd.f32 %v560_v3, %v2801_v56  ;;  %v816_v10 = vpop.f32.mrf.mxu3 }
 0x106   : > { %v694_v1 = vadd.f32 %v673_v61, %v558_v60  ;;  %v1531_v60 = vld [vmem:[#allocation2 + $0x30] sm:$0xff] }
 0x108   : > { %v827_v2 = vadd.f32 %v806_v38, %v694_v1 }
 0x10a   : > { %v2840_v11 = vadd.f32 %v974_v59, %v827_v2 }
 0x10c   : > { %v562_v23 = vpop.f32.mrf.mxu1  ;;  %v979_v16 = vpop.f32.mrf.mxu0 }
 0x10d   : > { %v676_v7 = vpop.f32.mrf.mxu2  ;;  %v563_v26 = vadd.f32 %v562_v23, %v2806_v0  ;;  %v819_v27 = vpop.f32.mrf.mxu3 }
 0x10e   : > { %v695_v8 = vadd.f32 %v676_v7, %v561_v6  ;;  %v1532_v7 = vld [vmem:[#allocation2] sm:$0xff] }
 0x110   : > { %v828_v15 = vadd.f32 %v809_v45, %v695_v8 }
 0x112   : > { %v2843_v29 = vadd.f32 %v977_v4, %v828_v15 }
 0x114   : > { %v565_v31 = vpop.f32.mrf.mxu1  ;;  %v982_v33 = vpop.f32.mrf.mxu0 }
 0x115   : > { %v678_v14 = vpop.f32.mrf.mxu2  ;;  %v566_v56 = vadd.f32 %v565_v31, %v2812_v18  ;;  %v821_v0 = vpop.f32.mrf.mxu3 }
 0x116   : > { %v696_v54 = vadd.f32 %v678_v14, %v563_v26 }
 0x118   : > { %v829_v19 = vadd.f32 %v811_v53, %v696_v54 }
 0x11a   : > { %v2846_v34 = vadd.f32 %v979_v16, %v829_v19  ;;  %v1533_v19 = vld [vmem:[#allocation2 + $0x18] sm:$0xff] }
 0x11c   : > { %v567_v37 = vpop.f32.mrf.mxu1  ;;  %v984_v21 = vpop.f32.mrf.mxu0 }
 0x11d   : > { %v681_v13 = vpop.f32.mrf.mxu2  ;;  %v568_v38 = vadd.f32 %v567_v37, %v2819_v62  ;;  %v1370_v45 = vpop.f32.mrf.mxu3 }
 0x11e   : > { %v697_v35 = vadd.f32 %v681_v13, %v566_v56 }
 0x120   : > { %v830_v36 = vadd.f32 %v814_v20, %v697_v35 }
 0x122   : > { %v2849_v63 = vadd.f32 %v982_v33, %v830_v36 }
 0x124   : > { %v570_v24 = vpop.f32.mrf.mxu1  ;;  %v987_v43 = vpop.f32.mrf.mxu0 }
 0x125   : > { %v683_v30 = vpop.f32.mrf.mxu2  ;;  %v571_v44 = vadd.f32 %v570_v24, %v2816_v25  ;;  %v1372_v48 = vpop.f32.mrf.mxu3 }
 0x126   : > { %v698_v39 = vadd.f32 %v683_v30, %v568_v38 }
 0x128   : > { %v831_v42 = vadd.f32 %v816_v10, %v698_v39 }
 0x12a   : > { %v2852_v18 = vadd.f32 %v984_v21, %v831_v42  ;;  %v1534_v21 = vld [vmem:[#allocation2 + $0x10] sm:$0xff] }
 0x12c   : > { %v572_v12 = vpop.f32.mrf.mxu1  ;;  %v989_v17 = vpop.f32.mrf.mxu0 }
 0x12d   : > { %v686_v46 = vpop.f32.mrf.mxu2  ;;  %v573_v62 = vadd.f32 %v572_v12, %v2822_v28  ;;  %v1375_v59 = vpop.f32.mrf.mxu3 }
 0x12e   : > { %v699_v40 = vadd.f32 %v686_v46, %v571_v44 }
 0x130   : > { %v832_v47 = vadd.f32 %v819_v27, %v699_v40 }
 0x132   : > { %v2855_v32 = vadd.f32 %v987_v43, %v832_v47 }
 0x134   : > { %v1093_v50 = vpop.f32.mrf.mxu1  ;;  %v1496_v53 = vpop.f32.mrf.mxu0 }
 0x135   : > { %v688_v22 = vpop.f32.mrf.mxu2  ;;  %v1118_v25 = vadd.f32 %v1093_v50, %v2829_v9  ;;  %v1377_v23 = vpop.f32.mrf.mxu3 }
 0x136   : > { %v700_v41 = vadd.f32 %v688_v22, %v573_v62 }
 0x138   : > { %v833_v49 = vadd.f32 %v821_v0, %v700_v41  ;;  %v1536_v41 = vld [vmem:[#allocation2 + $0x28] sm:$0xff] }
 0x13a   : > { %v2858_v55 = vadd.f32 %v989_v17, %v833_v49 }
 0x13c   : > { %v1095_v20 = vpop.f32.mrf.mxu1  ;;  %v1498_v61 = vpop.f32.mrf.mxu0 }
 0x13d   : > { %v1222_v51 = vpop.f32.mrf.mxu2  ;;  %v1119_v1 = vadd.f32 %v1095_v20, %v2835_v52  ;;  %v1380_v35 = vpop.f32.mrf.mxu3 }
 0x13e   : > { %v1247_v57 = vadd.f32 %v1222_v51, %v1118_v25 }
 0x140   : > { %v1395_v58 = vadd.f32 %v1370_v45, %v1247_v57  ;;  %v1535_v45 = vld [vmem:[#allocation2 + $0x48] sm:$0xff] }
 0x142   : > { %v1521_v28 = vadd.f32 %v1496_v53, %v1395_v58 }
 0x144   : > { %v1541_v2 = vadd.f32 %v1531_v60, %v1521_v28  ;;  %v1098_v8 = vpop.f32.mrf.mxu1  ;;  %v1501_v9 = vpop.f32.mrf.mxu0 }
 0x145   : > { %v1224_v3 = vpop.f32.mrf.mxu2  ;;  %v1120_v15 = vadd.f32 %v1098_v8, %v2837_v5  ;;  %v1382_v43 = vpop.f32.mrf.mxu3 }
 0x146   : > { %1551 = vst [vmem:[#allocation2 + $0x30] sm:$0xff] %v1541_v2  ;;  %v1248_v4 = vadd.f32 %v1224_v3, %v1119_v1 }
 0x148   : > { %v1396_v6 = vadd.f32 %v1372_v48, %v1248_v4 }
 0x14a   : > { %v1522_v10 = vadd.f32 %v1498_v61, %v1396_v6  ;;  %v1538_v6 = vld [vmem:[#allocation2 + $0x20] sm:$0xff] }
 0x14c   : > { %v1542_v16 = vadd.f32 %v1532_v7, %v1522_v10  ;;  %v1100_v27 = vpop.f32.mrf.mxu1  ;;  %v1503_v52 = vpop.f32.mrf.mxu0 }
 0x14d   : > { %v1227_v26 = vpop.f32.mrf.mxu2  ;;  %v1121_v33 = vadd.f32 %v1100_v27, %v2840_v11  ;;  %v1385_v48 = vpop.f32.mrf.mxu3 }
 0x14e   : > { %1552 = vst [vmem:[#allocation2] sm:$0xff] %v1542_v16  ;;  %v1249_v14 = vadd.f32 %v1227_v26, %v1120_v15 }
 0x150   : > { %v1397_v54 = vadd.f32 %v1375_v59, %v1249_v14  ;;  %v1537_v59 = vld [vmem:[#allocation2 + $0x8] sm:$0xff] }
 0x152   : > { %v1523_v31 = vadd.f32 %v1501_v9, %v1397_v54 }
 0x154   : > { %v1543_v56 = vadd.f32 %v1533_v19, %v1523_v31  ;;  %v1103_v5 = vpop.f32.mrf.mxu1  ;;  %v1506_v38 = vpop.f32.mrf.mxu0 }
 0x155   : > { %v1229_v13 = vpop.f32.mrf.mxu2  ;;  %v1122_v30 = vadd.f32 %v1103_v5, %v2843_v29  ;;  %v1387_v61 = vpop.f32.mrf.mxu3 }
 0x156   : > { %1553 = vst [vmem:[#allocation2 + $0x18] sm:$0xff] %v1543_v56  ;;  %v1250_v36 = vadd.f32 %v1229_v13, %v1121_v33 }
 0x158   : > { %v1398_v37 = vadd.f32 %v1377_v23, %v1250_v36 }
 0x15a   : > { %v1524_v0 = vadd.f32 %v1503_v52, %v1398_v37 }
 0x15c   : > { %v1544_v39 = vadd.f32 %v1534_v21, %v1524_v0  ;;  %v1105_v11 = vpop.f32.mrf.mxu1  ;;  %v1508_v46 = vpop.f32.mrf.mxu0 }
 0x15d   : > { %v1232_v42 = vpop.f32.mrf.mxu2  ;;  %v1123_v47 = vadd.f32 %v1105_v11, %v2846_v34  ;;  %v1390_v10 = vpop.f32.mrf.mxu3 }
 0x15e   : > { %1554 = vst [vmem:[#allocation2 + $0x10] sm:$0xff] %v1544_v39  ;;  %v1251_v24 = vadd.f32 %v1232_v42, %v1122_v30 }
 0x160   : > { %v1399_v44 = vadd.f32 %v1380_v35, %v1251_v24 }
 0x162   : > { %v1525_v40 = vadd.f32 %v1506_v38, %v1399_v44 }
 0x164   : > { %v1545_v12 = vadd.f32 %v1535_v45, %v1525_v40  ;;  %v1108_v29 = vpop.f32.mrf.mxu1  ;;  %v1511_v53 = vpop.f32.mrf.mxu0 }
 0x165   : > { %v1234_v17 = vpop.f32.mrf.mxu2  ;;  %v1124_v50 = vadd.f32 %v1108_v29, %v2849_v63  ;;  %v1392_v33 = vpop.f32.mrf.mxu3 }
 0x166   : > { %1555 = vst [vmem:[#allocation2 + $0x48] sm:$0xff] %v1545_v12  ;;  %v1252_v62 = vadd.f32 %v1234_v17, %v1123_v47 }
 0x168   : > { %v1400_v22 = vadd.f32 %v1382_v43, %v1252_v62 }
 0x16a   : > { %v1526_v49 = vadd.f32 %v1508_v46, %v1400_v22 }
 0x16c   : > { %v1546_v25 = vadd.f32 %v1536_v41, %v1526_v49  ;;  %v1110_v60 = vpop.f32.mrf.mxu1  ;;  %v1513_v1 = vpop.f32.mrf.mxu0 }
 0x16d   : > { %v1237_v51 = vpop.f32.mrf.mxu2  ;;  %v1125_v20 = vadd.f32 %v1110_v60, %v2852_v18  ;;  %v1539_v18 = vld [vmem:[#allocation2 + $0x40] sm:$0xff] }
 0x16e   : > { %1556 = vst [vmem:[#allocation2 + $0x28] sm:$0xff] %v1546_v25  ;;  %v1253_v57 = vadd.f32 %v1237_v51, %v1124_v50 }
 0x170   : > { %v1401_v58 = vadd.f32 %v1385_v48, %v1253_v57 }
 0x172   : > { %v1527_v34 = vadd.f32 %v1511_v53, %v1401_v58 }
 0x174   : > { %v1547_v28 = vadd.f32 %v1537_v59, %v1527_v34  ;;  %v1113_v63 = vpop.f32.mrf.mxu1  ;;  %v1516_v16 = vpop.f32.mrf.mxu0 }
 0x175   : > { %v1239_v2 = vpop.f32.mrf.mxu2  ;;  %v1126_v8 = vadd.f32 %v1113_v63, %v2855_v32  ;;  %v1540_v32 = vld [vmem:[#allocation2 + $0x38] sm:$0xff] }
 0x176   : > { %1557 = vst [vmem:[#allocation2 + $0x8] sm:$0xff] %v1547_v28  ;;  %v1254_v3 = vadd.f32 %v1239_v2, %v1125_v20 }
 0x178   : > { %v1402_v4 = vadd.f32 %v1387_v61, %v1254_v3 }
 0x17a   : > { %v1528_v7 = vadd.f32 %v1513_v1, %v1402_v4 }
 0x17c   : > { %v1548_v9 = vadd.f32 %v1538_v6, %v1528_v7  ;;  %v1115_v14 = vpop.f32.mrf.mxu1  ;;  %v1518_v13 = vpop.f32.mrf.mxu0 }
 0x17d   : > { %v1242_v15 = vpop.f32.mrf.mxu2  ;;  %v1127_v19 = vadd.f32 %v1115_v14, %v2858_v55 }
 0x17e   : > { %1558 = vst [vmem:[#allocation2 + $0x20] sm:$0xff] %v1548_v9  ;;  %v1255_v23 = vadd.f32 %v1242_v15, %v1126_v8 }
 0x180   : > { %v1403_v26 = vadd.f32 %v1390_v10, %v1255_v23 }
 0x182   : > { %v1529_v54 = vadd.f32 %v1516_v16, %v1403_v26 }
 0x184   : > { %v1549_v27 = vadd.f32 %v1539_v18, %v1529_v54 }
 0x185   : > { %v1244_v52 = vpop.f32.mrf.mxu2 }
 0x186   : > { %1559 = vst [vmem:[#allocation2 + $0x40] sm:$0xff] %v1549_v27  ;;  %v1256_v31 = vadd.f32 %v1244_v52, %v1127_v19 }
 0x188   : > { %v1404_v56 = vadd.f32 %v1392_v33, %v1256_v31 }
 0x18a   : > { %v1530_v35 = vadd.f32 %v1518_v13, %v1404_v56  ;;  %1564 = sbr.rel (%p2171_p11) target bundleno = 417 (0x1a1), region = 44 }
 0x18c   : > { %v1550_v36 = vadd.f32 %v1540_v32, %v1530_v35 }
 0x18e   : > { %1560 = vst [vmem:[#allocation2 + $0x38] sm:$0xff] %v1550_v36 }
 0x18f   : > { %v1565_v37 = vld [vmem:[#allocation2 + $0x30] sm:$0xff]  ;;  %v1566_v21 = vld [vmem:[#allocation2] sm:$0xff]  ;;  %v1567_v38 = vld [vmem:[#allocation2 + $0x18] sm:$0xff] }
 0x190   : > { %v2410_v55 = vld [vmem:[%s2904_s2] ss:$0 sm:$0xff]  ;;  %v1568_v0 = vld [vmem:[#allocation2 + $0x10] sm:$0xff]  ;;  %v1569_v30 = vld [vmem:[#allocation2 + $0x48] sm:$0xff] }
 0x191   : > { %v2411_v5 = vld [vmem:[%s2905_s3] ss:$0 sm:$0xff]  ;;  %v1579_v39 = vmul.f32 %v2410_v55, %v1565_v37  ;;  %v1580_v42 = vmul.f32 %v2410_v55, %v1566_v21  ;;  %v1581_v24 = vmul.f32 %v2410_v55, %v1567_v38  ;;  %v1582_v43 = vmul.f32 %v2410_v55, %v1568_v0  ;;  %v1570_v44 = vld [vmem:[#allocation2 + $0x28] sm:$0xff] }
 0x192   : > { %v1571_v45 = vld [vmem:[#allocation2 + $0x8] sm:$0xff]  ;;  %v1572_v11 = vld [vmem:[#allocation2 + $0x20] sm:$0xff]  ;;  %v1583_v46 = vmul.f32 %v2410_v55, %v1569_v30  ;;  %v1584_v40 = vmul.f32 %v2410_v55, %v1570_v44 }
 0x193   : > { %v1585_v47 = vmul.f32 %v2410_v55, %v1571_v45  ;;  %v1586_v12 = vmul.f32 %v2410_v55, %v1572_v11  ;;  %v1593_v17 = vadd.f32 %v2411_v5, %v1579_v39  ;;  %v1594_v62 = vadd.f32 %v2411_v5, %v1580_v42  ;;  %v1573_v53 = vld [vmem:[#allocation2 + $0x40] sm:$0xff] }
 0x194   : > { %v1595_v22 = vadd.f32 %v2411_v5, %v1581_v24  ;;  %v1596_v41 = vadd.f32 %v2411_v5, %v1582_v43  ;;  %v1597_v48 = vadd.f32 %v2411_v5, %v1583_v46  ;;  %v1598_v29 = vadd.f32 %v2411_v5, %v1584_v40 }
 0x195   : > { %v1599_v49 = vadd.f32 %v2411_v5, %v1585_v47  ;;  %v1600_v50 = vadd.f32 %v2411_v5, %v1586_v12  ;;  %v1574_v25 = vld [vmem:[#allocation2 + $0x38] sm:$0xff]  ;;  %v1603_v51 = vmax.f32 %v1593_v17, 0.0  ;;  %v1604_v57 = vmax.f32 %v1594_v62, 0.0 }
 0x196   : > { %v1605_v58 = vmax.f32 %v1595_v22, 0.0  ;;  %v1606_v59 = vmax.f32 %v1596_v41, 0.0  ;;  %v1607_v60 = vmax.f32 %v1597_v48, 0.0  ;;  %v1608_v34 = vmax.f32 %v1598_v29, 0.0 }
 0x197   : > { %v1609_v20 = vmax.f32 %v1599_v49, 0.0  ;;  %v1610_v61 = vmax.f32 %v1600_v50, 0.0  ;;  %v2273_v28 = vpack.c.bf16 %v1604_v57, %v1603_v51  ;;  %v1587_v2 = vmul.f32 %v2410_v55, %v1573_v53 }
 0x198   : > { %v2278_v1 = vpack.c.bf16 %v1606_v59, %v1605_v58  ;;  %v1588_v3 = vmul.f32 %v2410_v55, %v1574_v25  ;;  %v2283_v4 = vpack.c.bf16 %v1608_v34, %v1607_v60 }
 0x199   : > { %v2288_v6 = vpack.c.bf16 %v1610_v61, %v1609_v20  ;;  %2274 = vst [vmem:[%s2559_s27] sm:$0xff] %v2273_v28   ;;  %v1601_v63 = vadd.f32 %v2411_v5, %v1587_v2 }
 0x19a   : > { %v1602_v7 = vadd.f32 %v2411_v5, %v1588_v3  ;;  %2320 = vst [vmem:[%s2559_s27 + $0x8] sm:$0xff] %v2278_v1  }
 0x19b   : > { %2321 = vst [vmem:[%s2559_s27 + $0x10] sm:$0xff] %v2283_v4   ;;  %v1611_v8 = vmax.f32 %v1601_v63, 0.0 }
 0x19c   : > { %v1612_v9 = vmax.f32 %v1602_v7, 0.0  ;;  %2322 = vst [vmem:[%s2559_s27 + $0x18] sm:$0xff] %v2288_v6  }
 0x19e   : > { %v2293_v10 = vpack.c.bf16 %v1612_v9, %v1611_v8 }
 0x1a0   : > { %2323 = vst [vmem:[%s2559_s27 + $0x20] sm:$0xff] %v2293_v10  }
 0x1a1 PF: > { %s14_s21 = sadd.s32 1, %s2466_s21   ;;  %s2908_s29 = sld [smem:[#allocation3_spill]] }
 0x1a2   : > { %p11_p12 = scmp.ge.s32.totalorder %s14_s21, 26   ;;  %s2909_s15 = smov %s2454_s18 }
 0x1a3   : > { %s2910_s16 = smov %s2458_s19  ;;  %s2911_s17 = smov %s2462_s20 }
 0x1a4   : > { %s2912_s18 = smov %s2916_s22  ;;  %s2913_s19 = smov %s2920_s23 }
 0x1a5   :  { %13 = sbr.rel (!%p11_p12) target bundleno = 4 (0x4), region = 85 }
 0x1a7   : > { %s2914_s20 = smov %s2908_s29 }

// kernel: bottleneck_forward.3
= control target key start
LH: loop header
LB: loop body
LE: loop exit
PB: predicated region body
PF: predicated region fallthrough
CT: control target
= control target key end

     0   :  { %s2820_s1 = inlined_call_operand.vmem [shape: bf16[256,128], index: 1, kind: input, shape index: {}]   ;;  %s2821_s0 = inlined_call_operand.vmem [shape: bf16[512,256], index: 0, kind: input, shape index: {}]   ;;  %s2822_s2 = inlined_call_operand.vmem [shape: f32[1,128], index: 2, kind: input, shape index: {}]   ;;  %s2823_s3 = inlined_call_operand.vmem [shape: f32[1,128], index: 3, kind: input, shape index: {}]   ;;  %s2824_s4 = inlined_call_operand.vmem [shape: bf16[512,128], index: 4, kind: output, shape index: {}]  }
   0x1   :  { %v1917_v0 = vld [vmem:[%s2820_s1 + $0x38] sm:$0xff]  ;;  %v1916_v2 = vld [vmem:[%s2820_s1 + $0x30] sm:$0xff]  ;;  %v1915_v4 = vld [vmem:[%s2820_s1 + $0x28] sm:$0xff] }
   0x2   :  { %v1925_v1 = vld [vmem:[%s2820_s1 + $0x78] sm:$0xff]  ;;  %661 = vmatpush.bf16.msra.mxu0 %v1917_v0  ;;  %2117 = vmatpush.bf16.msra.mxu2 %v1917_v0  ;;  %v1924_v3 = vld [vmem:[%s2820_s1 + $0x70] sm:$0xff]  ;;  %v1923_v5 = vld [vmem:[%s2820_s1 + $0x68] sm:$0xff] }
   0x3   :  { %830 = vmatpush.bf16.msra.mxu1 %v1925_v1  ;;  %2125 = vmatpush.bf16.msra.mxu3 %v1925_v1  ;;  %v1914_v6 = vld [vmem:[%s2820_s1 + $0x20] sm:$0xff]  ;;  %v1913_v8 = vld [vmem:[%s2820_s1 + $0x18] sm:$0xff]  ;;  %v1912_v10 = vld [vmem:[%s2820_s1 + $0x10] sm:$0xff] }
   0x4   :  { %v1922_v7 = vld [vmem:[%s2820_s1 + $0x60] sm:$0xff]  ;;  %v1921_v9 = vld [vmem:[%s2820_s1 + $0x58] sm:$0xff]  ;;  %v1920_v11 = vld [vmem:[%s2820_s1 + $0x50] sm:$0xff] }
   0x5   :  { %v1911_v12 = vld [vmem:[%s2820_s1 + $0x8] sm:$0xff]  ;;  %v1910_v14 = vld [vmem:[%s2820_s1] sm:$0xff]  ;;  %v1536_v28 = vld [vmem:[%s2821_s0 + $0x10] sm:$0xf] }
   0x6   :  { %662 = vmatpush.bf16.msra.mxu0 %v1916_v2  ;;  %2118 = vmatpush.bf16.msra.mxu2 %v1916_v2  ;;  %v1919_v13 = vld [vmem:[%s2820_s1 + $0x48] sm:$0xff]  ;;  %v1918_v15 = vld [vmem:[%s2820_s1 + $0x40] sm:$0xff]  ;;  %v1849_v29 = vld [vmem:[%s2821_s0 + $0x14] sm:$0xf0] }
   0x7   :  { %831 = vmatpush.bf16.msra.mxu1 %v1924_v3  ;;  %2126 = vmatpush.bf16.msra.mxu3 %v1924_v3  ;;  %v1528_v16 = vld [vmem:[%s2821_s0] sm:$0xf]  ;;  %v1847_v17 = vld [vmem:[%s2821_s0 + $0x4] sm:$0xf0]  ;;  %v1846_v20 = vld [vmem:[%s2821_s0 + $0x4] sm:$0xf]  ;;  %v1537_v36 = vor.u32 %v1849_v29, %v1536_v28 }
   0x8   :  { %v1656_v18 = vld [vmem:[%s2821_s0 + $0x100] sm:$0xf]  ;;  %v1879_v19 = vld [vmem:[%s2821_s0 + $0x104] sm:$0xf0]  ;;  %v1530_v21 = vld [vmem:[%s2821_s0 + $0x8] sm:$0xf0]  ;;  %v1529_v24 = vor.u32 %v1847_v17, %v1528_v16 }
   0x9   :  { %v1878_v22 = vld [vmem:[%s2821_s0 + $0x104] sm:$0xf]  ;;  %v1658_v23 = vld [vmem:[%s2821_s0 + $0x108] sm:$0xf0]  ;;  %v1657_v25 = vor.u32 %v1879_v19, %v1656_v18  ;;  %v1533_v26 = vor.u32 %v1846_v20, %v1530_v21  ;;  %v1664_v30 = vld [vmem:[%s2821_s0 + $0x110] sm:$0xf] }
   0xa   :  { %663 = vmatpush.bf16.msra.mxu0 %v1915_v4  ;;  %2119 = vmatpush.bf16.msra.mxu2 %v1915_v4  ;;  %v1661_v27 = vor.u32 %v1878_v22, %v1658_v23  ;;  %v1881_v31 = vld [vmem:[%s2821_s0 + $0x114] sm:$0xf0]  ;;  %v1848_v32 = vld [vmem:[%s2821_s0 + $0x14] sm:$0xf]  ;;  %v1538_v33 = vld [vmem:[%s2821_s0 + $0x18] sm:$0xf0] }
   0xb   :  { %832 = vmatpush.bf16.msra.mxu1 %v1923_v5  ;;  %2127 = vmatpush.bf16.msra.mxu3 %v1923_v5  ;;  %v1880_v34 = vld [vmem:[%s2821_s0 + $0x114] sm:$0xf]  ;;  %v1666_v35 = vld [vmem:[%s2821_s0 + $0x118] sm:$0xf0]  ;;  %v1665_v37 = vor.u32 %v1881_v31, %v1664_v30  ;;  %v1541_v38 = vor.u32 %v1848_v32, %v1538_v33  ;;  %v1544_v40 = vld [vmem:[%s2821_s0 + $0x20] sm:$0xf] }
   0xc   :  { %v1669_v39 = vor.u32 %v1880_v34, %v1666_v35  ;;  %v1851_v41 = vld [vmem:[%s2821_s0 + $0x24] sm:$0xf0]  ;;  %v1672_v42 = vld [vmem:[%s2821_s0 + $0x120] sm:$0xf]  ;;  %v1850_v44 = vld [vmem:[%s2821_s0 + $0x24] sm:$0xf] }
   0xd   :  { %v1883_v43 = vld [vmem:[%s2821_s0 + $0x124] sm:$0xf0]  ;;  %v1546_v45 = vld [vmem:[%s2821_s0 + $0x28] sm:$0xf0]  ;;  %v1882_v46 = vld [vmem:[%s2821_s0 + $0x124] sm:$0xf]  ;;  %v1545_v48 = vor.u32 %v1851_v41, %v1544_v40 }
   0xe   :  { %664 = vmatpush.bf16.msra.mxu0 %v1914_v6  ;;  %2120 = vmatpush.bf16.msra.mxu2 %v1914_v6  ;;  %v1674_v47 = vld [vmem:[%s2821_s0 + $0x128] sm:$0xf0]  ;;  %v1673_v49 = vor.u32 %v1883_v43, %v1672_v42  ;;  %v1549_v50 = vor.u32 %v1850_v44, %v1546_v45  ;;  %v1552_v52 = vld [vmem:[%s2821_s0 + $0x30] sm:$0xf]  ;;  %v1853_v53 = vld [vmem:[%s2821_s0 + $0x34] sm:$0xf0] }
   0xf   :  { %833 = vmatpush.bf16.msra.mxu1 %v1922_v7  ;;  %2128 = vmatpush.bf16.msra.mxu3 %v1922_v7  ;;  %v1677_v51 = vor.u32 %v1882_v46, %v1674_v47  ;;  %v1680_v54 = vld [vmem:[%s2821_s0 + $0x130] sm:$0xf]  ;;  %v1885_v55 = vld [vmem:[%s2821_s0 + $0x134] sm:$0xf0]  ;;  %v1852_v56 = vld [vmem:[%s2821_s0 + $0x34] sm:$0xf]  ;;  %v1553_v60 = vor.u32 %v1853_v53, %v1552_v52 }
  0x10   :  { %v1554_v57 = vld [vmem:[%s2821_s0 + $0x38] sm:$0xf0]  ;;  %v1884_v58 = vld [vmem:[%s2821_s0 + $0x134] sm:$0xf]  ;;  %v1681_v61 = vor.u32 %v1885_v55, %v1680_v54  ;;  %v1560_v0 = vld [vmem:[%s2821_s0 + $0x40] sm:$0xf] }
  0x11   :  { %v1682_v59 = vld [vmem:[%s2821_s0 + $0x138] sm:$0xf0]  ;;  %v1557_v62 = vor.u32 %v1852_v56, %v1554_v57  ;;  %v1855_v1 = vld [vmem:[%s2821_s0 + $0x44] sm:$0xf0]  ;;  %v1688_v2 = vld [vmem:[%s2821_s0 + $0x140] sm:$0xf] }
  0x12   :  { %665 = vmatpush.bf16.msra.mxu0 %v1913_v8  ;;  %2121 = vmatpush.bf16.msra.mxu2 %v1913_v8  ;;  %v1685_v63 = vor.u32 %v1884_v58, %v1682_v59  ;;  %v1887_v3 = vld [vmem:[%s2821_s0 + $0x144] sm:$0xf0]  ;;  %v1854_v4 = vld [vmem:[%s2821_s0 + $0x44] sm:$0xf]  ;;  %v1562_v5 = vld [vmem:[%s2821_s0 + $0x48] sm:$0xf0]  ;;  %v1561_v8 = vor.u32 %v1855_v1, %v1560_v0 }
  0x13   :  { %834 = vmatpush.bf16.msra.mxu1 %v1921_v9  ;;  %2129 = vmatpush.bf16.msra.mxu3 %v1921_v9  ;;  %v1886_v6 = vld [vmem:[%s2821_s0 + $0x144] sm:$0xf]  ;;  %v1690_v7 = vld [vmem:[%s2821_s0 + $0x148] sm:$0xf0]  ;;  %v1689_v9 = vor.u32 %v1887_v3, %v1688_v2  ;;  %v1856_v16 = vld [vmem:[%s2821_s0 + $0x54] sm:$0xf] }
  0x14   :  { %v1570_v17 = vld [vmem:[%s2821_s0 + $0x58] sm:$0xf0]  ;;  %v1888_v18 = vld [vmem:[%s2821_s0 + $0x154] sm:$0xf]  ;;  %v1858_v28 = vld [vmem:[%s2821_s0 + $0x64] sm:$0xf] }
  0x15   :  { %v1698_v19 = vld [vmem:[%s2821_s0 + $0x158] sm:$0xf0]  ;;  %v1573_v22 = vor.u32 %v1856_v16, %v1570_v17  ;;  %v1578_v29 = vld [vmem:[%s2821_s0 + $0x68] sm:$0xf0]  ;;  %v1890_v30 = vld [vmem:[%s2821_s0 + $0x164] sm:$0xf] }
  0x16   :  { %666 = vmatpush.bf16.msra.mxu0 %v1912_v10  ;;  %2122 = vmatpush.bf16.msra.mxu2 %v1912_v10  ;;  %v1565_v10 = vor.u32 %v1854_v4, %v1562_v5  ;;  %v1701_v23 = vor.u32 %v1888_v18, %v1698_v19  ;;  %v1706_v31 = vld [vmem:[%s2821_s0 + $0x168] sm:$0xf0]  ;;  %v1581_v34 = vor.u32 %v1858_v28, %v1578_v29  ;;  %v1860_v40 = vld [vmem:[%s2821_s0 + $0x74] sm:$0xf]  ;;  %v1586_v41 = vld [vmem:[%s2821_s0 + $0x78] sm:$0xf0] }
  0x17   :  { %835 = vmatpush.bf16.msra.mxu1 %v1920_v11  ;;  %2130 = vmatpush.bf16.msra.mxu3 %v1920_v11  ;;  %v1693_v11 = vor.u32 %v1886_v6, %v1690_v7  ;;  %v1709_v35 = vor.u32 %v1890_v30, %v1706_v31  ;;  %v1892_v42 = vld [vmem:[%s2821_s0 + $0x174] sm:$0xf]  ;;  %v1714_v43 = vld [vmem:[%s2821_s0 + $0x178] sm:$0xf0]  ;;  %v1589_v46 = vor.u32 %v1860_v40, %v1586_v41  ;;  %v1862_v52 = vld [vmem:[%s2821_s0 + $0x84] sm:$0xf] }
  0x18   :  { %v1717_v47 = vor.u32 %v1892_v42, %v1714_v43  ;;  %v1594_v53 = vld [vmem:[%s2821_s0 + $0x88] sm:$0xf0]  ;;  %v1894_v54 = vld [vmem:[%s2821_s0 + $0x184] sm:$0xf]  ;;  %v2435_v3 = vld [vmem:[%s2823_s3] ss:$0 sm:$0xff] }
  0x19   :  { %v1722_v55 = vld [vmem:[%s2821_s0 + $0x188] sm:$0xf0]  ;;  %v1597_v59 = vor.u32 %v1862_v52, %v1594_v53  ;;  %v1896_v16 = vld [vmem:[%s2821_s0 + $0x194] sm:$0xf]  ;;  %v1730_v17 = vld [vmem:[%s2821_s0 + $0x198] sm:$0xf0] }
  0x1a   :  { %667 = vmatpush.bf16.msra.mxu0 %v1911_v12  ;;  %2123 = vmatpush.bf16.msra.mxu2 %v1911_v12  ;;  %v1568_v12 = vld [vmem:[%s2821_s0 + $0x50] sm:$0xf]  ;;  %v1733_v29 = vor.u32 %v1896_v16, %v1730_v17  ;;  %v1866_v52 = vld [vmem:[%s2821_s0 + $0xa4] sm:$0xf]  ;;  %v1610_v53 = vld [vmem:[%s2821_s0 + $0xa8] sm:$0xf0] }
  0x1b   :  { %836 = vmatpush.bf16.msra.mxu1 %v1919_v13  ;;  %2131 = vmatpush.bf16.msra.mxu3 %v1919_v13  ;;  %v1857_v13 = vld [vmem:[%s2821_s0 + $0x54] sm:$0xf0] }
  0x1c   :  { %v1569_v20 = vor.u32 %v1857_v13, %v1568_v12  ;;  %v1897_v13 = vld [vmem:[%s2821_s0 + $0x194] sm:$0xf0] }
  0x1e   :  { %668 = vmatpush.bf16.msra.mxu0 %v1910_v14  ;;  %2124 = vmatpush.bf16.msra.mxu2 %v1910_v14  ;;  %v1696_v14 = vld [vmem:[%s2821_s0 + $0x150] sm:$0xf] }
  0x1f   :  { %837 = vmatpush.bf16.msra.mxu1 %v1918_v15  ;;  %2132 = vmatpush.bf16.msra.mxu3 %v1918_v15  ;;  %v1889_v15 = vld [vmem:[%s2821_s0 + $0x154] sm:$0xf0] }
  0x20   :  { %v1697_v21 = vor.u32 %v1889_v15, %v1696_v14  ;;  %v1864_v14 = vld [vmem:[%s2821_s0 + $0x94] sm:$0xf]  ;;  %v1602_v15 = vld [vmem:[%s2821_s0 + $0x98] sm:$0xf0] }
  0x21   :  { %669 = vmatmul.bf16.vlgmr.msra.gmra.mxu0 %v1529_v24  ;;  %749 = vmatmul.bf16.vlgmr.msra.gmra.mxu2 %v1657_v25  ;;  %v1576_v24 = vld [vmem:[%s2821_s0 + $0x60] sm:$0xf]  ;;  %v1859_v25 = vld [vmem:[%s2821_s0 + $0x64] sm:$0xf0] }
  0x22   :  { %838 = vmatmul.bf16.vlgmr.msra.gmra.mxu1 %v1533_v26  ;;  %918 = vmatmul.bf16.vlgmr.msra.gmra.mxu3 %v1661_v27  ;;  %v1704_v26 = vld [vmem:[%s2821_s0 + $0x160] sm:$0xf]  ;;  %v1891_v27 = vld [vmem:[%s2821_s0 + $0x164] sm:$0xf0]  ;;  %v1577_v32 = vor.u32 %v1859_v25, %v1576_v24  ;;  %v1605_v24 = vor.u32 %v1864_v14, %v1602_v15 }
  0x23   :  { %v1705_v33 = vor.u32 %v1891_v27, %v1704_v26 }
  0x31   :  { %674 = vmatmul.bf16.gmra.mxu0 %v1537_v36  ;;  %754 = vmatmul.bf16.gmra.mxu2 %v1665_v37  ;;  %v1584_v36 = vld [vmem:[%s2821_s0 + $0x70] sm:$0xf]  ;;  %v1861_v37 = vld [vmem:[%s2821_s0 + $0x74] sm:$0xf0] }
  0x32   :  { %843 = vmatmul.bf16.gmra.mxu1 %v1541_v38  ;;  %923 = vmatmul.bf16.gmra.mxu3 %v1669_v39  ;;  %v1712_v38 = vld [vmem:[%s2821_s0 + $0x170] sm:$0xf]  ;;  %v1893_v39 = vld [vmem:[%s2821_s0 + $0x174] sm:$0xf0]  ;;  %v1585_v44 = vor.u32 %v1861_v37, %v1584_v36 }
  0x33   :  { %v1713_v45 = vor.u32 %v1893_v39, %v1712_v38 }
  0x41   :  { %679 = vmatmul.bf16.gmra.mxu0 %v1545_v48  ;;  %759 = vmatmul.bf16.gmra.mxu2 %v1673_v49  ;;  %v1592_v48 = vld [vmem:[%s2821_s0 + $0x80] sm:$0xf]  ;;  %v1863_v49 = vld [vmem:[%s2821_s0 + $0x84] sm:$0xf0] }
  0x42   :  { %848 = vmatmul.bf16.gmra.mxu1 %v1549_v50  ;;  %928 = vmatmul.bf16.gmra.mxu3 %v1677_v51  ;;  %v1720_v50 = vld [vmem:[%s2821_s0 + $0x180] sm:$0xf]  ;;  %v1895_v51 = vld [vmem:[%s2821_s0 + $0x184] sm:$0xf0]  ;;  %v1593_v56 = vor.u32 %v1863_v49, %v1592_v48 }
  0x43   :  { %v1721_v57 = vor.u32 %v1895_v51, %v1720_v50  ;;  %v1736_v48 = vld [vmem:[%s2821_s0 + $0x1a0] sm:$0xf]  ;;  %v1899_v51 = vld [vmem:[%s2821_s0 + $0x1a4] sm:$0xf0] }
  0x51   :  { %684 = vmatmul.bf16.gmra.mxu0 %v1553_v60  ;;  %764 = vmatmul.bf16.gmra.mxu2 %v1681_v61  ;;  %v1725_v60 = vor.u32 %v1894_v54, %v1722_v55  ;;  %v1898_v54 = vld [vmem:[%s2821_s0 + $0x1a4] sm:$0xf]  ;;  %v1738_v55 = vld [vmem:[%s2821_s0 + $0x1a8] sm:$0xf0] }
  0x52   :  { %853 = vmatmul.bf16.gmra.mxu1 %v1557_v62  ;;  %933 = vmatmul.bf16.gmra.mxu3 %v1685_v63  ;;  %v2429_v63 = vld [vmem:[%s2822_s2] ss:$0 sm:$0xff] }
  0x61   :  { %689 = vmatmul.bf16.gmra.mxu0 %v1561_v8  ;;  %769 = vmatmul.bf16.gmra.mxu2 %v1689_v9  ;;  %v1600_v8 = vld [vmem:[%s2821_s0 + $0x90] sm:$0xf]  ;;  %v1865_v9 = vld [vmem:[%s2821_s0 + $0x94] sm:$0xf0] }
  0x62   :  { %858 = vmatmul.bf16.gmra.mxu1 %v1565_v10  ;;  %938 = vmatmul.bf16.gmra.mxu3 %v1693_v11  ;;  %v1728_v10 = vld [vmem:[%s2821_s0 + $0x190] sm:$0xf] }
  0x71   :  { %694 = vmatmul.bf16.gmra.mxu0 %v1569_v20  ;;  %774 = vmatmul.bf16.gmra.mxu2 %v1697_v21 }
  0x72   :  { %863 = vmatmul.bf16.gmra.mxu1 %v1573_v22  ;;  %943 = vmatmul.bf16.gmra.mxu3 %v1701_v23  ;;  %v1601_v22 = vor.u32 %v1865_v9, %v1600_v8  ;;  %v1729_v23 = vor.u32 %v1897_v13, %v1728_v10 }
  0x81   :  { %699 = vmatmul.bf16.gmra.mxu0 %v1577_v32  ;;  %779 = vmatmul.bf16.gmra.mxu2 %v1705_v33 }
  0x82   :  { %868 = vmatmul.bf16.gmra.mxu1 %v1581_v34  ;;  %948 = vmatmul.bf16.gmra.mxu3 %v1709_v35 }
  0x91   :  { %704 = vmatmul.bf16.gmra.mxu0 %v1585_v44  ;;  %784 = vmatmul.bf16.gmra.mxu2 %v1713_v45 }
  0x92   :  { %873 = vmatmul.bf16.gmra.mxu1 %v1589_v46  ;;  %953 = vmatmul.bf16.gmra.mxu3 %v1717_v47  ;;  %v1608_v46 = vld [vmem:[%s2821_s0 + $0xa0] sm:$0xf]  ;;  %v1867_v47 = vld [vmem:[%s2821_s0 + $0xa4] sm:$0xf0] }
  0x9e   :  { %v670_v58 = vpop.f32.mrf.mxu0 }
  0x9f   :  { %v839_v61 = vpop.f32.mrf.mxu1 }
  0xa0   :  { %v840_v62 = vadd.f32 %v839_v61, %v670_v58  ;;  %v1737_v61 = vor.u32 %v1899_v51, %v1736_v48 }
  0xa1   :  { %709 = vmatmul.bf16.gmra.mxu0 %v1593_v56  ;;  %789 = vmatmul.bf16.gmra.mxu2 %v1721_v57 }
  0xa2   :  { %878 = vmatmul.bf16.gmra.mxu1 %v1597_v59  ;;  %958 = vmatmul.bf16.gmra.mxu3 %v1725_v60  ;;  %v1198_v2 = vmul.f32 %v2429_v63, %v840_v62  ;;  %v1609_v60 = vor.u32 %v1867_v47, %v1608_v46  ;;  %v1613_v62 = vor.u32 %v1866_v52, %v1610_v53 }
  0xa4   :  { %v750_v0 = vpop.f32.mrf.mxu2  ;;  %v1266_v11 = vadd.f32 %v2435_v3, %v1198_v2 }
  0xa5   :  { %v919_v1 = vpop.f32.mrf.mxu3 }
  0xa6   :  { %v672_v4 = vpop.f32.mrf.mxu0  ;;  %v920_v6 = vadd.f32 %v919_v1, %v750_v0  ;;  %v1330_v25 = vmax.f32 %v1266_v11, 0.0 }
  0xa7   :  { %v841_v5 = vpop.f32.mrf.mxu1 }
  0xa8   :  { %v842_v7 = vadd.f32 %v841_v5, %v672_v4  ;;  %v1230_v18 = vmul.f32 %v2429_v63, %v920_v6  ;;  %v1741_v5 = vor.u32 %v1898_v54, %v1738_v55 }
  0xaa   :  { %v1199_v12 = vmul.f32 %v2429_v63, %v842_v7  ;;  %v1298_v31 = vadd.f32 %v2435_v3, %v1230_v18 }
  0xac   :  { %v1267_v19 = vadd.f32 %v2435_v3, %v1199_v12  ;;  %v752_v20 = vpop.f32.mrf.mxu2  ;;  %v1362_v36 = vmax.f32 %v1298_v31, 0.0  ;;  %v1746_v31 = vld [vmem:[%s2821_s0 + $0x1b8] sm:$0xf0] }
  0xad   :  { %v921_v21 = vpop.f32.mrf.mxu3 }
  0xae   :  { %v1331_v26 = vmax.f32 %v1267_v19, 0.0  ;;  %v922_v27 = vadd.f32 %v921_v21, %v752_v20  ;;  %v675_v28 = vpop.f32.mrf.mxu0 }
  0xaf   :  { %v844_v30 = vpop.f32.mrf.mxu1 }
  0xb0   :  { %v1929_v32 = vpack.c.bf16 %v1331_v26, %v1330_v25  ;;  %v1231_v33 = vmul.f32 %v2429_v63, %v922_v27  ;;  %v845_v35 = vadd.f32 %v844_v30, %v675_v28  ;;  %v1901_v27 = vld [vmem:[%s2821_s0 + $0x1b4] sm:$0xf0]  ;;  %v1868_v28 = vld [vmem:[%s2821_s0 + $0xb4] sm:$0xf] }
  0xb1   :  { %714 = vmatmul.bf16.gmra.mxu0 %v1601_v22  ;;  %794 = vmatmul.bf16.gmra.mxu2 %v1729_v23  ;;  %v1616_v22 = vld [vmem:[%s2821_s0 + $0xb0] sm:$0xf]  ;;  %v1869_v23 = vld [vmem:[%s2821_s0 + $0xb4] sm:$0xf0]  ;;  %v1900_v30 = vld [vmem:[%s2821_s0 + $0x1b4] sm:$0xf] }
  0xb2   :  { %1930 = vst [vmem:[%s2824_s4] sm:$0xff] %v1929_v32   ;;  %v1299_v34 = vadd.f32 %v2435_v3, %v1231_v33  ;;  %883 = vmatmul.bf16.gmra.mxu1 %v1605_v24  ;;  %963 = vmatmul.bf16.gmra.mxu3 %v1733_v29  ;;  %v1200_v41 = vmul.f32 %v2429_v63, %v845_v35  ;;  %v1744_v24 = vld [vmem:[%s2821_s0 + $0x1b0] sm:$0xf]  ;;  %v1618_v29 = vld [vmem:[%s2821_s0 + $0xb8] sm:$0xf0] }
  0xb4   :  { %v1363_v37 = vmax.f32 %v1299_v34, 0.0  ;;  %v755_v38 = vpop.f32.mrf.mxu2  ;;  %v1268_v49 = vadd.f32 %v2435_v3, %v1200_v41 }
  0xb5   :  { %v924_v39 = vpop.f32.mrf.mxu3 }
  0xb6   :  { %v2009_v40 = vpack.c.bf16 %v1363_v37, %v1362_v36  ;;  %v677_v42 = vpop.f32.mrf.mxu0  ;;  %v925_v44 = vadd.f32 %v924_v39, %v755_v38  ;;  %v1332_v0 = vmax.f32 %v1268_v49, 0.0  ;;  %v1617_v36 = vor.u32 %v1869_v23, %v1616_v22 }
  0xb7   :  { %v846_v43 = vpop.f32.mrf.mxu1  ;;  %v1745_v37 = vor.u32 %v1901_v27, %v1744_v24  ;;  %v1621_v38 = vor.u32 %v1868_v28, %v1618_v29 }
  0xb8   :  { %2101 = vst [vmem:[%s2824_s4 + $0x80] sm:$0xff] %v2009_v40   ;;  %v847_v45 = vadd.f32 %v846_v43, %v677_v42  ;;  %v1232_v56 = vmul.f32 %v2429_v63, %v925_v44  ;;  %v1749_v43 = vor.u32 %v1900_v30, %v1746_v31 }
  0xba   :  { %v1201_v50 = vmul.f32 %v2429_v63, %v847_v45  ;;  %v1300_v7 = vadd.f32 %v2435_v3, %v1232_v56 }
  0xbc   :  { %v1269_v57 = vadd.f32 %v2435_v3, %v1201_v50  ;;  %v757_v58 = vpop.f32.mrf.mxu2  ;;  %v1364_v12 = vmax.f32 %v1300_v7, 0.0  ;;  %v1754_v7 = vld [vmem:[%s2821_s0 + $0x1c8] sm:$0xf0] }
  0xbd   :  { %v926_v59 = vpop.f32.mrf.mxu3 }
  0xbe   :  { %v1333_v1 = vmax.f32 %v1269_v57, 0.0  ;;  %v927_v2 = vadd.f32 %v926_v59, %v757_v58  ;;  %v680_v4 = vpop.f32.mrf.mxu0 }
  0xbf   :  { %v849_v6 = vpop.f32.mrf.mxu1 }
  0xc0   :  { %v1934_v8 = vpack.c.bf16 %v1333_v1, %v1332_v0  ;;  %v1233_v9 = vmul.f32 %v2429_v63, %v927_v2  ;;  %v850_v11 = vadd.f32 %v849_v6, %v680_v4  ;;  %v1903_v2 = vld [vmem:[%s2821_s0 + $0x1c4] sm:$0xf0]  ;;  %v1870_v4 = vld [vmem:[%s2821_s0 + $0xc4] sm:$0xf] }
  0xc1   :  { %719 = vmatmul.bf16.gmra.mxu0 %v1609_v60  ;;  %799 = vmatmul.bf16.gmra.mxu2 %v1737_v61  ;;  %v1624_v60 = vld [vmem:[%s2821_s0 + $0xc0] sm:$0xf]  ;;  %v1871_v61 = vld [vmem:[%s2821_s0 + $0xc4] sm:$0xf0]  ;;  %v1902_v6 = vld [vmem:[%s2821_s0 + $0x1c4] sm:$0xf] }
  0xc2   :  { %2086 = vst [vmem:[%s2824_s4 + $0x8] sm:$0xff] %v1934_v8   ;;  %v1301_v10 = vadd.f32 %v2435_v3, %v1233_v9  ;;  %888 = vmatmul.bf16.gmra.mxu1 %v1613_v62  ;;  %968 = vmatmul.bf16.gmra.mxu3 %v1741_v5  ;;  %v1202_v17 = vmul.f32 %v2429_v63, %v850_v11  ;;  %v1752_v62 = vld [vmem:[%s2821_s0 + $0x1c0] sm:$0xf]  ;;  %v1626_v5 = vld [vmem:[%s2821_s0 + $0xc8] sm:$0xf0] }
  0xc4   :  { %v1365_v13 = vmax.f32 %v1301_v10, 0.0  ;;  %v760_v14 = vpop.f32.mrf.mxu2  ;;  %v1270_v25 = vadd.f32 %v2435_v3, %v1202_v17 }
  0xc5   :  { %v929_v15 = vpop.f32.mrf.mxu3 }
  0xc6   :  { %v2014_v16 = vpack.c.bf16 %v1365_v13, %v1364_v12  ;;  %v682_v18 = vpop.f32.mrf.mxu0  ;;  %v930_v20 = vadd.f32 %v929_v15, %v760_v14  ;;  %v1334_v39 = vmax.f32 %v1270_v25, 0.0  ;;  %v1625_v12 = vor.u32 %v1871_v61, %v1624_v60 }
  0xc7   :  { %v851_v19 = vpop.f32.mrf.mxu1  ;;  %v1753_v13 = vor.u32 %v1903_v2, %v1752_v62  ;;  %v1629_v14 = vor.u32 %v1870_v4, %v1626_v5 }
  0xc8   :  { %2102 = vst [vmem:[%s2824_s4 + $0x88] sm:$0xff] %v2014_v16   ;;  %v852_v21 = vadd.f32 %v851_v19, %v682_v18  ;;  %v1234_v32 = vmul.f32 %v2429_v63, %v930_v20  ;;  %v1757_v19 = vor.u32 %v1902_v6, %v1754_v7 }
  0xca   :  { %v1203_v26 = vmul.f32 %v2429_v63, %v852_v21  ;;  %v1302_v45 = vadd.f32 %v2435_v3, %v1234_v32 }
  0xcc   :  { %v1271_v33 = vadd.f32 %v2435_v3, %v1203_v26  ;;  %v762_v34 = vpop.f32.mrf.mxu2  ;;  %v1366_v50 = vmax.f32 %v1302_v45, 0.0  ;;  %v1762_v45 = vld [vmem:[%s2821_s0 + $0x1d8] sm:$0xf0] }
  0xcd   :  { %v931_v35 = vpop.f32.mrf.mxu3 }
  0xce   :  { %v1335_v40 = vmax.f32 %v1271_v33, 0.0  ;;  %v932_v41 = vadd.f32 %v931_v35, %v762_v34  ;;  %v685_v42 = vpop.f32.mrf.mxu0 }
  0xcf   :  { %v854_v44 = vpop.f32.mrf.mxu1 }
  0xd0   :  { %v1939_v46 = vpack.c.bf16 %v1335_v40, %v1334_v39  ;;  %v1235_v47 = vmul.f32 %v2429_v63, %v932_v41  ;;  %v855_v49 = vadd.f32 %v854_v44, %v685_v42  ;;  %v1905_v41 = vld [vmem:[%s2821_s0 + $0x1d4] sm:$0xf0]  ;;  %v1872_v42 = vld [vmem:[%s2821_s0 + $0xd4] sm:$0xf] }
  0xd1   :  { %724 = vmatmul.bf16.gmra.mxu0 %v1617_v36  ;;  %804 = vmatmul.bf16.gmra.mxu2 %v1745_v37  ;;  %v1632_v36 = vld [vmem:[%s2821_s0 + $0xd0] sm:$0xf]  ;;  %v1873_v37 = vld [vmem:[%s2821_s0 + $0xd4] sm:$0xf0]  ;;  %v1904_v44 = vld [vmem:[%s2821_s0 + $0x1d4] sm:$0xf] }
  0xd2   :  { %2087 = vst [vmem:[%s2824_s4 + $0x10] sm:$0xff] %v1939_v46   ;;  %v1303_v48 = vadd.f32 %v2435_v3, %v1235_v47  ;;  %893 = vmatmul.bf16.gmra.mxu1 %v1621_v38  ;;  %973 = vmatmul.bf16.gmra.mxu3 %v1749_v43  ;;  %v1204_v55 = vmul.f32 %v2429_v63, %v855_v49  ;;  %v1760_v38 = vld [vmem:[%s2821_s0 + $0x1d0] sm:$0xf]  ;;  %v1634_v43 = vld [vmem:[%s2821_s0 + $0xd8] sm:$0xf0] }
  0xd4   :  { %v1367_v51 = vmax.f32 %v1303_v48, 0.0  ;;  %v765_v52 = vpop.f32.mrf.mxu2  ;;  %v1272_v0 = vadd.f32 %v2435_v3, %v1204_v55 }
  0xd5   :  { %v934_v53 = vpop.f32.mrf.mxu3 }
  0xd6   :  { %v2019_v54 = vpack.c.bf16 %v1367_v51, %v1366_v50  ;;  %v687_v56 = vpop.f32.mrf.mxu0  ;;  %v935_v58 = vadd.f32 %v934_v53, %v765_v52  ;;  %v1336_v15 = vmax.f32 %v1272_v0, 0.0  ;;  %v1633_v50 = vor.u32 %v1873_v37, %v1632_v36 }
  0xd7   :  { %v856_v57 = vpop.f32.mrf.mxu1  ;;  %v1761_v51 = vor.u32 %v1905_v41, %v1760_v38  ;;  %v1637_v52 = vor.u32 %v1872_v42, %v1634_v43 }
  0xd8   :  { %2103 = vst [vmem:[%s2824_s4 + $0x90] sm:$0xff] %v2019_v54   ;;  %v857_v59 = vadd.f32 %v856_v57, %v687_v56  ;;  %v1236_v8 = vmul.f32 %v2429_v63, %v935_v58  ;;  %v1765_v57 = vor.u32 %v1904_v44, %v1762_v45 }
  0xda   :  { %v1205_v1 = vmul.f32 %v2429_v63, %v857_v59  ;;  %v1304_v21 = vadd.f32 %v2435_v3, %v1236_v8 }
  0xdc   :  { %v1273_v9 = vadd.f32 %v2435_v3, %v1205_v1  ;;  %v767_v10 = vpop.f32.mrf.mxu2  ;;  %v1368_v26 = vmax.f32 %v1304_v21, 0.0  ;;  %v1770_v21 = vld [vmem:[%s2821_s0 + $0x1e8] sm:$0xf0] }
  0xdd   :  { %v936_v11 = vpop.f32.mrf.mxu3 }
  0xde   :  { %v1337_v16 = vmax.f32 %v1273_v9, 0.0  ;;  %v937_v17 = vadd.f32 %v936_v11, %v767_v10  ;;  %v690_v18 = vpop.f32.mrf.mxu0 }
  0xdf   :  { %v859_v20 = vpop.f32.mrf.mxu1 }
  0xe0   :  { %v1944_v22 = vpack.c.bf16 %v1337_v16, %v1336_v15  ;;  %v1237_v23 = vmul.f32 %v2429_v63, %v937_v17  ;;  %v860_v25 = vadd.f32 %v859_v20, %v690_v18  ;;  %v1907_v17 = vld [vmem:[%s2821_s0 + $0x1e4] sm:$0xf0]  ;;  %v1874_v18 = vld [vmem:[%s2821_s0 + $0xe4] sm:$0xf] }
  0xe1   :  { %729 = vmatmul.bf16.gmra.mxu0 %v1625_v12  ;;  %809 = vmatmul.bf16.gmra.mxu2 %v1753_v13  ;;  %v1640_v12 = vld [vmem:[%s2821_s0 + $0xe0] sm:$0xf]  ;;  %v1875_v13 = vld [vmem:[%s2821_s0 + $0xe4] sm:$0xf0]  ;;  %v1906_v20 = vld [vmem:[%s2821_s0 + $0x1e4] sm:$0xf] }
  0xe2   :  { %2088 = vst [vmem:[%s2824_s4 + $0x18] sm:$0xff] %v1944_v22   ;;  %v1305_v24 = vadd.f32 %v2435_v3, %v1237_v23  ;;  %898 = vmatmul.bf16.gmra.mxu1 %v1629_v14  ;;  %978 = vmatmul.bf16.gmra.mxu3 %v1757_v19  ;;  %v1206_v31 = vmul.f32 %v2429_v63, %v860_v25  ;;  %v1768_v14 = vld [vmem:[%s2821_s0 + $0x1e0] sm:$0xf]  ;;  %v1642_v19 = vld [vmem:[%s2821_s0 + $0xe8] sm:$0xf0] }
  0xe4   :  { %v1369_v27 = vmax.f32 %v1305_v24, 0.0  ;;  %v770_v28 = vpop.f32.mrf.mxu2  ;;  %v1274_v39 = vadd.f32 %v2435_v3, %v1206_v31 }
  0xe5   :  { %v939_v29 = vpop.f32.mrf.mxu3 }
  0xe6   :  { %v2024_v30 = vpack.c.bf16 %v1369_v27, %v1368_v26  ;;  %v692_v32 = vpop.f32.mrf.mxu0  ;;  %v940_v34 = vadd.f32 %v939_v29, %v770_v28  ;;  %v1338_v53 = vmax.f32 %v1274_v39, 0.0  ;;  %v1641_v26 = vor.u32 %v1875_v13, %v1640_v12 }
  0xe7   :  { %v861_v33 = vpop.f32.mrf.mxu1  ;;  %v1769_v27 = vor.u32 %v1907_v17, %v1768_v14  ;;  %v1645_v28 = vor.u32 %v1874_v18, %v1642_v19 }
  0xe8   :  { %2104 = vst [vmem:[%s2824_s4 + $0x98] sm:$0xff] %v2024_v30   ;;  %v862_v35 = vadd.f32 %v861_v33, %v692_v32  ;;  %v1238_v46 = vmul.f32 %v2429_v63, %v940_v34  ;;  %v1773_v33 = vor.u32 %v1906_v20, %v1770_v21 }
  0xea   :  { %v1207_v40 = vmul.f32 %v2429_v63, %v862_v35  ;;  %v1306_v59 = vadd.f32 %v2435_v3, %v1238_v46 }
  0xec   :  { %v1275_v47 = vadd.f32 %v2435_v3, %v1207_v40  ;;  %v772_v48 = vpop.f32.mrf.mxu2  ;;  %v1370_v1 = vmax.f32 %v1306_v59, 0.0  ;;  %v1778_v59 = vld [vmem:[%s2821_s0 + $0x1f8] sm:$0xf0] }
  0xed   :  { %v941_v49 = vpop.f32.mrf.mxu3 }
  0xee   :  { %v1339_v54 = vmax.f32 %v1275_v47, 0.0  ;;  %v942_v55 = vadd.f32 %v941_v49, %v772_v48  ;;  %v695_v56 = vpop.f32.mrf.mxu0 }
  0xef   :  { %v864_v58 = vpop.f32.mrf.mxu1 }
  0xf0   :  { %v1949_v60 = vpack.c.bf16 %v1339_v54, %v1338_v53  ;;  %v1239_v61 = vmul.f32 %v2429_v63, %v942_v55  ;;  %v865_v0 = vadd.f32 %v864_v58, %v695_v56  ;;  %v1909_v55 = vld [vmem:[%s2821_s0 + $0x1f4] sm:$0xf0]  ;;  %v1876_v56 = vld [vmem:[%s2821_s0 + $0xf4] sm:$0xf] }
  0xf1   :  { %734 = vmatmul.bf16.gmra.mxu0 %v1633_v50  ;;  %814 = vmatmul.bf16.gmra.mxu2 %v1761_v51  ;;  %v1648_v50 = vld [vmem:[%s2821_s0 + $0xf0] sm:$0xf]  ;;  %v1877_v51 = vld [vmem:[%s2821_s0 + $0xf4] sm:$0xf0]  ;;  %v1908_v58 = vld [vmem:[%s2821_s0 + $0x1f4] sm:$0xf] }
  0xf2   :  { %2089 = vst [vmem:[%s2824_s4 + $0x20] sm:$0xff] %v1949_v60   ;;  %v1307_v62 = vadd.f32 %v2435_v3, %v1239_v61  ;;  %903 = vmatmul.bf16.gmra.mxu1 %v1637_v52  ;;  %983 = vmatmul.bf16.gmra.mxu3 %v1765_v57  ;;  %v1208_v7 = vmul.f32 %v2429_v63, %v865_v0  ;;  %v1776_v52 = vld [vmem:[%s2821_s0 + $0x1f0] sm:$0xf]  ;;  %v1650_v57 = vld [vmem:[%s2821_s0 + $0xf8] sm:$0xf0] }
  0xf4   :  { %v1371_v2 = vmax.f32 %v1307_v62, 0.0  ;;  %v775_v4 = vpop.f32.mrf.mxu2  ;;  %v1276_v15 = vadd.f32 %v2435_v3, %v1208_v7 }
  0xf5   :  { %v944_v5 = vpop.f32.mrf.mxu3 }
  0xf6   :  { %v2029_v6 = vpack.c.bf16 %v1371_v2, %v1370_v1  ;;  %v697_v8 = vpop.f32.mrf.mxu0  ;;  %v945_v10 = vadd.f32 %v944_v5, %v775_v4  ;;  %v1340_v29 = vmax.f32 %v1276_v15, 0.0  ;;  %v1649_v1 = vor.u32 %v1877_v51, %v1648_v50 }
  0xf7   :  { %v866_v9 = vpop.f32.mrf.mxu1  ;;  %v1777_v2 = vor.u32 %v1909_v55, %v1776_v52  ;;  %v1653_v4 = vor.u32 %v1876_v56, %v1650_v57 }
  0xf8   :  { %2105 = vst [vmem:[%s2824_s4 + $0xa0] sm:$0xff] %v2029_v6   ;;  %v867_v11 = vadd.f32 %v866_v9, %v697_v8  ;;  %v1240_v22 = vmul.f32 %v2429_v63, %v945_v10  ;;  %v1781_v9 = vor.u32 %v1908_v58, %v1778_v59 }
  0xfa   :  { %v1209_v16 = vmul.f32 %v2429_v63, %v867_v11  ;;  %v1308_v35 = vadd.f32 %v2435_v3, %v1240_v22 }
  0xfc   :  { %v1277_v23 = vadd.f32 %v2435_v3, %v1209_v16  ;;  %v777_v24 = vpop.f32.mrf.mxu2  ;;  %v1372_v40 = vmax.f32 %v1308_v35, 0.0 }
  0xfd   :  { %v946_v25 = vpop.f32.mrf.mxu3 }
  0xfe   :  { %v1341_v30 = vmax.f32 %v1277_v23, 0.0  ;;  %v947_v31 = vadd.f32 %v946_v25, %v777_v24  ;;  %v700_v32 = vpop.f32.mrf.mxu0 }
  0xff   :  { %v869_v34 = vpop.f32.mrf.mxu1 }
 0x100   :  { %v1954_v36 = vpack.c.bf16 %v1341_v30, %v1340_v29  ;;  %v1241_v37 = vmul.f32 %v2429_v63, %v947_v31  ;;  %v870_v39 = vadd.f32 %v869_v34, %v700_v32 }
 0x101   :  { %739 = vmatmul.bf16.gmra.mxu0 %v1641_v26  ;;  %819 = vmatmul.bf16.gmra.mxu2 %v1769_v27 }
 0x102   :  { %2090 = vst [vmem:[%s2824_s4 + $0x28] sm:$0xff] %v1954_v36   ;;  %v1309_v38 = vadd.f32 %v2435_v3, %v1241_v37  ;;  %908 = vmatmul.bf16.gmra.mxu1 %v1645_v28  ;;  %988 = vmatmul.bf16.gmra.mxu3 %v1773_v33  ;;  %v1210_v45 = vmul.f32 %v2429_v63, %v870_v39 }
 0x104   :  { %v1373_v41 = vmax.f32 %v1309_v38, 0.0  ;;  %v780_v42 = vpop.f32.mrf.mxu2  ;;  %v1278_v53 = vadd.f32 %v2435_v3, %v1210_v45 }
 0x105   :  { %v949_v43 = vpop.f32.mrf.mxu3 }
 0x106   :  { %v2034_v44 = vpack.c.bf16 %v1373_v41, %v1372_v40  ;;  %v702_v46 = vpop.f32.mrf.mxu0  ;;  %v950_v48 = vadd.f32 %v949_v43, %v780_v42  ;;  %v1342_v5 = vmax.f32 %v1278_v53, 0.0 }
 0x107   :  { %v871_v47 = vpop.f32.mrf.mxu1 }
 0x108   :  { %2106 = vst [vmem:[%s2824_s4 + $0xa8] sm:$0xff] %v2034_v44   ;;  %v872_v49 = vadd.f32 %v871_v47, %v702_v46  ;;  %v1242_v60 = vmul.f32 %v2429_v63, %v950_v48 }
 0x10a   :  { %v1211_v54 = vmul.f32 %v2429_v63, %v872_v49  ;;  %v1310_v11 = vadd.f32 %v2435_v3, %v1242_v60 }
 0x10c   :  { %v1279_v61 = vadd.f32 %v2435_v3, %v1211_v54  ;;  %v782_v62 = vpop.f32.mrf.mxu2  ;;  %v1374_v16 = vmax.f32 %v1310_v11, 0.0 }
 0x10d   :  { %v951_v0 = vpop.f32.mrf.mxu3 }
 0x10e   :  { %v1343_v6 = vmax.f32 %v1279_v61, 0.0  ;;  %v952_v7 = vadd.f32 %v951_v0, %v782_v62  ;;  %v705_v8 = vpop.f32.mrf.mxu0 }
 0x10f   :  { %v874_v10 = vpop.f32.mrf.mxu1 }
 0x110   :  { %v1959_v12 = vpack.c.bf16 %v1343_v6, %v1342_v5  ;;  %v1243_v13 = vmul.f32 %v2429_v63, %v952_v7  ;;  %v875_v15 = vadd.f32 %v874_v10, %v705_v8 }
 0x111   :  { %744 = vmatmul.bf16.gmra.mxu0 %v1649_v1  ;;  %824 = vmatmul.bf16.gmra.mxu2 %v1777_v2 }
 0x112   :  { %2091 = vst [vmem:[%s2824_s4 + $0x30] sm:$0xff] %v1959_v12   ;;  %v1311_v14 = vadd.f32 %v2435_v3, %v1243_v13  ;;  %913 = vmatmul.bf16.gmra.mxu1 %v1653_v4  ;;  %993 = vmatmul.bf16.gmra.mxu3 %v1781_v9  ;;  %v1212_v21 = vmul.f32 %v2429_v63, %v875_v15 }
 0x114   :  { %v1375_v17 = vmax.f32 %v1311_v14, 0.0  ;;  %v785_v18 = vpop.f32.mrf.mxu2  ;;  %v1280_v26 = vadd.f32 %v2435_v3, %v1212_v21 }
 0x115   :  { %v954_v19 = vpop.f32.mrf.mxu3 }
 0x116   :  { %v2039_v20 = vpack.c.bf16 %v1375_v17, %v1374_v16  ;;  %v707_v22 = vpop.f32.mrf.mxu0  ;;  %v955_v24 = vadd.f32 %v954_v19, %v785_v18  ;;  %v1344_v32 = vmax.f32 %v1280_v26, 0.0 }
 0x117   :  { %v876_v23 = vpop.f32.mrf.mxu1 }
 0x118   :  { %2107 = vst [vmem:[%s2824_s4 + $0xb0] sm:$0xff] %v2039_v20   ;;  %v877_v25 = vadd.f32 %v876_v23, %v707_v22  ;;  %v1244_v28 = vmul.f32 %v2429_v63, %v955_v24 }
 0x11a   :  { %v1213_v27 = vmul.f32 %v2429_v63, %v877_v25  ;;  %v1312_v37 = vadd.f32 %v2435_v3, %v1244_v28 }
 0x11c   :  { %v1281_v29 = vadd.f32 %v2435_v3, %v1213_v27  ;;  %v787_v30 = vpop.f32.mrf.mxu2  ;;  %v1376_v42 = vmax.f32 %v1312_v37, 0.0 }
 0x11d   :  { %v956_v31 = vpop.f32.mrf.mxu3 }
 0x11e   :  { %v1345_v33 = vmax.f32 %v1281_v29, 0.0  ;;  %v957_v34 = vadd.f32 %v956_v31, %v787_v30  ;;  %v710_v35 = vpop.f32.mrf.mxu0 }
 0x11f   :  { %v879_v36 = vpop.f32.mrf.mxu1 }
 0x120   :  { %v1964_v38 = vpack.c.bf16 %v1345_v33, %v1344_v32  ;;  %v1245_v39 = vmul.f32 %v2429_v63, %v957_v34  ;;  %v880_v41 = vadd.f32 %v879_v36, %v710_v35 }
 0x122   :  { %2092 = vst [vmem:[%s2824_s4 + $0x38] sm:$0xff] %v1964_v38   ;;  %v1313_v40 = vadd.f32 %v2435_v3, %v1245_v39  ;;  %v1214_v47 = vmul.f32 %v2429_v63, %v880_v41 }
 0x124   :  { %v1377_v43 = vmax.f32 %v1313_v40, 0.0  ;;  %v790_v44 = vpop.f32.mrf.mxu2  ;;  %v1282_v52 = vadd.f32 %v2435_v3, %v1214_v47 }
 0x125   :  { %v959_v45 = vpop.f32.mrf.mxu3 }
 0x126   :  { %v2044_v46 = vpack.c.bf16 %v1377_v43, %v1376_v42  ;;  %v712_v48 = vpop.f32.mrf.mxu0  ;;  %v960_v50 = vadd.f32 %v959_v45, %v790_v44  ;;  %v1346_v58 = vmax.f32 %v1282_v52, 0.0 }
 0x127   :  { %v881_v49 = vpop.f32.mrf.mxu1 }
 0x128   :  { %2108 = vst [vmem:[%s2824_s4 + $0xb8] sm:$0xff] %v2044_v46   ;;  %v882_v51 = vadd.f32 %v881_v49, %v712_v48  ;;  %v1246_v54 = vmul.f32 %v2429_v63, %v960_v50 }
 0x12a   :  { %v1215_v53 = vmul.f32 %v2429_v63, %v882_v51  ;;  %v1314_v0 = vadd.f32 %v2435_v3, %v1246_v54 }
 0x12c   :  { %v1283_v55 = vadd.f32 %v2435_v3, %v1215_v53  ;;  %v792_v56 = vpop.f32.mrf.mxu2  ;;  %v1378_v6 = vmax.f32 %v1314_v0, 0.0 }
 0x12d   :  { %v961_v57 = vpop.f32.mrf.mxu3 }
 0x12e   :  { %v1347_v59 = vmax.f32 %v1283_v55, 0.0  ;;  %v962_v60 = vadd.f32 %v961_v57, %v792_v56  ;;  %v715_v61 = vpop.f32.mrf.mxu0 }
 0x12f   :  { %v884_v62 = vpop.f32.mrf.mxu1 }
 0x130   :  { %v1969_v1 = vpack.c.bf16 %v1347_v59, %v1346_v58  ;;  %v1247_v2 = vmul.f32 %v2429_v63, %v962_v60  ;;  %v885_v5 = vadd.f32 %v884_v62, %v715_v61 }
 0x132   :  { %2093 = vst [vmem:[%s2824_s4 + $0x40] sm:$0xff] %v1969_v1   ;;  %v1315_v4 = vadd.f32 %v2435_v3, %v1247_v2  ;;  %v1216_v11 = vmul.f32 %v2429_v63, %v885_v5 }
 0x134   :  { %v1379_v7 = vmax.f32 %v1315_v4, 0.0  ;;  %v795_v8 = vpop.f32.mrf.mxu2  ;;  %v1284_v16 = vadd.f32 %v2435_v3, %v1216_v11 }
 0x135   :  { %v964_v9 = vpop.f32.mrf.mxu3 }
 0x136   :  { %v2049_v10 = vpack.c.bf16 %v1379_v7, %v1378_v6  ;;  %v717_v12 = vpop.f32.mrf.mxu0  ;;  %v965_v14 = vadd.f32 %v964_v9, %v795_v8  ;;  %v1348_v22 = vmax.f32 %v1284_v16, 0.0 }
 0x137   :  { %v886_v13 = vpop.f32.mrf.mxu1 }
 0x138   :  { %2109 = vst [vmem:[%s2824_s4 + $0xc0] sm:$0xff] %v2049_v10   ;;  %v887_v15 = vadd.f32 %v886_v13, %v717_v12  ;;  %v1248_v18 = vmul.f32 %v2429_v63, %v965_v14 }
 0x13a   :  { %v1217_v17 = vmul.f32 %v2429_v63, %v887_v15  ;;  %v1316_v27 = vadd.f32 %v2435_v3, %v1248_v18 }
 0x13c   :  { %v1285_v19 = vadd.f32 %v2435_v3, %v1217_v17  ;;  %v797_v20 = vpop.f32.mrf.mxu2  ;;  %v1380_v32 = vmax.f32 %v1316_v27, 0.0 }
 0x13d   :  { %v966_v21 = vpop.f32.mrf.mxu3 }
 0x13e   :  { %v1349_v23 = vmax.f32 %v1285_v19, 0.0  ;;  %v967_v24 = vadd.f32 %v966_v21, %v797_v20  ;;  %v720_v25 = vpop.f32.mrf.mxu0 }
 0x13f   :  { %v889_v26 = vpop.f32.mrf.mxu1 }
 0x140   :  { %v1974_v28 = vpack.c.bf16 %v1349_v23, %v1348_v22  ;;  %v1249_v29 = vmul.f32 %v2429_v63, %v967_v24  ;;  %v890_v31 = vadd.f32 %v889_v26, %v720_v25 }
 0x142   :  { %2094 = vst [vmem:[%s2824_s4 + $0x48] sm:$0xff] %v1974_v28   ;;  %v1317_v30 = vadd.f32 %v2435_v3, %v1249_v29  ;;  %v1218_v37 = vmul.f32 %v2429_v63, %v890_v31 }
 0x144   :  { %v1381_v33 = vmax.f32 %v1317_v30, 0.0  ;;  %v800_v34 = vpop.f32.mrf.mxu2  ;;  %v1286_v42 = vadd.f32 %v2435_v3, %v1218_v37 }
 0x145   :  { %v969_v35 = vpop.f32.mrf.mxu3 }
 0x146   :  { %v2054_v36 = vpack.c.bf16 %v1381_v33, %v1380_v32  ;;  %v722_v38 = vpop.f32.mrf.mxu0  ;;  %v970_v40 = vadd.f32 %v969_v35, %v800_v34  ;;  %v1350_v48 = vmax.f32 %v1286_v42, 0.0 }
 0x147   :  { %v891_v39 = vpop.f32.mrf.mxu1 }
 0x148   :  { %2110 = vst [vmem:[%s2824_s4 + $0xc8] sm:$0xff] %v2054_v36   ;;  %v892_v41 = vadd.f32 %v891_v39, %v722_v38  ;;  %v1250_v44 = vmul.f32 %v2429_v63, %v970_v40 }
 0x14a   :  { %v1219_v43 = vmul.f32 %v2429_v63, %v892_v41  ;;  %v1318_v53 = vadd.f32 %v2435_v3, %v1250_v44 }
 0x14c   :  { %v1287_v45 = vadd.f32 %v2435_v3, %v1219_v43  ;;  %v802_v46 = vpop.f32.mrf.mxu2  ;;  %v1382_v58 = vmax.f32 %v1318_v53, 0.0 }
 0x14d   :  { %v971_v47 = vpop.f32.mrf.mxu3 }
 0x14e   :  { %v1351_v49 = vmax.f32 %v1287_v45, 0.0  ;;  %v972_v50 = vadd.f32 %v971_v47, %v802_v46  ;;  %v725_v51 = vpop.f32.mrf.mxu0 }
 0x14f   :  { %v894_v52 = vpop.f32.mrf.mxu1 }
 0x150   :  { %v1979_v54 = vpack.c.bf16 %v1351_v49, %v1350_v48  ;;  %v1251_v55 = vmul.f32 %v2429_v63, %v972_v50  ;;  %v895_v57 = vadd.f32 %v894_v52, %v725_v51 }
 0x152   :  { %2095 = vst [vmem:[%s2824_s4 + $0x50] sm:$0xff] %v1979_v54   ;;  %v1319_v56 = vadd.f32 %v2435_v3, %v1251_v55  ;;  %v1220_v0 = vmul.f32 %v2429_v63, %v895_v57 }
 0x154   :  { %v1383_v59 = vmax.f32 %v1319_v56, 0.0  ;;  %v805_v60 = vpop.f32.mrf.mxu2  ;;  %v1288_v6 = vadd.f32 %v2435_v3, %v1220_v0 }
 0x155   :  { %v974_v61 = vpop.f32.mrf.mxu3 }
 0x156   :  { %v2059_v62 = vpack.c.bf16 %v1383_v59, %v1382_v58  ;;  %v727_v1 = vpop.f32.mrf.mxu0  ;;  %v975_v4 = vadd.f32 %v974_v61, %v805_v60  ;;  %v1352_v12 = vmax.f32 %v1288_v6, 0.0 }
 0x157   :  { %v896_v2 = vpop.f32.mrf.mxu1 }
 0x158   :  { %2111 = vst [vmem:[%s2824_s4 + $0xd0] sm:$0xff] %v2059_v62   ;;  %v897_v5 = vadd.f32 %v896_v2, %v727_v1  ;;  %v1252_v8 = vmul.f32 %v2429_v63, %v975_v4 }
 0x15a   :  { %v1221_v7 = vmul.f32 %v2429_v63, %v897_v5  ;;  %v1320_v17 = vadd.f32 %v2435_v3, %v1252_v8 }
 0x15c   :  { %v1289_v9 = vadd.f32 %v2435_v3, %v1221_v7  ;;  %v807_v10 = vpop.f32.mrf.mxu2  ;;  %v1384_v22 = vmax.f32 %v1320_v17, 0.0 }
 0x15d   :  { %v976_v11 = vpop.f32.mrf.mxu3 }
 0x15e   :  { %v1353_v13 = vmax.f32 %v1289_v9, 0.0  ;;  %v977_v14 = vadd.f32 %v976_v11, %v807_v10  ;;  %v730_v15 = vpop.f32.mrf.mxu0 }
 0x15f   :  { %v899_v16 = vpop.f32.mrf.mxu1 }
 0x160   :  { %v1984_v18 = vpack.c.bf16 %v1353_v13, %v1352_v12  ;;  %v1253_v19 = vmul.f32 %v2429_v63, %v977_v14  ;;  %v900_v21 = vadd.f32 %v899_v16, %v730_v15 }
 0x162   :  { %2096 = vst [vmem:[%s2824_s4 + $0x58] sm:$0xff] %v1984_v18   ;;  %v1321_v20 = vadd.f32 %v2435_v3, %v1253_v19  ;;  %v1222_v27 = vmul.f32 %v2429_v63, %v900_v21 }
 0x164   :  { %v1385_v23 = vmax.f32 %v1321_v20, 0.0  ;;  %v810_v24 = vpop.f32.mrf.mxu2  ;;  %v1290_v32 = vadd.f32 %v2435_v3, %v1222_v27 }
 0x165   :  { %v979_v25 = vpop.f32.mrf.mxu3 }
 0x166   :  { %v2064_v26 = vpack.c.bf16 %v1385_v23, %v1384_v22  ;;  %v732_v28 = vpop.f32.mrf.mxu0  ;;  %v980_v30 = vadd.f32 %v979_v25, %v810_v24  ;;  %v1354_v38 = vmax.f32 %v1290_v32, 0.0  ;;  %v2135_v23 = vld [vmem:[%s2822_s2] ss:$0 sm:$0xff] }
 0x167   :  { %v901_v29 = vpop.f32.mrf.mxu1 }
 0x168   :  { %2112 = vst [vmem:[%s2824_s4 + $0xd8] sm:$0xff] %v2064_v26   ;;  %v902_v31 = vadd.f32 %v901_v29, %v732_v28  ;;  %v1254_v34 = vmul.f32 %v2429_v63, %v980_v30 }
 0x16a   :  { %v1223_v33 = vmul.f32 %v2429_v63, %v902_v31  ;;  %v1322_v43 = vadd.f32 %v2435_v3, %v1254_v34 }
 0x16c   :  { %v1291_v35 = vadd.f32 %v2435_v3, %v1223_v33  ;;  %v812_v36 = vpop.f32.mrf.mxu2  ;;  %v1386_v48 = vmax.f32 %v1322_v43, 0.0 }
 0x16d   :  { %v981_v37 = vpop.f32.mrf.mxu3 }
 0x16e   :  { %v1355_v39 = vmax.f32 %v1291_v35, 0.0  ;;  %v982_v40 = vadd.f32 %v981_v37, %v812_v36  ;;  %v735_v41 = vpop.f32.mrf.mxu0 }
 0x16f   :  { %v904_v42 = vpop.f32.mrf.mxu1 }
 0x170   :  { %v1989_v44 = vpack.c.bf16 %v1355_v39, %v1354_v38  ;;  %v1255_v45 = vmul.f32 %v2429_v63, %v982_v40  ;;  %v905_v47 = vadd.f32 %v904_v42, %v735_v41 }
 0x172   :  { %2097 = vst [vmem:[%s2824_s4 + $0x60] sm:$0xff] %v1989_v44   ;;  %v1323_v46 = vadd.f32 %v2435_v3, %v1255_v45  ;;  %v1224_v53 = vmul.f32 %v2429_v63, %v905_v47 }
 0x174   :  { %v1387_v49 = vmax.f32 %v1323_v46, 0.0  ;;  %v815_v50 = vpop.f32.mrf.mxu2  ;;  %v1292_v58 = vadd.f32 %v2435_v3, %v1224_v53 }
 0x175   :  { %v984_v51 = vpop.f32.mrf.mxu3 }
 0x176   :  { %v2069_v52 = vpack.c.bf16 %v1387_v49, %v1386_v48  ;;  %v737_v54 = vpop.f32.mrf.mxu0  ;;  %v985_v56 = vadd.f32 %v984_v51, %v815_v50  ;;  %v1356_v1 = vmax.f32 %v1292_v58, 0.0 }
 0x177   :  { %v906_v55 = vpop.f32.mrf.mxu1 }
 0x178   :  { %2113 = vst [vmem:[%s2824_s4 + $0xe0] sm:$0xff] %v2069_v52   ;;  %v907_v57 = vadd.f32 %v906_v55, %v737_v54  ;;  %v1256_v60 = vmul.f32 %v2429_v63, %v985_v56 }
 0x17a   :  { %v1225_v59 = vmul.f32 %v2429_v63, %v907_v57  ;;  %v1324_v7 = vadd.f32 %v2435_v3, %v1256_v60 }
 0x17c   :  { %v1293_v61 = vadd.f32 %v2435_v3, %v1225_v59  ;;  %v817_v62 = vpop.f32.mrf.mxu2  ;;  %v1388_v12 = vmax.f32 %v1324_v7, 0.0 }
 0x17d   :  { %v986_v0 = vpop.f32.mrf.mxu3 }
 0x17e   :  { %v1357_v2 = vmax.f32 %v1293_v61, 0.0  ;;  %v987_v4 = vadd.f32 %v986_v0, %v817_v62  ;;  %v740_v5 = vpop.f32.mrf.mxu0 }
 0x17f   :  { %v909_v6 = vpop.f32.mrf.mxu1 }
 0x180   :  { %v1994_v8 = vpack.c.bf16 %v1357_v2, %v1356_v1  ;;  %v1257_v9 = vmul.f32 %v2429_v63, %v987_v4  ;;  %v910_v11 = vadd.f32 %v909_v6, %v740_v5 }
 0x182   :  { %2098 = vst [vmem:[%s2824_s4 + $0x68] sm:$0xff] %v1994_v8   ;;  %v1325_v10 = vadd.f32 %v2435_v3, %v1257_v9  ;;  %v1226_v17 = vmul.f32 %v2429_v63, %v910_v11  ;;  %v2136_v63 = vld [vmem:[%s2823_s3] ss:$0 sm:$0xff] }
 0x184   :  { %v1389_v13 = vmax.f32 %v1325_v10, 0.0  ;;  %v820_v14 = vpop.f32.mrf.mxu2  ;;  %v1294_v22 = vadd.f32 %v2435_v3, %v1226_v17 }
 0x185   :  { %v989_v15 = vpop.f32.mrf.mxu3 }
 0x186   :  { %v2074_v16 = vpack.c.bf16 %v1389_v13, %v1388_v12  ;;  %v742_v18 = vpop.f32.mrf.mxu0  ;;  %v990_v20 = vadd.f32 %v989_v15, %v820_v14  ;;  %v1358_v29 = vmax.f32 %v1294_v22, 0.0 }
 0x187   :  { %v911_v19 = vpop.f32.mrf.mxu1 }
 0x188   :  { %2114 = vst [vmem:[%s2824_s4 + $0xe8] sm:$0xff] %v2074_v16   ;;  %v912_v21 = vadd.f32 %v911_v19, %v742_v18  ;;  %v1258_v25 = vmul.f32 %v2135_v23, %v990_v20 }
 0x18a   :  { %v1227_v24 = vmul.f32 %v2135_v23, %v912_v21  ;;  %v1326_v34 = vadd.f32 %v2136_v63, %v1258_v25 }
 0x18c   :  { %v1295_v26 = vadd.f32 %v2136_v63, %v1227_v24  ;;  %v822_v27 = vpop.f32.mrf.mxu2  ;;  %v1390_v38 = vmax.f32 %v1326_v34, 0.0 }
 0x18d   :  { %v991_v28 = vpop.f32.mrf.mxu3 }
 0x18e   :  { %v1359_v30 = vmax.f32 %v1295_v26, 0.0  ;;  %v992_v31 = vadd.f32 %v991_v28, %v822_v27  ;;  %v745_v32 = vpop.f32.mrf.mxu0 }
 0x18f   :  { %v914_v33 = vpop.f32.mrf.mxu1 }
 0x190   :  { %v1999_v3 = vpack.c.bf16 %v1359_v30, %v1358_v29  ;;  %v1259_v35 = vmul.f32 %v2135_v23, %v992_v31  ;;  %v915_v37 = vadd.f32 %v914_v33, %v745_v32 }
 0x192   :  { %2099 = vst [vmem:[%s2824_s4 + $0x70] sm:$0xff] %v1999_v3   ;;  %v1327_v36 = vadd.f32 %v2136_v63, %v1259_v35  ;;  %v1228_v43 = vmul.f32 %v2135_v23, %v915_v37 }
 0x194   :  { %v1391_v39 = vmax.f32 %v1327_v36, 0.0  ;;  %v825_v40 = vpop.f32.mrf.mxu2  ;;  %v1296_v48 = vadd.f32 %v2136_v63, %v1228_v43 }
 0x195   :  { %v994_v41 = vpop.f32.mrf.mxu3 }
 0x196   :  { %v2079_v42 = vpack.c.bf16 %v1391_v39, %v1390_v38  ;;  %v747_v44 = vpop.f32.mrf.mxu0  ;;  %v995_v46 = vadd.f32 %v994_v41, %v825_v40  ;;  %v1360_v54 = vmax.f32 %v1296_v48, 0.0 }
 0x197   :  { %v916_v45 = vpop.f32.mrf.mxu1 }
 0x198   :  { %2115 = vst [vmem:[%s2824_s4 + $0xf0] sm:$0xff] %v2079_v42   ;;  %v917_v47 = vadd.f32 %v916_v45, %v747_v44  ;;  %v1260_v50 = vmul.f32 %v2135_v23, %v995_v46 }
 0x19a   :  { %v1229_v49 = vmul.f32 %v2135_v23, %v917_v47  ;;  %v1328_v57 = vadd.f32 %v2136_v63, %v1260_v50 }
 0x19c   :  { %v1297_v51 = vadd.f32 %v2136_v63, %v1229_v49  ;;  %v827_v52 = vpop.f32.mrf.mxu2  ;;  %v1392_v61 = vmax.f32 %v1328_v57, 0.0 }
 0x19d   :  { %v996_v53 = vpop.f32.mrf.mxu3 }
 0x19e   :  { %v1361_v55 = vmax.f32 %v1297_v51, 0.0  ;;  %v997_v56 = vadd.f32 %v996_v53, %v827_v52 }
 0x1a0   :  { %v2004_v58 = vpack.c.bf16 %v1361_v55, %v1360_v54  ;;  %v1261_v59 = vmul.f32 %v2135_v23, %v997_v56 }
 0x1a2   :  { %2100 = vst [vmem:[%s2824_s4 + $0x78] sm:$0xff] %v2004_v58   ;;  %v1329_v60 = vadd.f32 %v2136_v63, %v1261_v59 }
 0x1a4   :  { %v1393_v62 = vmax.f32 %v1329_v60, 0.0 }
 0x1a6   :  { %v2084_v0 = vpack.c.bf16 %v1393_v62, %v1392_v61 }
 0x1a8   :  { %2116 = vst [vmem:[%s2824_s4 + $0xf8] sm:$0xff] %v2084_v0  }

// kernel: bottleneck_forward.5
= control target key start
LH: loop header
LB: loop body
LE: loop exit
PB: predicated region body
PF: predicated region fallthrough
CT: control target
= control target key end

     0   :  { %s3195_s0 = inlined_call_operand.vmem [shape: bf16[512,128], index: 0, kind: input, shape index: {}]   ;;  %s3196_s1 = inlined_call_operand.vmem [shape: bf16[128,256], index: 1, kind: input, shape index: {}]   ;;  %s3197_s2 = inlined_call_operand.vmem [shape: f32[1,256], index: 2, kind: input, shape index: {}]   ;;  %s3198_s3 = inlined_call_operand.vmem [shape: f32[1,256], index: 3, kind: input, shape index: {}]   ;;  %s3199_s4 = inlined_call_operand.vmem [shape: bf16[512,256], index: 4, kind: input, shape index: {}]   ;;  %s3200_s5 = inlined_call_operand.hbm [shape: f32[512,256], index: 5, kind: output, shape index: {}]  }
   0x1   :  { %v2406_v0 = vld [vmem:[%s3196_s1 + $0x70] sm:$0xf]  ;;  %v2459_v1 = vld [vmem:[%s3196_s1 + $0x74] sm:$0xf0]  ;;  %v2458_v2 = vld [vmem:[%s3196_s1 + $0x74] sm:$0xf] }
   0x2   :  { %v2407_v3 = vor.u32 %v2459_v1, %v2406_v0  ;;  %v2408_v4 = vld [vmem:[%s3196_s1 + $0x78] sm:$0xf0]  ;;  %v2398_v5 = vld [vmem:[%s3196_s1 + $0x60] sm:$0xf]  ;;  %v2457_v6 = vld [vmem:[%s3196_s1 + $0x64] sm:$0xf0] }
   0x3   :  { %v2411_v7 = vor.u32 %v2458_v2, %v2408_v4  ;;  %v2456_v8 = vld [vmem:[%s3196_s1 + $0x64] sm:$0xf]  ;;  %v2400_v9 = vld [vmem:[%s3196_s1 + $0x68] sm:$0xf0]  ;;  %v2399_v10 = vor.u32 %v2457_v6, %v2398_v5  ;;  %v2390_v12 = vld [vmem:[%s3196_s1 + $0x50] sm:$0xf] }
   0x4   :  { %633 = vmatpush.bf16.msra.mxu0 %v2407_v3  ;;  %2460 = vmatpush.bf16.msra.mxu2 %v2407_v3  ;;  %v2403_v11 = vor.u32 %v2456_v8, %v2400_v9  ;;  %v2455_v13 = vld [vmem:[%s3196_s1 + $0x54] sm:$0xf0]  ;;  %v2454_v14 = vld [vmem:[%s3196_s1 + $0x54] sm:$0xf]  ;;  %v2392_v15 = vld [vmem:[%s3196_s1 + $0x58] sm:$0xf0] }
   0x5   :  { %802 = vmatpush.bf16.msra.mxu1 %v2411_v7  ;;  %2468 = vmatpush.bf16.msra.mxu3 %v2411_v7  ;;  %v2391_v16 = vor.u32 %v2455_v13, %v2390_v12  ;;  %v2395_v17 = vor.u32 %v2454_v14, %v2392_v15  ;;  %v2382_v18 = vld [vmem:[%s3196_s1 + $0x40] sm:$0xf]  ;;  %v2453_v19 = vld [vmem:[%s3196_s1 + $0x44] sm:$0xf0]  ;;  %v2452_v20 = vld [vmem:[%s3196_s1 + $0x44] sm:$0xf] }
   0x6   :  { %v2384_v21 = vld [vmem:[%s3196_s1 + $0x48] sm:$0xf0]  ;;  %v2383_v22 = vor.u32 %v2453_v19, %v2382_v18 }
   0x8   :  { %634 = vmatpush.bf16.msra.mxu0 %v2399_v10  ;;  %2461 = vmatpush.bf16.msra.mxu2 %v2399_v10 }
   0x9   :  { %803 = vmatpush.bf16.msra.mxu1 %v2403_v11  ;;  %2469 = vmatpush.bf16.msra.mxu3 %v2403_v11 }
   0xc   :  { %635 = vmatpush.bf16.msra.mxu0 %v2391_v16  ;;  %2462 = vmatpush.bf16.msra.mxu2 %v2391_v16 }
   0xd   :  { %10 = vsyncpa [#allocation4], 0  ;;  %804 = vmatpush.bf16.msra.mxu1 %v2395_v17  ;;  %2470 = vmatpush.bf16.msra.mxu3 %v2395_v17  ;;  %v2387_v23 = vor.u32 %v2452_v20, %v2384_v21  ;;  %v2374_v24 = vld [vmem:[%s3196_s1 + $0x30] sm:$0xf]  ;;  %v2451_v25 = vld [vmem:[%s3196_s1 + $0x34] sm:$0xf0] }
   0xe   :  { %v2450_v26 = vld [vmem:[%s3196_s1 + $0x34] sm:$0xf]  ;;  %v2376_v27 = vld [vmem:[%s3196_s1 + $0x38] sm:$0xf0]  ;;  %v2375_v28 = vor.u32 %v2451_v25, %v2374_v24  ;;  %v2366_v30 = vld [vmem:[%s3196_s1 + $0x20] sm:$0xf] }
   0xf   :  { %v2379_v29 = vor.u32 %v2450_v26, %v2376_v27  ;;  %v2449_v31 = vld [vmem:[%s3196_s1 + $0x24] sm:$0xf0]  ;;  %v2448_v32 = vld [vmem:[%s3196_s1 + $0x24] sm:$0xf]  ;;  %v2368_v33 = vld [vmem:[%s3196_s1 + $0x28] sm:$0xf0] }
  0x10   :  { %636 = vmatpush.bf16.msra.mxu0 %v2383_v22  ;;  %2463 = vmatpush.bf16.msra.mxu2 %v2383_v22  ;;  %v2367_v34 = vor.u32 %v2449_v31, %v2366_v30  ;;  %v2371_v35 = vor.u32 %v2448_v32, %v2368_v33  ;;  %v2358_v36 = vld [vmem:[%s3196_s1 + $0x10] sm:$0xf]  ;;  %v2447_v37 = vld [vmem:[%s3196_s1 + $0x14] sm:$0xf0]  ;;  %v2446_v38 = vld [vmem:[%s3196_s1 + $0x14] sm:$0xf] }
  0x11   :  { %805 = vmatpush.bf16.msra.mxu1 %v2387_v23  ;;  %2471 = vmatpush.bf16.msra.mxu3 %v2387_v23  ;;  %v2360_v39 = vld [vmem:[%s3196_s1 + $0x18] sm:$0xf0]  ;;  %v2359_v40 = vor.u32 %v2447_v37, %v2358_v36  ;;  %v2350_v42 = vld [vmem:[%s3196_s1] sm:$0xf]  ;;  %v2445_v43 = vld [vmem:[%s3196_s1 + $0x4] sm:$0xf0] }
  0x12   :  { %v2363_v41 = vor.u32 %v2446_v38, %v2360_v39  ;;  %v2444_v44 = vld [vmem:[%s3196_s1 + $0x4] sm:$0xf]  ;;  %v2352_v45 = vld [vmem:[%s3196_s1 + $0x8] sm:$0xf0]  ;;  %v2351_v46 = vor.u32 %v2445_v43, %v2350_v42  ;;  %v2414_v52 = vld [vmem:[%s3195_s0 + $0x10] sm:$0xff]  ;;  %s2208_s9 = sshll.u32 %s3200_s5, 4  ;;  %s2209_s9 = int_to_ptr.hbm [resolvable:$true] %s2208_s9 }
  0x13   :  { %v2355_v47 = vor.u32 %v2444_v44, %v2352_v45  ;;  %v2412_v48 = vld [vmem:[%s3195_s0] sm:$0xff]  ;;  %v2413_v50 = vld [vmem:[%s3195_s0 + $0x8] sm:$0xff]  ;;  %v2430_v53 = vld [vmem:[%s3195_s0 + $0x90] sm:$0xff]  ;;  %s2506_s10 = smov 256   ;;  %s2507_s1 = smov 16  }
  0x14   :  { %637 = vmatpush.bf16.msra.mxu0 %v2375_v28  ;;  %2464 = vmatpush.bf16.msra.mxu2 %v2375_v28  ;;  %v2428_v49 = vld [vmem:[%s3195_s0 + $0x80] sm:$0xff]  ;;  %v2429_v51 = vld [vmem:[%s3195_s0 + $0x88] sm:$0xff]  ;;  %v2415_v54 = vld [vmem:[%s3195_s0 + $0x18] sm:$0xff] }
  0x15   :  { %806 = vmatpush.bf16.msra.mxu1 %v2379_v29  ;;  %2472 = vmatpush.bf16.msra.mxu3 %v2379_v29  ;;  %v2431_v55 = vld [vmem:[%s3195_s0 + $0x98] sm:$0xff]  ;;  %v2416_v56 = vld [vmem:[%s3195_s0 + $0x20] sm:$0xff]  ;;  %v2417_v58 = vld [vmem:[%s3195_s0 + $0x28] sm:$0xff] }
  0x16   :  { %v2432_v57 = vld [vmem:[%s3195_s0 + $0xa0] sm:$0xff]  ;;  %v2433_v59 = vld [vmem:[%s3195_s0 + $0xa8] sm:$0xff]  ;;  %v2418_v60 = vld [vmem:[%s3195_s0 + $0x30] sm:$0xff] }
  0x17   :  { %v2434_v61 = vld [vmem:[%s3195_s0 + $0xb0] sm:$0xff]  ;;  %v2419_v62 = vld [vmem:[%s3195_s0 + $0x38] sm:$0xff]  ;;  %v1358_v0 = vld [vmem:[%s3197_s2] sm:$0x3] }
  0x18   :  { %638 = vmatpush.bf16.msra.mxu0 %v2367_v34  ;;  %2465 = vmatpush.bf16.msra.mxu2 %v2367_v34  ;;  %v2435_v63 = vld [vmem:[%s3195_s0 + $0xb8] sm:$0xff]  ;;  %v1492_v1 = vld [vmem:[%s3198_s3] sm:$0x3]  ;;  %v2688_v2 = vperm.slane %v1358_v0, 0  ;;  %v2693_v4 = vperm.slane %v1358_v0, 1  ;;  %v1627_v21 = vld [vmem:[%s3199_s4 + $0x8] sm:$0xff] }
  0x19   :  { %807 = vmatpush.bf16.msra.mxu1 %v2371_v35  ;;  %2473 = vmatpush.bf16.msra.mxu3 %v2371_v35  ;;  %v1626_v3 = vld [vmem:[%s3199_s4] sm:$0xff]  ;;  %v2695_v5 = vperm.slane %v1492_v1, 0  ;;  %v2703_v9 = vperm.slane %v1492_v1, 1  ;;  %v1692_v32 = vunpack.c.l.bf16 %v1627_v21  ;;  %v1693_v36 = vunpack.c.h.bf16 %v1627_v21 }
  0x1a   :  { %v2420_v6 = vld [vmem:[%s3195_s0 + $0x40] sm:$0xff]  ;;  %v1690_v11 = vunpack.c.l.bf16 %v1626_v3  ;;  %v1691_v14 = vunpack.c.h.bf16 %v1626_v3 }
  0x1b   :  { %v2436_v7 = vld [vmem:[%s3195_s0 + $0xc0] sm:$0xff] }
  0x1c   :  { %639 = vmatpush.bf16.msra.mxu0 %v2359_v40  ;;  %2466 = vmatpush.bf16.msra.mxu2 %v2359_v40  ;;  %v1658_v17 = vld [vmem:[%s3199_s4 + $0x100] sm:$0xff] }
  0x1d   :  { %808 = vmatpush.bf16.msra.mxu1 %v2363_v41  ;;  %2474 = vmatpush.bf16.msra.mxu3 %v2363_v41  ;;  %v1754_v24 = vunpack.c.l.bf16 %v1658_v17  ;;  %v1755_v28 = vunpack.c.h.bf16 %v1658_v17  ;;  %v1659_v41 = vld [vmem:[%s3199_s4 + $0x108] sm:$0xff] }
  0x20   :  { %640 = vmatpush.bf16.msra.mxu0 %v2351_v46  ;;  %2467 = vmatpush.bf16.msra.mxu2 %v2351_v46 }
  0x21   :  { %809 = vmatpush.bf16.msra.mxu1 %v2355_v47  ;;  %2475 = vmatpush.bf16.msra.mxu3 %v2355_v47  ;;  %v1628_v47 = vld [vmem:[%s3199_s4 + $0x10] sm:$0xff] }
  0x22   :  { %v1695_v0 = vunpack.c.h.bf16 %v1628_v47 }
  0x23   :  { %641 = vmatmul.bf16.vlgmr.msra.gmra.mxu0 %v2412_v48  ;;  %721 = vmatmul.bf16.vlgmr.msra.gmra.mxu2 %v2428_v49 }
  0x24   :  { %810 = vmatmul.bf16.vlgmr.msra.gmra.mxu1 %v2412_v48  ;;  %890 = vmatmul.bf16.vlgmr.msra.gmra.mxu3 %v2428_v49 }
  0x33   :  { %646 = vmatmul.bf16.gmra.mxu0 %v2413_v50  ;;  %726 = vmatmul.bf16.gmra.mxu2 %v2429_v51 }
  0x34   :  { %815 = vmatmul.bf16.gmra.mxu1 %v2413_v50  ;;  %895 = vmatmul.bf16.gmra.mxu3 %v2429_v51  ;;  %v1756_v50 = vunpack.c.l.bf16 %v1659_v41 }
  0x43   :  { %651 = vmatmul.bf16.gmra.mxu0 %v2414_v52  ;;  %731 = vmatmul.bf16.gmra.mxu2 %v2430_v53 }
  0x44   :  { %820 = vmatmul.bf16.gmra.mxu1 %v2414_v52  ;;  %900 = vmatmul.bf16.gmra.mxu3 %v2430_v53  ;;  %v2421_v52 = vld [vmem:[%s3195_s0 + $0x48] sm:$0xff] }
  0x45   :  { %v2437_v53 = vld [vmem:[%s3195_s0 + $0xc8] sm:$0xff] }
  0x53   :  { %656 = vmatmul.bf16.gmra.mxu0 %v2415_v54  ;;  %736 = vmatmul.bf16.gmra.mxu2 %v2431_v55 }
  0x54   :  { %825 = vmatmul.bf16.gmra.mxu1 %v2415_v54  ;;  %905 = vmatmul.bf16.gmra.mxu3 %v2431_v55 }
  0x63   :  { %661 = vmatmul.bf16.gmra.mxu0 %v2416_v56  ;;  %741 = vmatmul.bf16.gmra.mxu2 %v2432_v57 }
  0x64   :  { %830 = vmatmul.bf16.gmra.mxu1 %v2416_v56  ;;  %910 = vmatmul.bf16.gmra.mxu3 %v2432_v57  ;;  %v1757_v56 = vunpack.c.h.bf16 %v1659_v41  ;;  %v1630_v41 = vld [vmem:[%s3199_s4 + $0x20] sm:$0xff] }
  0x73   :  { %666 = vmatmul.bf16.gmra.mxu0 %v2417_v58  ;;  %746 = vmatmul.bf16.gmra.mxu2 %v2433_v59 }
  0x74   :  { %835 = vmatmul.bf16.gmra.mxu1 %v2417_v58  ;;  %915 = vmatmul.bf16.gmra.mxu3 %v2433_v59 }
  0x83   :  { %671 = vmatmul.bf16.gmra.mxu0 %v2418_v60  ;;  %751 = vmatmul.bf16.gmra.mxu2 %v2434_v61 }
  0x84   :  { %840 = vmatmul.bf16.gmra.mxu1 %v2418_v60  ;;  %920 = vmatmul.bf16.gmra.mxu3 %v2434_v61  ;;  %v1694_v60 = vunpack.c.l.bf16 %v1628_v47  ;;  %v2438_v47 = vld [vmem:[%s3195_s0 + $0xd0] sm:$0xff] }
  0x93   :  { %676 = vmatmul.bf16.gmra.mxu0 %v2419_v62  ;;  %756 = vmatmul.bf16.gmra.mxu2 %v2435_v63 }
  0x94   :  { %845 = vmatmul.bf16.gmra.mxu1 %v2419_v62  ;;  %925 = vmatmul.bf16.gmra.mxu3 %v2435_v63 }
  0xa0   :  { %v642_v8 = vpop.f32.mrf.mxu0 }
  0xa1   :  { %v1364_v10 = vmul.f32 %v2688_v2, %v642_v8  ;;  %v811_v12 = vpop.f32.mrf.mxu1  ;;  %v1660_v8 = vld [vmem:[%s3199_s4 + $0x110] sm:$0xff] }
  0xa2   :  { %v1365_v13 = vmul.f32 %v2693_v4, %v811_v12 }
  0xa3   :  { %v1498_v15 = vadd.f32 %v2695_v5, %v1364_v10  ;;  %681 = vmatmul.bf16.gmra.mxu0 %v2420_v6  ;;  %761 = vmatmul.bf16.gmra.mxu2 %v2436_v7 }
  0xa4   :  { %v1499_v16 = vadd.f32 %v2703_v9, %v1365_v13  ;;  %850 = vmatmul.bf16.gmra.mxu1 %v2420_v6  ;;  %930 = vmatmul.bf16.gmra.mxu3 %v2436_v7 }
  0xa5   :  { %v1818_v18 = vadd.f32 %v1690_v11, %v1498_v15  ;;  %v1629_v15 = vld [vmem:[%s3199_s4 + $0x18] sm:$0xff] }
  0xa6   :  { %v1819_v19 = vadd.f32 %v1691_v14, %v1499_v16  ;;  %v722_v20 = vpop.f32.mrf.mxu2 }
  0xa7   :  { %v1946_v22 = vmax.f32 %v1818_v18, 0.0  ;;  %v1428_v23 = vmul.f32 %v2688_v2, %v722_v20  ;;  %v891_v25 = vpop.f32.mrf.mxu3  ;;  %v1758_v18 = vunpack.c.l.bf16 %v1660_v8 }
  0xa8   :  { %v1947_v26 = vmax.f32 %v1819_v19, 0.0  ;;  %v1429_v27 = vmul.f32 %v2693_v4, %v891_v25  ;;  %v644_v29 = vpop.f32.mrf.mxu0 }
  0xa9   :  { %2074 = vst [vmem:[#allocation3] sm:$0xff] %v1946_v22  ;;  %v1562_v30 = vadd.f32 %v2695_v5, %v1428_v23  ;;  %v1366_v31 = vmul.f32 %v2688_v2, %v644_v29  ;;  %v813_v33 = vpop.f32.mrf.mxu1  ;;  %v1759_v22 = vunpack.c.h.bf16 %v1660_v8  ;;  %v1631_v8 = vld [vmem:[%s3199_s4 + $0x28] sm:$0xff] }
  0xaa   :  { %2075 = vst [vmem:[#allocation3 + $0x8] sm:$0xff] %v1947_v26  ;;  %v1563_v34 = vadd.f32 %v2703_v9, %v1429_v27  ;;  %v1367_v35 = vmul.f32 %v2693_v4, %v813_v33  ;;  %v1696_v26 = vunpack.c.l.bf16 %v1629_v15 }
  0xab   :  { %v1882_v37 = vadd.f32 %v1754_v24, %v1562_v30  ;;  %v1500_v38 = vadd.f32 %v2695_v5, %v1366_v31  ;;  %v1697_v30 = vunpack.c.h.bf16 %v1629_v15 }
  0xac   :  { %v1883_v39 = vadd.f32 %v1755_v28, %v1563_v34  ;;  %v1501_v40 = vadd.f32 %v2703_v9, %v1367_v35  ;;  %v1661_v35 = vld [vmem:[%s3199_s4 + $0x118] sm:$0xff] }
  0xad   :  { %v2010_v42 = vmax.f32 %v1882_v37, 0.0  ;;  %v1820_v43 = vadd.f32 %v1692_v32, %v1500_v38 }
  0xae   :  { %v2011_v44 = vmax.f32 %v1883_v39, 0.0  ;;  %v1821_v45 = vadd.f32 %v1693_v36, %v1501_v40  ;;  %v724_v46 = vpop.f32.mrf.mxu2 }
  0xaf   :  { %2138 = vst [vmem:[#allocation3 + $0x200] sm:$0xff] %v2010_v42  ;;  %v1948_v48 = vmax.f32 %v1820_v43, 0.0  ;;  %v1430_v49 = vmul.f32 %v2688_v2, %v724_v46  ;;  %v893_v51 = vpop.f32.mrf.mxu3  ;;  %v2422_v46 = vld [vmem:[%s3195_s0 + $0x50] sm:$0xff] }
  0xb0   :  { %2139 = vst [vmem:[#allocation3 + $0x208] sm:$0xff] %v2011_v44  ;;  %v1949_v54 = vmax.f32 %v1821_v45, 0.0  ;;  %v1431_v55 = vmul.f32 %v2693_v4, %v893_v51  ;;  %v647_v57 = vpop.f32.mrf.mxu0  ;;  %v1760_v44 = vunpack.c.l.bf16 %v1661_v35 }
  0xb1   :  { %2076 = vst [vmem:[#allocation3 + $0x10] sm:$0xff] %v1948_v48  ;;  %v1564_v58 = vadd.f32 %v2695_v5, %v1430_v49  ;;  %v1368_v59 = vmul.f32 %v2688_v2, %v647_v57  ;;  %v816_v61 = vpop.f32.mrf.mxu1 }
  0xb2   :  { %2077 = vst [vmem:[#allocation3 + $0x18] sm:$0xff] %v1949_v54  ;;  %v1565_v62 = vadd.f32 %v2703_v9, %v1431_v55  ;;  %v1369_v63 = vmul.f32 %v2693_v4, %v816_v61  ;;  %v1698_v54 = vunpack.c.l.bf16 %v1630_v41 }
  0xb3   :  { %v1884_v1 = vadd.f32 %v1756_v50, %v1564_v58  ;;  %v1502_v3 = vadd.f32 %v2695_v5, %v1368_v59  ;;  %686 = vmatmul.bf16.gmra.mxu0 %v2421_v52  ;;  %766 = vmatmul.bf16.gmra.mxu2 %v2437_v53  ;;  %v1761_v50 = vunpack.c.h.bf16 %v1661_v35  ;;  %v1699_v58 = vunpack.c.h.bf16 %v1630_v41  ;;  %v1632_v35 = vld [vmem:[%s3199_s4 + $0x30] sm:$0xff]  ;;  %v2439_v41 = vld [vmem:[%s3195_s0 + $0xd8] sm:$0xff] }
  0xb4   :  { %v1885_v6 = vadd.f32 %v1757_v56, %v1565_v62  ;;  %v1503_v7 = vadd.f32 %v2703_v9, %v1369_v63  ;;  %855 = vmatmul.bf16.gmra.mxu1 %v2421_v52  ;;  %935 = vmatmul.bf16.gmra.mxu3 %v2437_v53  ;;  %v1662_v63 = vld [vmem:[%s3199_s4 + $0x120] sm:$0xff] }
  0xb5   :  { %v2012_v10 = vmax.f32 %v1884_v1, 0.0  ;;  %v1822_v11 = vadd.f32 %v1694_v60, %v1502_v3 }
  0xb6   :  { %v2013_v12 = vmax.f32 %v1885_v6, 0.0  ;;  %v1823_v13 = vadd.f32 %v1695_v0, %v1503_v7  ;;  %v727_v14 = vpop.f32.mrf.mxu2 }
  0xb7   :  { %2140 = vst [vmem:[#allocation3 + $0x210] sm:$0xff] %v2012_v10  ;;  %v1950_v16 = vmax.f32 %v1822_v11, 0.0  ;;  %v1432_v17 = vmul.f32 %v2688_v2, %v727_v14  ;;  %v896_v19 = vpop.f32.mrf.mxu3 }
  0xb8   :  { %2141 = vst [vmem:[#allocation3 + $0x218] sm:$0xff] %v2013_v12  ;;  %v1951_v20 = vmax.f32 %v1823_v13, 0.0  ;;  %v1433_v21 = vmul.f32 %v2693_v4, %v896_v19  ;;  %v649_v23 = vpop.f32.mrf.mxu0  ;;  %v1762_v12 = vunpack.c.l.bf16 %v1662_v63 }
  0xb9   :  { %2078 = vst [vmem:[#allocation3 + $0x20] sm:$0xff] %v1950_v16  ;;  %v1566_v24 = vadd.f32 %v2695_v5, %v1432_v17  ;;  %v1370_v25 = vmul.f32 %v2688_v2, %v649_v23  ;;  %v818_v27 = vpop.f32.mrf.mxu1  ;;  %v1763_v16 = vunpack.c.h.bf16 %v1662_v63  ;;  %v1633_v63 = vld [vmem:[%s3199_s4 + $0x38] sm:$0xff] }
  0xba   :  { %2079 = vst [vmem:[#allocation3 + $0x28] sm:$0xff] %v1951_v20  ;;  %v1567_v28 = vadd.f32 %v2703_v9, %v1433_v21  ;;  %v1371_v29 = vmul.f32 %v2693_v4, %v818_v27  ;;  %v1700_v20 = vunpack.c.l.bf16 %v1631_v8 }
  0xbb   :  { %v1886_v31 = vadd.f32 %v1758_v18, %v1566_v24  ;;  %v1504_v32 = vadd.f32 %v2695_v5, %v1370_v25  ;;  %v1701_v24 = vunpack.c.h.bf16 %v1631_v8 }
  0xbc   :  { %v1887_v33 = vadd.f32 %v1759_v22, %v1567_v28  ;;  %v1505_v34 = vadd.f32 %v2703_v9, %v1371_v29  ;;  %v1663_v29 = vld [vmem:[%s3199_s4 + $0x128] sm:$0xff] }
  0xbd   :  { %v2014_v36 = vmax.f32 %v1886_v31, 0.0  ;;  %v1824_v37 = vadd.f32 %v1696_v26, %v1504_v32 }
  0xbe   :  { %v2015_v38 = vmax.f32 %v1887_v33, 0.0  ;;  %v1825_v39 = vadd.f32 %v1697_v30, %v1505_v34  ;;  %v729_v40 = vpop.f32.mrf.mxu2 }
  0xbf   :  { %2142 = vst [vmem:[#allocation3 + $0x220] sm:$0xff] %v2014_v36  ;;  %v1952_v42 = vmax.f32 %v1824_v37, 0.0  ;;  %v1434_v43 = vmul.f32 %v2688_v2, %v729_v40  ;;  %v898_v45 = vpop.f32.mrf.mxu3  ;;  %v2423_v40 = vld [vmem:[%s3195_s0 + $0x58] sm:$0xff] }
  0xc0   :  { %2143 = vst [vmem:[#allocation3 + $0x228] sm:$0xff] %v2015_v38  ;;  %v1953_v48 = vmax.f32 %v1825_v39, 0.0  ;;  %v1435_v49 = vmul.f32 %v2693_v4, %v898_v45  ;;  %v652_v51 = vpop.f32.mrf.mxu0  ;;  %v1764_v38 = vunpack.c.l.bf16 %v1663_v29 }
  0xc1   :  { %2080 = vst [vmem:[#allocation3 + $0x30] sm:$0xff] %v1952_v42  ;;  %v1568_v52 = vadd.f32 %v2695_v5, %v1434_v43  ;;  %v1372_v53 = vmul.f32 %v2688_v2, %v652_v51  ;;  %v821_v55 = vpop.f32.mrf.mxu1 }
  0xc2   :  { %2081 = vst [vmem:[#allocation3 + $0x38] sm:$0xff] %v1953_v48  ;;  %v1569_v56 = vadd.f32 %v2703_v9, %v1435_v49  ;;  %v1373_v57 = vmul.f32 %v2693_v4, %v821_v55  ;;  %v1702_v48 = vunpack.c.l.bf16 %v1632_v35 }
  0xc3   :  { %v1888_v59 = vadd.f32 %v1760_v44, %v1568_v52  ;;  %v1506_v60 = vadd.f32 %v2695_v5, %v1372_v53  ;;  %691 = vmatmul.bf16.gmra.mxu0 %v2422_v46  ;;  %771 = vmatmul.bf16.gmra.mxu2 %v2438_v47  ;;  %v1765_v44 = vunpack.c.h.bf16 %v1663_v29  ;;  %v1703_v52 = vunpack.c.h.bf16 %v1632_v35  ;;  %v1634_v29 = vld [vmem:[%s3199_s4 + $0x40] sm:$0xff] }
  0xc4   :  { %v1889_v61 = vadd.f32 %v1761_v50, %v1569_v56  ;;  %v1507_v62 = vadd.f32 %v2703_v9, %v1373_v57  ;;  %860 = vmatmul.bf16.gmra.mxu1 %v2422_v46  ;;  %940 = vmatmul.bf16.gmra.mxu3 %v2438_v47  ;;  %v1664_v57 = vld [vmem:[%s3199_s4 + $0x130] sm:$0xff]  ;;  %v2440_v35 = vld [vmem:[%s3195_s0 + $0xe0] sm:$0xff] }
  0xc5   :  { %v2016_v0 = vmax.f32 %v1888_v59, 0.0  ;;  %v1826_v1 = vadd.f32 %v1698_v54, %v1506_v60 }
  0xc6   :  { %v2017_v3 = vmax.f32 %v1889_v61, 0.0  ;;  %v1827_v6 = vadd.f32 %v1699_v58, %v1507_v62  ;;  %v732_v7 = vpop.f32.mrf.mxu2 }
  0xc7   :  { %2144 = vst [vmem:[#allocation3 + $0x230] sm:$0xff] %v2016_v0  ;;  %v1954_v10 = vmax.f32 %v1826_v1, 0.0  ;;  %v1436_v11 = vmul.f32 %v2688_v2, %v732_v7  ;;  %v901_v13 = vpop.f32.mrf.mxu3 }
  0xc8   :  { %2145 = vst [vmem:[#allocation3 + $0x238] sm:$0xff] %v2017_v3  ;;  %v1955_v14 = vmax.f32 %v1827_v6, 0.0  ;;  %v1437_v15 = vmul.f32 %v2693_v4, %v901_v13  ;;  %v654_v17 = vpop.f32.mrf.mxu0  ;;  %v1766_v3 = vunpack.c.l.bf16 %v1664_v57 }
  0xc9   :  { %2082 = vst [vmem:[#allocation3 + $0x40] sm:$0xff] %v1954_v10  ;;  %v1570_v18 = vadd.f32 %v2695_v5, %v1436_v11  ;;  %v1374_v19 = vmul.f32 %v2688_v2, %v654_v17  ;;  %v823_v21 = vpop.f32.mrf.mxu1  ;;  %v1767_v10 = vunpack.c.h.bf16 %v1664_v57  ;;  %v1635_v57 = vld [vmem:[%s3199_s4 + $0x48] sm:$0xff] }
  0xca   :  { %2083 = vst [vmem:[#allocation3 + $0x48] sm:$0xff] %v1955_v14  ;;  %v1571_v22 = vadd.f32 %v2703_v9, %v1437_v15  ;;  %v1375_v23 = vmul.f32 %v2693_v4, %v823_v21  ;;  %v1704_v14 = vunpack.c.l.bf16 %v1633_v63 }
  0xcb   :  { %v1890_v25 = vadd.f32 %v1762_v12, %v1570_v18  ;;  %v1508_v26 = vadd.f32 %v2695_v5, %v1374_v19  ;;  %v1705_v18 = vunpack.c.h.bf16 %v1633_v63 }
  0xcc   :  { %v1891_v27 = vadd.f32 %v1763_v16, %v1571_v22  ;;  %v1509_v28 = vadd.f32 %v2703_v9, %v1375_v23  ;;  %v1665_v23 = vld [vmem:[%s3199_s4 + $0x138] sm:$0xff] }
  0xcd   :  { %v2018_v30 = vmax.f32 %v1890_v25, 0.0  ;;  %v1828_v31 = vadd.f32 %v1700_v20, %v1508_v26 }
  0xce   :  { %v2019_v32 = vmax.f32 %v1891_v27, 0.0  ;;  %v1829_v33 = vadd.f32 %v1701_v24, %v1509_v28  ;;  %v734_v34 = vpop.f32.mrf.mxu2 }
  0xcf   :  { %2146 = vst [vmem:[#allocation3 + $0x240] sm:$0xff] %v2018_v30  ;;  %v1956_v36 = vmax.f32 %v1828_v31, 0.0  ;;  %v1438_v37 = vmul.f32 %v2688_v2, %v734_v34  ;;  %v903_v39 = vpop.f32.mrf.mxu3  ;;  %v2424_v34 = vld [vmem:[%s3195_s0 + $0x60] sm:$0xff] }
  0xd0   :  { %2147 = vst [vmem:[#allocation3 + $0x248] sm:$0xff] %v2019_v32  ;;  %v1957_v42 = vmax.f32 %v1829_v33, 0.0  ;;  %v1439_v43 = vmul.f32 %v2693_v4, %v903_v39  ;;  %v657_v45 = vpop.f32.mrf.mxu0  ;;  %v1768_v32 = vunpack.c.l.bf16 %v1665_v23 }
  0xd1   :  { %2084 = vst [vmem:[#allocation3 + $0x50] sm:$0xff] %v1956_v36  ;;  %v1572_v46 = vadd.f32 %v2695_v5, %v1438_v37  ;;  %v1376_v47 = vmul.f32 %v2688_v2, %v657_v45  ;;  %v826_v49 = vpop.f32.mrf.mxu1 }
  0xd2   :  { %2085 = vst [vmem:[#allocation3 + $0x58] sm:$0xff] %v1957_v42  ;;  %v1573_v50 = vadd.f32 %v2703_v9, %v1439_v43  ;;  %v1377_v51 = vmul.f32 %v2693_v4, %v826_v49  ;;  %v1706_v42 = vunpack.c.l.bf16 %v1634_v29 }
  0xd3   :  { %v1892_v53 = vadd.f32 %v1764_v38, %v1572_v46  ;;  %v1510_v54 = vadd.f32 %v2695_v5, %v1376_v47  ;;  %696 = vmatmul.bf16.gmra.mxu0 %v2423_v40  ;;  %776 = vmatmul.bf16.gmra.mxu2 %v2439_v41  ;;  %v1769_v38 = vunpack.c.h.bf16 %v1665_v23  ;;  %v1707_v46 = vunpack.c.h.bf16 %v1634_v29  ;;  %v1636_v23 = vld [vmem:[%s3199_s4 + $0x50] sm:$0xff]  ;;  %v2441_v29 = vld [vmem:[%s3195_s0 + $0xe8] sm:$0xff] }
  0xd4   :  { %v1893_v55 = vadd.f32 %v1765_v44, %v1573_v50  ;;  %v1511_v56 = vadd.f32 %v2703_v9, %v1377_v51  ;;  %865 = vmatmul.bf16.gmra.mxu1 %v2423_v40  ;;  %945 = vmatmul.bf16.gmra.mxu3 %v2439_v41  ;;  %v1666_v51 = vld [vmem:[%s3199_s4 + $0x140] sm:$0xff] }
  0xd5   :  { %v2020_v58 = vmax.f32 %v1892_v53, 0.0  ;;  %v1830_v59 = vadd.f32 %v1702_v48, %v1510_v54 }
  0xd6   :  { %v2021_v60 = vmax.f32 %v1893_v55, 0.0  ;;  %v1831_v61 = vadd.f32 %v1703_v52, %v1511_v56  ;;  %v737_v62 = vpop.f32.mrf.mxu2 }
  0xd7   :  { %2148 = vst [vmem:[#allocation3 + $0x250] sm:$0xff] %v2020_v58  ;;  %v1958_v0 = vmax.f32 %v1830_v59, 0.0  ;;  %v1440_v1 = vmul.f32 %v2688_v2, %v737_v62  ;;  %v906_v6 = vpop.f32.mrf.mxu3 }
  0xd8   :  { %2149 = vst [vmem:[#allocation3 + $0x258] sm:$0xff] %v2021_v60  ;;  %v1959_v7 = vmax.f32 %v1831_v61, 0.0  ;;  %v1441_v8 = vmul.f32 %v2693_v4, %v906_v6  ;;  %v659_v11 = vpop.f32.mrf.mxu0  ;;  %v1770_v60 = vunpack.c.l.bf16 %v1666_v51 }
  0xd9   :  { %2086 = vst [vmem:[#allocation3 + $0x60] sm:$0xff] %v1958_v0  ;;  %v1574_v12 = vadd.f32 %v2695_v5, %v1440_v1  ;;  %v1378_v13 = vmul.f32 %v2688_v2, %v659_v11  ;;  %v828_v15 = vpop.f32.mrf.mxu1  ;;  %v1771_v0 = vunpack.c.h.bf16 %v1666_v51  ;;  %v1637_v51 = vld [vmem:[%s3199_s4 + $0x58] sm:$0xff] }
  0xda   :  { %2087 = vst [vmem:[#allocation3 + $0x68] sm:$0xff] %v1959_v7  ;;  %v1575_v16 = vadd.f32 %v2703_v9, %v1441_v8  ;;  %v1379_v17 = vmul.f32 %v2693_v4, %v828_v15  ;;  %v1708_v7 = vunpack.c.l.bf16 %v1635_v57 }
  0xdb   :  { %v1894_v19 = vadd.f32 %v1766_v3, %v1574_v12  ;;  %v1512_v20 = vadd.f32 %v2695_v5, %v1378_v13  ;;  %v1709_v12 = vunpack.c.h.bf16 %v1635_v57 }
  0xdc   :  { %v1895_v21 = vadd.f32 %v1767_v10, %v1575_v16  ;;  %v1513_v22 = vadd.f32 %v2703_v9, %v1379_v17  ;;  %v1667_v17 = vld [vmem:[%s3199_s4 + $0x148] sm:$0xff] }
  0xdd   :  { %v2022_v24 = vmax.f32 %v1894_v19, 0.0  ;;  %v1832_v25 = vadd.f32 %v1704_v14, %v1512_v20 }
  0xde   :  { %v2023_v26 = vmax.f32 %v1895_v21, 0.0  ;;  %v1833_v27 = vadd.f32 %v1705_v18, %v1513_v22  ;;  %v739_v28 = vpop.f32.mrf.mxu2 }
  0xdf   :  { %2150 = vst [vmem:[#allocation3 + $0x260] sm:$0xff] %v2022_v24  ;;  %v1960_v30 = vmax.f32 %v1832_v25, 0.0  ;;  %v1442_v31 = vmul.f32 %v2688_v2, %v739_v28  ;;  %v908_v33 = vpop.f32.mrf.mxu3  ;;  %v2425_v28 = vld [vmem:[%s3195_s0 + $0x68] sm:$0xff] }
  0xe0   :  { %2151 = vst [vmem:[#allocation3 + $0x268] sm:$0xff] %v2023_v26  ;;  %v1961_v36 = vmax.f32 %v1833_v27, 0.0  ;;  %v1443_v37 = vmul.f32 %v2693_v4, %v908_v33  ;;  %v662_v39 = vpop.f32.mrf.mxu0  ;;  %v1772_v26 = vunpack.c.l.bf16 %v1667_v17 }
  0xe1   :  { %2088 = vst [vmem:[#allocation3 + $0x70] sm:$0xff] %v1960_v30  ;;  %v1576_v40 = vadd.f32 %v2695_v5, %v1442_v31  ;;  %v1380_v41 = vmul.f32 %v2688_v2, %v662_v39  ;;  %v831_v43 = vpop.f32.mrf.mxu1 }
  0xe2   :  { %2089 = vst [vmem:[#allocation3 + $0x78] sm:$0xff] %v1961_v36  ;;  %v1577_v44 = vadd.f32 %v2703_v9, %v1443_v37  ;;  %v1381_v45 = vmul.f32 %v2693_v4, %v831_v43  ;;  %v1710_v36 = vunpack.c.l.bf16 %v1636_v23 }
  0xe3   :  { %v1896_v47 = vadd.f32 %v1768_v32, %v1576_v40  ;;  %v1514_v48 = vadd.f32 %v2695_v5, %v1380_v41  ;;  %701 = vmatmul.bf16.gmra.mxu0 %v2424_v34  ;;  %781 = vmatmul.bf16.gmra.mxu2 %v2440_v35  ;;  %v1773_v32 = vunpack.c.h.bf16 %v1667_v17  ;;  %v1711_v40 = vunpack.c.h.bf16 %v1636_v23  ;;  %v1638_v17 = vld [vmem:[%s3199_s4 + $0x60] sm:$0xff]  ;;  %v2442_v23 = vld [vmem:[%s3195_s0 + $0xf0] sm:$0xff] }
  0xe4   :  { %v1897_v49 = vadd.f32 %v1769_v38, %v1577_v44  ;;  %v1515_v50 = vadd.f32 %v2703_v9, %v1381_v45  ;;  %870 = vmatmul.bf16.gmra.mxu1 %v2424_v34  ;;  %950 = vmatmul.bf16.gmra.mxu3 %v2440_v35  ;;  %v1668_v45 = vld [vmem:[%s3199_s4 + $0x150] sm:$0xff] }
  0xe5   :  { %v2024_v52 = vmax.f32 %v1896_v47, 0.0  ;;  %v1834_v53 = vadd.f32 %v1706_v42, %v1514_v48 }
  0xe6   :  { %v2025_v54 = vmax.f32 %v1897_v49, 0.0  ;;  %v1835_v55 = vadd.f32 %v1707_v46, %v1515_v50  ;;  %v742_v56 = vpop.f32.mrf.mxu2 }
  0xe7   :  { %2152 = vst [vmem:[#allocation3 + $0x270] sm:$0xff] %v2024_v52  ;;  %v1962_v58 = vmax.f32 %v1834_v53, 0.0  ;;  %v1444_v59 = vmul.f32 %v2688_v2, %v742_v56  ;;  %v911_v61 = vpop.f32.mrf.mxu3 }
  0xe8   :  { %2153 = vst [vmem:[#allocation3 + $0x278] sm:$0xff] %v2025_v54  ;;  %v1963_v62 = vmax.f32 %v1835_v55, 0.0  ;;  %v1445_v63 = vmul.f32 %v2693_v4, %v911_v61  ;;  %v664_v1 = vpop.f32.mrf.mxu0  ;;  %v1774_v54 = vunpack.c.l.bf16 %v1668_v45 }
  0xe9   :  { %2090 = vst [vmem:[#allocation3 + $0x80] sm:$0xff] %v1962_v58  ;;  %v1578_v3 = vadd.f32 %v2695_v5, %v1444_v59  ;;  %v1382_v6 = vmul.f32 %v2688_v2, %v664_v1  ;;  %v833_v8 = vpop.f32.mrf.mxu1  ;;  %v1775_v58 = vunpack.c.h.bf16 %v1668_v45  ;;  %v1639_v45 = vld [vmem:[%s3199_s4 + $0x68] sm:$0xff] }
  0xea   :  { %2091 = vst [vmem:[#allocation3 + $0x88] sm:$0xff] %v1963_v62  ;;  %v1579_v10 = vadd.f32 %v2703_v9, %v1445_v63  ;;  %v1383_v11 = vmul.f32 %v2693_v4, %v833_v8  ;;  %v1712_v62 = vunpack.c.l.bf16 %v1637_v51 }
  0xeb   :  { %v1898_v13 = vadd.f32 %v1770_v60, %v1578_v3  ;;  %v1516_v14 = vadd.f32 %v2695_v5, %v1382_v6  ;;  %v1713_v3 = vunpack.c.h.bf16 %v1637_v51 }
  0xec   :  { %v1899_v15 = vadd.f32 %v1771_v0, %v1579_v10  ;;  %v1517_v16 = vadd.f32 %v2703_v9, %v1383_v11  ;;  %v1669_v11 = vld [vmem:[%s3199_s4 + $0x158] sm:$0xff] }
  0xed   :  { %v2026_v18 = vmax.f32 %v1898_v13, 0.0  ;;  %v1836_v19 = vadd.f32 %v1708_v7, %v1516_v14 }
  0xee   :  { %v2027_v20 = vmax.f32 %v1899_v15, 0.0  ;;  %v1837_v21 = vadd.f32 %v1709_v12, %v1517_v16  ;;  %v744_v22 = vpop.f32.mrf.mxu2 }
  0xef   :  { %2154 = vst [vmem:[#allocation3 + $0x280] sm:$0xff] %v2026_v18  ;;  %v1964_v24 = vmax.f32 %v1836_v19, 0.0  ;;  %v1446_v25 = vmul.f32 %v2688_v2, %v744_v22  ;;  %v913_v27 = vpop.f32.mrf.mxu3  ;;  %v2426_v22 = vld [vmem:[%s3195_s0 + $0x70] sm:$0xff] }
  0xf0   :  { %2155 = vst [vmem:[#allocation3 + $0x288] sm:$0xff] %v2027_v20  ;;  %v1965_v30 = vmax.f32 %v1837_v21, 0.0  ;;  %v1447_v31 = vmul.f32 %v2693_v4, %v913_v27  ;;  %v667_v33 = vpop.f32.mrf.mxu0  ;;  %v1776_v20 = vunpack.c.l.bf16 %v1669_v11 }
  0xf1   :  { %2092 = vst [vmem:[#allocation3 + $0x90] sm:$0xff] %v1964_v24  ;;  %v1580_v34 = vadd.f32 %v2695_v5, %v1446_v25  ;;  %v1384_v35 = vmul.f32 %v2688_v2, %v667_v33  ;;  %v836_v37 = vpop.f32.mrf.mxu1 }
  0xf2   :  { %2093 = vst [vmem:[#allocation3 + $0x98] sm:$0xff] %v1965_v30  ;;  %v1581_v38 = vadd.f32 %v2703_v9, %v1447_v31  ;;  %v1385_v39 = vmul.f32 %v2693_v4, %v836_v37  ;;  %v1714_v30 = vunpack.c.l.bf16 %v1638_v17 }
  0xf3   :  { %v1900_v41 = vadd.f32 %v1772_v26, %v1580_v34  ;;  %v1518_v42 = vadd.f32 %v2695_v5, %v1384_v35  ;;  %706 = vmatmul.bf16.gmra.mxu0 %v2425_v28  ;;  %786 = vmatmul.bf16.gmra.mxu2 %v2441_v29  ;;  %v1777_v26 = vunpack.c.h.bf16 %v1669_v11  ;;  %v1715_v34 = vunpack.c.h.bf16 %v1638_v17  ;;  %v1640_v11 = vld [vmem:[%s3199_s4 + $0x70] sm:$0xff]  ;;  %v2443_v17 = vld [vmem:[%s3195_s0 + $0xf8] sm:$0xff] }
  0xf4   :  { %v1901_v43 = vadd.f32 %v1773_v32, %v1581_v38  ;;  %v1519_v44 = vadd.f32 %v2703_v9, %v1385_v39  ;;  %875 = vmatmul.bf16.gmra.mxu1 %v2425_v28  ;;  %955 = vmatmul.bf16.gmra.mxu3 %v2441_v29  ;;  %v1670_v39 = vld [vmem:[%s3199_s4 + $0x160] sm:$0xff] }
  0xf5   :  { %v2028_v46 = vmax.f32 %v1900_v41, 0.0  ;;  %v1838_v47 = vadd.f32 %v1710_v36, %v1518_v42 }
  0xf6   :  { %v2029_v48 = vmax.f32 %v1901_v43, 0.0  ;;  %v1839_v49 = vadd.f32 %v1711_v40, %v1519_v44  ;;  %v747_v50 = vpop.f32.mrf.mxu2 }
  0xf7   :  { %2156 = vst [vmem:[#allocation3 + $0x290] sm:$0xff] %v2028_v46  ;;  %v1966_v52 = vmax.f32 %v1838_v47, 0.0  ;;  %v1448_v53 = vmul.f32 %v2688_v2, %v747_v50  ;;  %v916_v55 = vpop.f32.mrf.mxu3 }
  0xf8   :  { %2157 = vst [vmem:[#allocation3 + $0x298] sm:$0xff] %v2029_v48  ;;  %v1967_v56 = vmax.f32 %v1839_v49, 0.0  ;;  %v1449_v57 = vmul.f32 %v2693_v4, %v916_v55  ;;  %v669_v59 = vpop.f32.mrf.mxu0  ;;  %v1778_v48 = vunpack.c.l.bf16 %v1670_v39 }
  0xf9   :  { %2094 = vst [vmem:[#allocation3 + $0xa0] sm:$0xff] %v1966_v52  ;;  %v1582_v60 = vadd.f32 %v2695_v5, %v1448_v53  ;;  %v1386_v61 = vmul.f32 %v2688_v2, %v669_v59  ;;  %v838_v63 = vpop.f32.mrf.mxu1  ;;  %v1779_v52 = vunpack.c.h.bf16 %v1670_v39  ;;  %v1641_v39 = vld [vmem:[%s3199_s4 + $0x78] sm:$0xff] }
  0xfa   :  { %2095 = vst [vmem:[#allocation3 + $0xa8] sm:$0xff] %v1967_v56  ;;  %v1583_v0 = vadd.f32 %v2703_v9, %v1449_v57  ;;  %v1387_v1 = vmul.f32 %v2693_v4, %v838_v63  ;;  %v1716_v56 = vunpack.c.l.bf16 %v1639_v45 }
  0xfb   :  { %v1902_v6 = vadd.f32 %v1774_v54, %v1582_v60  ;;  %v1520_v7 = vadd.f32 %v2695_v5, %v1386_v61  ;;  %v1717_v60 = vunpack.c.h.bf16 %v1639_v45 }
  0xfc   :  { %v1903_v8 = vadd.f32 %v1775_v58, %v1583_v0  ;;  %v1521_v10 = vadd.f32 %v2703_v9, %v1387_v1  ;;  %v1671_v1 = vld [vmem:[%s3199_s4 + $0x168] sm:$0xff] }
  0xfd   :  { %v2030_v12 = vmax.f32 %v1902_v6, 0.0  ;;  %v1840_v13 = vadd.f32 %v1712_v62, %v1520_v7 }
  0xfe   :  { %v2031_v14 = vmax.f32 %v1903_v8, 0.0  ;;  %v1841_v15 = vadd.f32 %v1713_v3, %v1521_v10  ;;  %v749_v16 = vpop.f32.mrf.mxu2 }
  0xff   :  { %2158 = vst [vmem:[#allocation3 + $0x2a0] sm:$0xff] %v2030_v12  ;;  %v1968_v18 = vmax.f32 %v1840_v13, 0.0  ;;  %v1450_v19 = vmul.f32 %v2688_v2, %v749_v16  ;;  %v918_v21 = vpop.f32.mrf.mxu3  ;;  %v2427_v16 = vld [vmem:[%s3195_s0 + $0x78] sm:$0xff] }
 0x100   :  { %2159 = vst [vmem:[#allocation3 + $0x2a8] sm:$0xff] %v2031_v14  ;;  %v1969_v24 = vmax.f32 %v1841_v15, 0.0  ;;  %v1451_v25 = vmul.f32 %v2693_v4, %v918_v21  ;;  %v672_v27 = vpop.f32.mrf.mxu0  ;;  %v1780_v14 = vunpack.c.l.bf16 %v1671_v1 }
 0x101   :  { %2096 = vst [vmem:[#allocation3 + $0xb0] sm:$0xff] %v1968_v18  ;;  %v1584_v28 = vadd.f32 %v2695_v5, %v1450_v19  ;;  %v1388_v29 = vmul.f32 %v2688_v2, %v672_v27  ;;  %v841_v31 = vpop.f32.mrf.mxu1 }
 0x102   :  { %2097 = vst [vmem:[#allocation3 + $0xb8] sm:$0xff] %v1969_v24  ;;  %v1585_v32 = vadd.f32 %v2703_v9, %v1451_v25  ;;  %v1389_v33 = vmul.f32 %v2693_v4, %v841_v31  ;;  %v1718_v24 = vunpack.c.l.bf16 %v1640_v11 }
 0x103   :  { %v1904_v35 = vadd.f32 %v1776_v20, %v1584_v28  ;;  %v1522_v36 = vadd.f32 %v2695_v5, %v1388_v29  ;;  %711 = vmatmul.bf16.gmra.mxu0 %v2426_v22  ;;  %791 = vmatmul.bf16.gmra.mxu2 %v2442_v23  ;;  %v1781_v20 = vunpack.c.h.bf16 %v1671_v1  ;;  %v1719_v28 = vunpack.c.h.bf16 %v1640_v11  ;;  %v1642_v1 = vld [vmem:[%s3199_s4 + $0x80] sm:$0xff] }
 0x104   :  { %v1905_v37 = vadd.f32 %v1777_v26, %v1585_v32  ;;  %v1523_v38 = vadd.f32 %v2703_v9, %v1389_v33  ;;  %880 = vmatmul.bf16.gmra.mxu1 %v2426_v22  ;;  %960 = vmatmul.bf16.gmra.mxu3 %v2442_v23  ;;  %v1672_v33 = vld [vmem:[%s3199_s4 + $0x170] sm:$0xff] }
 0x105   :  { %v2032_v40 = vmax.f32 %v1904_v35, 0.0  ;;  %v1842_v41 = vadd.f32 %v1714_v30, %v1522_v36 }
 0x106   :  { %v2033_v42 = vmax.f32 %v1905_v37, 0.0  ;;  %v1843_v43 = vadd.f32 %v1715_v34, %v1523_v38  ;;  %v752_v44 = vpop.f32.mrf.mxu2 }
 0x107   :  { %2160 = vst [vmem:[#allocation3 + $0x2b0] sm:$0xff] %v2032_v40  ;;  %v1970_v46 = vmax.f32 %v1842_v41, 0.0  ;;  %v1452_v47 = vmul.f32 %v2688_v2, %v752_v44  ;;  %v921_v49 = vpop.f32.mrf.mxu3 }
 0x108   :  { %2161 = vst [vmem:[#allocation3 + $0x2b8] sm:$0xff] %v2033_v42  ;;  %v1971_v50 = vmax.f32 %v1843_v43, 0.0  ;;  %v1453_v51 = vmul.f32 %v2693_v4, %v921_v49  ;;  %v674_v53 = vpop.f32.mrf.mxu0  ;;  %v1782_v42 = vunpack.c.l.bf16 %v1672_v33 }
 0x109   :  { %2098 = vst [vmem:[#allocation3 + $0xc0] sm:$0xff] %v1970_v46  ;;  %v1586_v54 = vadd.f32 %v2695_v5, %v1452_v47  ;;  %v1390_v55 = vmul.f32 %v2688_v2, %v674_v53  ;;  %v843_v57 = vpop.f32.mrf.mxu1  ;;  %v1783_v46 = vunpack.c.h.bf16 %v1672_v33 }
 0x10a   :  { %2099 = vst [vmem:[#allocation3 + $0xc8] sm:$0xff] %v1971_v50  ;;  %v1587_v58 = vadd.f32 %v2703_v9, %v1453_v51  ;;  %v1391_v59 = vmul.f32 %v2693_v4, %v843_v57  ;;  %v1720_v50 = vunpack.c.l.bf16 %v1641_v39 }
 0x10b   :  { %v1906_v61 = vadd.f32 %v1778_v48, %v1586_v54  ;;  %v1524_v62 = vadd.f32 %v2695_v5, %v1390_v55  ;;  %v1721_v54 = vunpack.c.h.bf16 %v1641_v39 }
 0x10c   :  { %v1907_v63 = vadd.f32 %v1779_v52, %v1587_v58  ;;  %v1525_v0 = vadd.f32 %v2703_v9, %v1391_v59  ;;  %v1673_v59 = vld [vmem:[%s3199_s4 + $0x178] sm:$0xff] }
 0x10d   :  { %v2034_v3 = vmax.f32 %v1906_v61, 0.0  ;;  %v1844_v6 = vadd.f32 %v1716_v56, %v1524_v62 }
 0x10e   :  { %v2035_v7 = vmax.f32 %v1907_v63, 0.0  ;;  %v1845_v8 = vadd.f32 %v1717_v60, %v1525_v0  ;;  %v754_v10 = vpop.f32.mrf.mxu2 }
 0x10f   :  { %2162 = vst [vmem:[#allocation3 + $0x2c0] sm:$0xff] %v2034_v3  ;;  %v1972_v12 = vmax.f32 %v1844_v6, 0.0  ;;  %v1454_v13 = vmul.f32 %v2688_v2, %v754_v10  ;;  %v923_v15 = vpop.f32.mrf.mxu3 }
 0x110   :  { %2163 = vst [vmem:[#allocation3 + $0x2c8] sm:$0xff] %v2035_v7  ;;  %v1973_v18 = vmax.f32 %v1845_v8, 0.0  ;;  %v1455_v19 = vmul.f32 %v2693_v4, %v923_v15  ;;  %v677_v21 = vpop.f32.mrf.mxu0  ;;  %v1784_v7 = vunpack.c.l.bf16 %v1673_v59 }
 0x111   :  { %2100 = vst [vmem:[#allocation3 + $0xd0] sm:$0xff] %v1972_v12  ;;  %v1588_v22 = vadd.f32 %v2695_v5, %v1454_v13  ;;  %v1392_v23 = vmul.f32 %v2688_v2, %v677_v21  ;;  %v846_v25 = vpop.f32.mrf.mxu1  ;;  %v1785_v12 = vunpack.c.h.bf16 %v1673_v59 }
 0x112   :  { %2101 = vst [vmem:[#allocation3 + $0xd8] sm:$0xff] %v1973_v18  ;;  %v1589_v26 = vadd.f32 %v2703_v9, %v1455_v19  ;;  %v1393_v27 = vmul.f32 %v2693_v4, %v846_v25  ;;  %v1674_v25 = vld [vmem:[%s3199_s4 + $0x180] sm:$0xff] }
 0x113   :  { %v1908_v29 = vadd.f32 %v1780_v14, %v1588_v22  ;;  %v1526_v30 = vadd.f32 %v2695_v5, %v1392_v23  ;;  %716 = vmatmul.bf16.gmra.mxu0 %v2427_v16  ;;  %796 = vmatmul.bf16.gmra.mxu2 %v2443_v17 }
 0x114   :  { %v1909_v31 = vadd.f32 %v1781_v20, %v1589_v26  ;;  %v1527_v32 = vadd.f32 %v2703_v9, %v1393_v27  ;;  %885 = vmatmul.bf16.gmra.mxu1 %v2427_v16  ;;  %965 = vmatmul.bf16.gmra.mxu3 %v2443_v17  ;;  %v1722_v16 = vunpack.c.l.bf16 %v1642_v1  ;;  %v1723_v20 = vunpack.c.h.bf16 %v1642_v1 }
 0x115   :  { %v2036_v34 = vmax.f32 %v1908_v29, 0.0  ;;  %v1846_v35 = vadd.f32 %v1718_v24, %v1526_v30 }
 0x116   :  { %v2037_v36 = vmax.f32 %v1909_v31, 0.0  ;;  %v1847_v37 = vadd.f32 %v1719_v28, %v1527_v32  ;;  %v757_v38 = vpop.f32.mrf.mxu2  ;;  %v1643_v31 = vld [vmem:[%s3199_s4 + $0x88] sm:$0xff] }
 0x117   :  { %2164 = vst [vmem:[#allocation3 + $0x2d0] sm:$0xff] %v2036_v34  ;;  %v1974_v40 = vmax.f32 %v1846_v35, 0.0  ;;  %v1456_v41 = vmul.f32 %v2688_v2, %v757_v38  ;;  %v926_v43 = vpop.f32.mrf.mxu3  ;;  %v1786_v34 = vunpack.c.l.bf16 %v1674_v25  ;;  %v1787_v38 = vunpack.c.h.bf16 %v1674_v25 }
 0x118   :  { %2165 = vst [vmem:[#allocation3 + $0x2d8] sm:$0xff] %v2037_v36  ;;  %v1975_v44 = vmax.f32 %v1847_v37, 0.0  ;;  %v1457_v45 = vmul.f32 %v2693_v4, %v926_v43  ;;  %v679_v47 = vpop.f32.mrf.mxu0 }
 0x119   :  { %2102 = vst [vmem:[#allocation3 + $0xe0] sm:$0xff] %v1974_v40  ;;  %v1590_v48 = vadd.f32 %v2695_v5, %v1456_v41  ;;  %v1394_v49 = vmul.f32 %v2688_v2, %v679_v47  ;;  %v848_v51 = vpop.f32.mrf.mxu1 }
 0x11a   :  { %2103 = vst [vmem:[#allocation3 + $0xe8] sm:$0xff] %v1975_v44  ;;  %v1591_v52 = vadd.f32 %v2703_v9, %v1457_v45  ;;  %v1395_v53 = vmul.f32 %v2693_v4, %v848_v51  ;;  %v1675_v51 = vld [vmem:[%s3199_s4 + $0x188] sm:$0xff] }
 0x11b   :  { %v1910_v55 = vadd.f32 %v1782_v42, %v1590_v48  ;;  %v1528_v56 = vadd.f32 %v2695_v5, %v1394_v49  ;;  %v1724_v42 = vunpack.c.l.bf16 %v1643_v31 }
 0x11c   :  { %v1911_v57 = vadd.f32 %v1783_v46, %v1591_v52  ;;  %v1529_v58 = vadd.f32 %v2703_v9, %v1395_v53  ;;  %v1725_v46 = vunpack.c.h.bf16 %v1643_v31 }
 0x11d   :  { %v2038_v60 = vmax.f32 %v1910_v55, 0.0  ;;  %v1848_v61 = vadd.f32 %v1720_v50, %v1528_v56 }
 0x11e   :  { %v2039_v62 = vmax.f32 %v1911_v57, 0.0  ;;  %v1849_v63 = vadd.f32 %v1721_v54, %v1529_v58  ;;  %v759_v0 = vpop.f32.mrf.mxu2  ;;  %v1644_v57 = vld [vmem:[%s3199_s4 + $0x90] sm:$0xff] }
 0x11f   :  { %2166 = vst [vmem:[#allocation3 + $0x2e0] sm:$0xff] %v2038_v60  ;;  %v1976_v3 = vmax.f32 %v1848_v61, 0.0  ;;  %v1458_v6 = vmul.f32 %v2688_v2, %v759_v0  ;;  %v928_v8 = vpop.f32.mrf.mxu3  ;;  %v1788_v60 = vunpack.c.l.bf16 %v1675_v51  ;;  %v1789_v0 = vunpack.c.h.bf16 %v1675_v51 }
 0x120   :  { %2167 = vst [vmem:[#allocation3 + $0x2e8] sm:$0xff] %v2039_v62  ;;  %v1977_v10 = vmax.f32 %v1849_v63, 0.0  ;;  %v1459_v11 = vmul.f32 %v2693_v4, %v928_v8  ;;  %v682_v13 = vpop.f32.mrf.mxu0 }
 0x121   :  { %2104 = vst [vmem:[#allocation3 + $0xf0] sm:$0xff] %v1976_v3  ;;  %v1592_v14 = vadd.f32 %v2695_v5, %v1458_v6  ;;  %v1396_v15 = vmul.f32 %v2688_v2, %v682_v13  ;;  %v851_v17 = vpop.f32.mrf.mxu1 }
 0x122   :  { %2105 = vst [vmem:[#allocation3 + $0xf8] sm:$0xff] %v1977_v10  ;;  %v1593_v18 = vadd.f32 %v2703_v9, %v1459_v11  ;;  %v1397_v19 = vmul.f32 %v2693_v4, %v851_v17  ;;  %v1676_v17 = vld [vmem:[%s3199_s4 + $0x190] sm:$0xff] }
 0x123   :  { %v1912_v21 = vadd.f32 %v1784_v7, %v1592_v14  ;;  %v1530_v22 = vadd.f32 %v2695_v5, %v1396_v15  ;;  %v1726_v7 = vunpack.c.l.bf16 %v1644_v57 }
 0x124   :  { %v1913_v23 = vadd.f32 %v1785_v12, %v1593_v18  ;;  %v1531_v24 = vadd.f32 %v2703_v9, %v1397_v19  ;;  %v1727_v12 = vunpack.c.h.bf16 %v1644_v57 }
 0x125   :  { %v2040_v26 = vmax.f32 %v1912_v21, 0.0  ;;  %v1850_v27 = vadd.f32 %v1722_v16, %v1530_v22 }
 0x126   :  { %v2041_v28 = vmax.f32 %v1913_v23, 0.0  ;;  %v1851_v29 = vadd.f32 %v1723_v20, %v1531_v24  ;;  %v762_v30 = vpop.f32.mrf.mxu2  ;;  %v1645_v23 = vld [vmem:[%s3199_s4 + $0x98] sm:$0xff] }
 0x127   :  { %2168 = vst [vmem:[#allocation3 + $0x2f0] sm:$0xff] %v2040_v26  ;;  %v1978_v32 = vmax.f32 %v1850_v27, 0.0  ;;  %v1460_v33 = vmul.f32 %v2688_v2, %v762_v30  ;;  %v931_v35 = vpop.f32.mrf.mxu3  ;;  %v1790_v26 = vunpack.c.l.bf16 %v1676_v17  ;;  %v1791_v30 = vunpack.c.h.bf16 %v1676_v17 }
 0x128   :  { %2169 = vst [vmem:[#allocation3 + $0x2f8] sm:$0xff] %v2041_v28  ;;  %v1979_v36 = vmax.f32 %v1851_v29, 0.0  ;;  %v1461_v37 = vmul.f32 %v2693_v4, %v931_v35  ;;  %v684_v39 = vpop.f32.mrf.mxu0 }
 0x129   :  { %2106 = vst [vmem:[#allocation3 + $0x100] sm:$0xff] %v1978_v32  ;;  %v1594_v40 = vadd.f32 %v2695_v5, %v1460_v33  ;;  %v1398_v41 = vmul.f32 %v2688_v2, %v684_v39  ;;  %v853_v43 = vpop.f32.mrf.mxu1 }
 0x12a   :  { %2107 = vst [vmem:[#allocation3 + $0x108] sm:$0xff] %v1979_v36  ;;  %v1595_v44 = vadd.f32 %v2703_v9, %v1461_v37  ;;  %v1399_v45 = vmul.f32 %v2693_v4, %v853_v43  ;;  %v1677_v43 = vld [vmem:[%s3199_s4 + $0x198] sm:$0xff] }
 0x12b   :  { %v1914_v47 = vadd.f32 %v1786_v34, %v1594_v40  ;;  %v1532_v48 = vadd.f32 %v2695_v5, %v1398_v41  ;;  %v1728_v34 = vunpack.c.l.bf16 %v1645_v23 }
 0x12c   :  { %v1915_v49 = vadd.f32 %v1787_v38, %v1595_v44  ;;  %v1533_v50 = vadd.f32 %v2703_v9, %v1399_v45  ;;  %v1729_v38 = vunpack.c.h.bf16 %v1645_v23 }
 0x12d   :  { %v2042_v52 = vmax.f32 %v1914_v47, 0.0  ;;  %v1852_v53 = vadd.f32 %v1724_v42, %v1532_v48 }
 0x12e   :  { %v2043_v54 = vmax.f32 %v1915_v49, 0.0  ;;  %v1853_v55 = vadd.f32 %v1725_v46, %v1533_v50  ;;  %v764_v56 = vpop.f32.mrf.mxu2  ;;  %v1646_v49 = vld [vmem:[%s3199_s4 + $0xa0] sm:$0xff] }
 0x12f   :  { %2170 = vst [vmem:[#allocation3 + $0x300] sm:$0xff] %v2042_v52  ;;  %v1980_v58 = vmax.f32 %v1852_v53, 0.0  ;;  %v1462_v59 = vmul.f32 %v2688_v2, %v764_v56  ;;  %v933_v61 = vpop.f32.mrf.mxu3  ;;  %v1792_v52 = vunpack.c.l.bf16 %v1677_v43  ;;  %v1793_v56 = vunpack.c.h.bf16 %v1677_v43 }
 0x130   :  { %2171 = vst [vmem:[#allocation3 + $0x308] sm:$0xff] %v2043_v54  ;;  %v1981_v62 = vmax.f32 %v1853_v55, 0.0  ;;  %v1463_v63 = vmul.f32 %v2693_v4, %v933_v61  ;;  %v687_v1 = vpop.f32.mrf.mxu0 }
 0x131   :  { %2108 = vst [vmem:[#allocation3 + $0x110] sm:$0xff] %v1980_v58  ;;  %v1596_v3 = vadd.f32 %v2695_v5, %v1462_v59  ;;  %v1400_v6 = vmul.f32 %v2688_v2, %v687_v1  ;;  %v856_v8 = vpop.f32.mrf.mxu1 }
 0x132   :  { %2109 = vst [vmem:[#allocation3 + $0x118] sm:$0xff] %v1981_v62  ;;  %v1597_v10 = vadd.f32 %v2703_v9, %v1463_v63  ;;  %v1401_v11 = vmul.f32 %v2693_v4, %v856_v8  ;;  %v1678_v8 = vld [vmem:[%s3199_s4 + $0x1a0] sm:$0xff] }
 0x133   :  { %v1916_v13 = vadd.f32 %v1788_v60, %v1596_v3  ;;  %v1534_v14 = vadd.f32 %v2695_v5, %v1400_v6  ;;  %v1730_v60 = vunpack.c.l.bf16 %v1646_v49 }
 0x134   :  { %v1917_v15 = vadd.f32 %v1789_v0, %v1597_v10  ;;  %v1535_v16 = vadd.f32 %v2703_v9, %v1401_v11  ;;  %v1731_v0 = vunpack.c.h.bf16 %v1646_v49 }
 0x135   :  { %v2044_v18 = vmax.f32 %v1916_v13, 0.0  ;;  %v1854_v19 = vadd.f32 %v1726_v7, %v1534_v14 }
 0x136   :  { %v2045_v20 = vmax.f32 %v1917_v15, 0.0  ;;  %v1855_v21 = vadd.f32 %v1727_v12, %v1535_v16  ;;  %v767_v22 = vpop.f32.mrf.mxu2  ;;  %v1647_v15 = vld [vmem:[%s3199_s4 + $0xa8] sm:$0xff] }
 0x137   :  { %2172 = vst [vmem:[#allocation3 + $0x310] sm:$0xff] %v2044_v18  ;;  %v1982_v24 = vmax.f32 %v1854_v19, 0.0  ;;  %v1464_v25 = vmul.f32 %v2688_v2, %v767_v22  ;;  %v936_v27 = vpop.f32.mrf.mxu3  ;;  %v1794_v18 = vunpack.c.l.bf16 %v1678_v8  ;;  %v1795_v22 = vunpack.c.h.bf16 %v1678_v8 }
 0x138   :  { %2173 = vst [vmem:[#allocation3 + $0x318] sm:$0xff] %v2045_v20  ;;  %v1983_v28 = vmax.f32 %v1855_v21, 0.0  ;;  %v1465_v29 = vmul.f32 %v2693_v4, %v936_v27  ;;  %v689_v31 = vpop.f32.mrf.mxu0 }
 0x139   :  { %2110 = vst [vmem:[#allocation3 + $0x120] sm:$0xff] %v1982_v24  ;;  %v1598_v32 = vadd.f32 %v2695_v5, %v1464_v25  ;;  %v1402_v33 = vmul.f32 %v2688_v2, %v689_v31  ;;  %v858_v35 = vpop.f32.mrf.mxu1 }
 0x13a   :  { %2111 = vst [vmem:[#allocation3 + $0x128] sm:$0xff] %v1983_v28  ;;  %v1599_v36 = vadd.f32 %v2703_v9, %v1465_v29  ;;  %v1403_v37 = vmul.f32 %v2693_v4, %v858_v35  ;;  %v1679_v35 = vld [vmem:[%s3199_s4 + $0x1a8] sm:$0xff] }
 0x13b   :  { %v1918_v39 = vadd.f32 %v1790_v26, %v1598_v32  ;;  %v1536_v40 = vadd.f32 %v2695_v5, %v1402_v33  ;;  %v1732_v26 = vunpack.c.l.bf16 %v1647_v15 }
 0x13c   :  { %v1919_v41 = vadd.f32 %v1791_v30, %v1599_v36  ;;  %v1537_v42 = vadd.f32 %v2703_v9, %v1403_v37  ;;  %v1733_v30 = vunpack.c.h.bf16 %v1647_v15 }
 0x13d   :  { %v2046_v44 = vmax.f32 %v1918_v39, 0.0  ;;  %v1856_v45 = vadd.f32 %v1728_v34, %v1536_v40 }
 0x13e   :  { %v2047_v46 = vmax.f32 %v1919_v41, 0.0  ;;  %v1857_v47 = vadd.f32 %v1729_v38, %v1537_v42  ;;  %v769_v48 = vpop.f32.mrf.mxu2  ;;  %v1648_v41 = vld [vmem:[%s3199_s4 + $0xb0] sm:$0xff] }
 0x13f   :  { %2174 = vst [vmem:[#allocation3 + $0x320] sm:$0xff] %v2046_v44  ;;  %v1984_v50 = vmax.f32 %v1856_v45, 0.0  ;;  %v1466_v51 = vmul.f32 %v2688_v2, %v769_v48  ;;  %v938_v53 = vpop.f32.mrf.mxu3  ;;  %v1796_v44 = vunpack.c.l.bf16 %v1679_v35  ;;  %v1797_v48 = vunpack.c.h.bf16 %v1679_v35 }
 0x140   :  { %2175 = vst [vmem:[#allocation3 + $0x328] sm:$0xff] %v2047_v46  ;;  %v1985_v54 = vmax.f32 %v1857_v47, 0.0  ;;  %v1467_v55 = vmul.f32 %v2693_v4, %v938_v53  ;;  %v692_v57 = vpop.f32.mrf.mxu0 }
 0x141   :  { %2112 = vst [vmem:[#allocation3 + $0x130] sm:$0xff] %v1984_v50  ;;  %v1600_v58 = vadd.f32 %v2695_v5, %v1466_v51  ;;  %v1404_v59 = vmul.f32 %v2688_v2, %v692_v57  ;;  %v861_v61 = vpop.f32.mrf.mxu1 }
 0x142   :  { %2113 = vst [vmem:[#allocation3 + $0x138] sm:$0xff] %v1985_v54  ;;  %v1601_v62 = vadd.f32 %v2703_v9, %v1467_v55  ;;  %v1405_v63 = vmul.f32 %v2693_v4, %v861_v61  ;;  %v1680_v61 = vld [vmem:[%s3199_s4 + $0x1b0] sm:$0xff] }
 0x143   :  { %v1920_v1 = vadd.f32 %v1792_v52, %v1600_v58  ;;  %v1538_v3 = vadd.f32 %v2695_v5, %v1404_v59  ;;  %v1734_v52 = vunpack.c.l.bf16 %v1648_v41 }
 0x144   :  { %v1921_v6 = vadd.f32 %v1793_v56, %v1601_v62  ;;  %v1539_v7 = vadd.f32 %v2703_v9, %v1405_v63  ;;  %v1735_v56 = vunpack.c.h.bf16 %v1648_v41 }
 0x145   :  { %v2048_v10 = vmax.f32 %v1920_v1, 0.0  ;;  %v1858_v11 = vadd.f32 %v1730_v60, %v1538_v3 }
 0x146   :  { %v2049_v12 = vmax.f32 %v1921_v6, 0.0  ;;  %v1859_v13 = vadd.f32 %v1731_v0, %v1539_v7  ;;  %v772_v14 = vpop.f32.mrf.mxu2  ;;  %v1649_v6 = vld [vmem:[%s3199_s4 + $0xb8] sm:$0xff] }
 0x147   :  { %2176 = vst [vmem:[#allocation3 + $0x330] sm:$0xff] %v2048_v10  ;;  %v1986_v16 = vmax.f32 %v1858_v11, 0.0  ;;  %v1468_v17 = vmul.f32 %v2688_v2, %v772_v14  ;;  %v941_v19 = vpop.f32.mrf.mxu3  ;;  %v1798_v10 = vunpack.c.l.bf16 %v1680_v61  ;;  %v1799_v14 = vunpack.c.h.bf16 %v1680_v61 }
 0x148   :  { %2177 = vst [vmem:[#allocation3 + $0x338] sm:$0xff] %v2049_v12  ;;  %v1987_v20 = vmax.f32 %v1859_v13, 0.0  ;;  %v1469_v21 = vmul.f32 %v2693_v4, %v941_v19  ;;  %v694_v23 = vpop.f32.mrf.mxu0 }
 0x149   :  { %2114 = vst [vmem:[#allocation3 + $0x140] sm:$0xff] %v1986_v16  ;;  %v1602_v24 = vadd.f32 %v2695_v5, %v1468_v17  ;;  %v1406_v25 = vmul.f32 %v2688_v2, %v694_v23  ;;  %v863_v27 = vpop.f32.mrf.mxu1 }
 0x14a   :  { %2115 = vst [vmem:[#allocation3 + $0x148] sm:$0xff] %v1987_v20  ;;  %v1603_v28 = vadd.f32 %v2703_v9, %v1469_v21  ;;  %v1407_v29 = vmul.f32 %v2693_v4, %v863_v27  ;;  %v1681_v27 = vld [vmem:[%s3199_s4 + $0x1b8] sm:$0xff] }
 0x14b   :  { %v1922_v31 = vadd.f32 %v1794_v18, %v1602_v24  ;;  %v1540_v32 = vadd.f32 %v2695_v5, %v1406_v25  ;;  %v1736_v18 = vunpack.c.l.bf16 %v1649_v6 }
 0x14c   :  { %v1923_v33 = vadd.f32 %v1795_v22, %v1603_v28  ;;  %v1541_v34 = vadd.f32 %v2703_v9, %v1407_v29  ;;  %v1737_v22 = vunpack.c.h.bf16 %v1649_v6 }
 0x14d   :  { %v2050_v36 = vmax.f32 %v1922_v31, 0.0  ;;  %v1860_v37 = vadd.f32 %v1732_v26, %v1540_v32 }
 0x14e   :  { %v2051_v38 = vmax.f32 %v1923_v33, 0.0  ;;  %v1861_v39 = vadd.f32 %v1733_v30, %v1541_v34  ;;  %v774_v40 = vpop.f32.mrf.mxu2  ;;  %v1650_v33 = vld [vmem:[%s3199_s4 + $0xc0] sm:$0xff] }
 0x14f   :  { %2178 = vst [vmem:[#allocation3 + $0x340] sm:$0xff] %v2050_v36  ;;  %v1988_v42 = vmax.f32 %v1860_v37, 0.0  ;;  %v1470_v43 = vmul.f32 %v2688_v2, %v774_v40  ;;  %v943_v45 = vpop.f32.mrf.mxu3  ;;  %v1800_v36 = vunpack.c.l.bf16 %v1681_v27  ;;  %v1801_v40 = vunpack.c.h.bf16 %v1681_v27 }
 0x150   :  { %2179 = vst [vmem:[#allocation3 + $0x348] sm:$0xff] %v2051_v38  ;;  %v1989_v46 = vmax.f32 %v1861_v39, 0.0  ;;  %v1471_v47 = vmul.f32 %v2693_v4, %v943_v45  ;;  %v697_v49 = vpop.f32.mrf.mxu0 }
 0x151   :  { %2116 = vst [vmem:[#allocation3 + $0x150] sm:$0xff] %v1988_v42  ;;  %v1604_v50 = vadd.f32 %v2695_v5, %v1470_v43  ;;  %v1408_v51 = vmul.f32 %v2688_v2, %v697_v49  ;;  %v866_v53 = vpop.f32.mrf.mxu1 }
 0x152   :  { %2117 = vst [vmem:[#allocation3 + $0x158] sm:$0xff] %v1989_v46  ;;  %v1605_v54 = vadd.f32 %v2703_v9, %v1471_v47  ;;  %v1409_v55 = vmul.f32 %v2693_v4, %v866_v53  ;;  %v1682_v53 = vld [vmem:[%s3199_s4 + $0x1c0] sm:$0xff] }
 0x153   :  { %v1924_v57 = vadd.f32 %v1796_v44, %v1604_v50  ;;  %v1542_v58 = vadd.f32 %v2695_v5, %v1408_v51  ;;  %v1738_v44 = vunpack.c.l.bf16 %v1650_v33 }
 0x154   :  { %v1925_v59 = vadd.f32 %v1797_v48, %v1605_v54  ;;  %v1543_v60 = vadd.f32 %v2703_v9, %v1409_v55  ;;  %v1739_v48 = vunpack.c.h.bf16 %v1650_v33 }
 0x155   :  { %v2052_v62 = vmax.f32 %v1924_v57, 0.0  ;;  %v1862_v63 = vadd.f32 %v1734_v52, %v1542_v58 }
 0x156   :  { %v2053_v0 = vmax.f32 %v1925_v59, 0.0  ;;  %v1863_v1 = vadd.f32 %v1735_v56, %v1543_v60  ;;  %v777_v3 = vpop.f32.mrf.mxu2  ;;  %v1651_v59 = vld [vmem:[%s3199_s4 + $0xc8] sm:$0xff] }
 0x157   :  { %2180 = vst [vmem:[#allocation3 + $0x350] sm:$0xff] %v2052_v62  ;;  %v1990_v7 = vmax.f32 %v1862_v63, 0.0  ;;  %v1472_v8 = vmul.f32 %v2688_v2, %v777_v3  ;;  %v946_v11 = vpop.f32.mrf.mxu3  ;;  %v1802_v62 = vunpack.c.l.bf16 %v1682_v53  ;;  %v1803_v3 = vunpack.c.h.bf16 %v1682_v53 }
 0x158   :  { %2181 = vst [vmem:[#allocation3 + $0x358] sm:$0xff] %v2053_v0  ;;  %v1991_v12 = vmax.f32 %v1863_v1, 0.0  ;;  %v1473_v13 = vmul.f32 %v2693_v4, %v946_v11  ;;  %v699_v15 = vpop.f32.mrf.mxu0 }
 0x159   :  { %2118 = vst [vmem:[#allocation3 + $0x160] sm:$0xff] %v1990_v7  ;;  %v1606_v16 = vadd.f32 %v2695_v5, %v1472_v8  ;;  %v1410_v17 = vmul.f32 %v2688_v2, %v699_v15  ;;  %v868_v19 = vpop.f32.mrf.mxu1 }
 0x15a   :  { %2119 = vst [vmem:[#allocation3 + $0x168] sm:$0xff] %v1991_v12  ;;  %v1607_v20 = vadd.f32 %v2703_v9, %v1473_v13  ;;  %v1411_v21 = vmul.f32 %v2693_v4, %v868_v19  ;;  %v1683_v19 = vld [vmem:[%s3199_s4 + $0x1c8] sm:$0xff] }
 0x15b   :  { %v1926_v23 = vadd.f32 %v1798_v10, %v1606_v16  ;;  %v1544_v24 = vadd.f32 %v2695_v5, %v1410_v17  ;;  %v1740_v10 = vunpack.c.l.bf16 %v1651_v59 }
 0x15c   :  { %v1927_v25 = vadd.f32 %v1799_v14, %v1607_v20  ;;  %v1545_v26 = vadd.f32 %v2703_v9, %v1411_v21  ;;  %v1741_v14 = vunpack.c.h.bf16 %v1651_v59 }
 0x15d   :  { %v2054_v28 = vmax.f32 %v1926_v23, 0.0  ;;  %v1864_v29 = vadd.f32 %v1736_v18, %v1544_v24 }
 0x15e   :  { %v2055_v30 = vmax.f32 %v1927_v25, 0.0  ;;  %v1865_v31 = vadd.f32 %v1737_v22, %v1545_v26  ;;  %v779_v32 = vpop.f32.mrf.mxu2  ;;  %v1652_v25 = vld [vmem:[%s3199_s4 + $0xd0] sm:$0xff] }
 0x15f   :  { %2182 = vst [vmem:[#allocation3 + $0x360] sm:$0xff] %v2054_v28  ;;  %v1992_v34 = vmax.f32 %v1864_v29, 0.0  ;;  %v1474_v35 = vmul.f32 %v2688_v2, %v779_v32  ;;  %v948_v37 = vpop.f32.mrf.mxu3  ;;  %v1804_v28 = vunpack.c.l.bf16 %v1683_v19  ;;  %v1805_v32 = vunpack.c.h.bf16 %v1683_v19 }
 0x160   :  { %2183 = vst [vmem:[#allocation3 + $0x368] sm:$0xff] %v2055_v30  ;;  %v1993_v38 = vmax.f32 %v1865_v31, 0.0  ;;  %v1475_v39 = vmul.f32 %v2693_v4, %v948_v37  ;;  %v702_v41 = vpop.f32.mrf.mxu0 }
 0x161   :  { %2120 = vst [vmem:[#allocation3 + $0x170] sm:$0xff] %v1992_v34  ;;  %v1608_v42 = vadd.f32 %v2695_v5, %v1474_v35  ;;  %v1412_v43 = vmul.f32 %v2688_v2, %v702_v41  ;;  %v871_v45 = vpop.f32.mrf.mxu1 }
 0x162   :  { %2121 = vst [vmem:[#allocation3 + $0x178] sm:$0xff] %v1993_v38  ;;  %v1609_v46 = vadd.f32 %v2703_v9, %v1475_v39  ;;  %v1413_v47 = vmul.f32 %v2693_v4, %v871_v45  ;;  %v1684_v45 = vld [vmem:[%s3199_s4 + $0x1d0] sm:$0xff] }
 0x163   :  { %v1928_v49 = vadd.f32 %v1800_v36, %v1608_v42  ;;  %v1546_v50 = vadd.f32 %v2695_v5, %v1412_v43  ;;  %v1742_v36 = vunpack.c.l.bf16 %v1652_v25 }
 0x164   :  { %v1929_v51 = vadd.f32 %v1801_v40, %v1609_v46  ;;  %v1547_v52 = vadd.f32 %v2703_v9, %v1413_v47  ;;  %v1743_v40 = vunpack.c.h.bf16 %v1652_v25 }
 0x165   :  { %v2056_v54 = vmax.f32 %v1928_v49, 0.0  ;;  %v1866_v55 = vadd.f32 %v1738_v44, %v1546_v50 }
 0x166   :  { %v2057_v56 = vmax.f32 %v1929_v51, 0.0  ;;  %v1867_v57 = vadd.f32 %v1739_v48, %v1547_v52  ;;  %v782_v58 = vpop.f32.mrf.mxu2  ;;  %v1653_v51 = vld [vmem:[%s3199_s4 + $0xd8] sm:$0xff] }
 0x167   :  { %2184 = vst [vmem:[#allocation3 + $0x370] sm:$0xff] %v2056_v54  ;;  %v1994_v60 = vmax.f32 %v1866_v55, 0.0  ;;  %v1476_v61 = vmul.f32 %v2688_v2, %v782_v58  ;;  %v951_v63 = vpop.f32.mrf.mxu3  ;;  %v1806_v54 = vunpack.c.l.bf16 %v1684_v45  ;;  %v1807_v58 = vunpack.c.h.bf16 %v1684_v45 }
 0x168   :  { %2185 = vst [vmem:[#allocation3 + $0x378] sm:$0xff] %v2057_v56  ;;  %v1995_v0 = vmax.f32 %v1867_v57, 0.0  ;;  %v1477_v1 = vmul.f32 %v2693_v4, %v951_v63  ;;  %v704_v6 = vpop.f32.mrf.mxu0 }
 0x169   :  { %2122 = vst [vmem:[#allocation3 + $0x180] sm:$0xff] %v1994_v60  ;;  %v1610_v7 = vadd.f32 %v2695_v5, %v1476_v61  ;;  %v1414_v8 = vmul.f32 %v2688_v2, %v704_v6  ;;  %v873_v11 = vpop.f32.mrf.mxu1 }
 0x16a   :  { %2123 = vst [vmem:[#allocation3 + $0x188] sm:$0xff] %v1995_v0  ;;  %v1611_v12 = vadd.f32 %v2703_v9, %v1477_v1  ;;  %v1415_v13 = vmul.f32 %v2693_v4, %v873_v11  ;;  %v1685_v11 = vld [vmem:[%s3199_s4 + $0x1d8] sm:$0xff] }
 0x16b   :  { %v1930_v15 = vadd.f32 %v1802_v62, %v1610_v7  ;;  %v1548_v16 = vadd.f32 %v2695_v5, %v1414_v8  ;;  %v1744_v62 = vunpack.c.l.bf16 %v1653_v51 }
 0x16c   :  { %v1931_v17 = vadd.f32 %v1803_v3, %v1611_v12  ;;  %v1549_v18 = vadd.f32 %v2703_v9, %v1415_v13  ;;  %v1745_v3 = vunpack.c.h.bf16 %v1653_v51 }
 0x16d   :  { %v2058_v20 = vmax.f32 %v1930_v15, 0.0  ;;  %v1868_v21 = vadd.f32 %v1740_v10, %v1548_v16 }
 0x16e   :  { %v2059_v22 = vmax.f32 %v1931_v17, 0.0  ;;  %v1869_v23 = vadd.f32 %v1741_v14, %v1549_v18  ;;  %v784_v24 = vpop.f32.mrf.mxu2  ;;  %v1654_v17 = vld [vmem:[%s3199_s4 + $0xe0] sm:$0xff] }
 0x16f   :  { %2186 = vst [vmem:[#allocation3 + $0x380] sm:$0xff] %v2058_v20  ;;  %v1996_v26 = vmax.f32 %v1868_v21, 0.0  ;;  %v1478_v27 = vmul.f32 %v2688_v2, %v784_v24  ;;  %v953_v29 = vpop.f32.mrf.mxu3  ;;  %v1808_v20 = vunpack.c.l.bf16 %v1685_v11  ;;  %v1809_v24 = vunpack.c.h.bf16 %v1685_v11 }
 0x170   :  { %2187 = vst [vmem:[#allocation3 + $0x388] sm:$0xff] %v2059_v22  ;;  %v1997_v30 = vmax.f32 %v1869_v23, 0.0  ;;  %v1479_v31 = vmul.f32 %v2693_v4, %v953_v29  ;;  %v707_v33 = vpop.f32.mrf.mxu0 }
 0x171   :  { %2124 = vst [vmem:[#allocation3 + $0x190] sm:$0xff] %v1996_v26  ;;  %v1612_v34 = vadd.f32 %v2695_v5, %v1478_v27  ;;  %v1416_v35 = vmul.f32 %v2688_v2, %v707_v33  ;;  %v876_v37 = vpop.f32.mrf.mxu1 }
 0x172   :  { %2125 = vst [vmem:[#allocation3 + $0x198] sm:$0xff] %v1997_v30  ;;  %v1613_v38 = vadd.f32 %v2703_v9, %v1479_v31  ;;  %v1417_v39 = vmul.f32 %v2693_v4, %v876_v37  ;;  %v1686_v37 = vld [vmem:[%s3199_s4 + $0x1e0] sm:$0xff] }
 0x173   :  { %v1932_v41 = vadd.f32 %v1804_v28, %v1612_v34  ;;  %v1550_v42 = vadd.f32 %v2695_v5, %v1416_v35  ;;  %v1746_v28 = vunpack.c.l.bf16 %v1654_v17 }
 0x174   :  { %v1933_v43 = vadd.f32 %v1805_v32, %v1613_v38  ;;  %v1551_v44 = vadd.f32 %v2703_v9, %v1417_v39  ;;  %v1747_v32 = vunpack.c.h.bf16 %v1654_v17 }
 0x175   :  { %v2060_v46 = vmax.f32 %v1932_v41, 0.0  ;;  %v1870_v47 = vadd.f32 %v1742_v36, %v1550_v42 }
 0x176   :  { %v2061_v48 = vmax.f32 %v1933_v43, 0.0  ;;  %v1871_v49 = vadd.f32 %v1743_v40, %v1551_v44  ;;  %v787_v50 = vpop.f32.mrf.mxu2  ;;  %v1655_v43 = vld [vmem:[%s3199_s4 + $0xe8] sm:$0xff] }
 0x177   :  { %2188 = vst [vmem:[#allocation3 + $0x390] sm:$0xff] %v2060_v46  ;;  %v1998_v52 = vmax.f32 %v1870_v47, 0.0  ;;  %v1480_v53 = vmul.f32 %v2688_v2, %v787_v50  ;;  %v956_v55 = vpop.f32.mrf.mxu3  ;;  %v1810_v46 = vunpack.c.l.bf16 %v1686_v37  ;;  %v1811_v50 = vunpack.c.h.bf16 %v1686_v37 }
 0x178   :  { %2189 = vst [vmem:[#allocation3 + $0x398] sm:$0xff] %v2061_v48  ;;  %v1999_v56 = vmax.f32 %v1871_v49, 0.0  ;;  %v1481_v57 = vmul.f32 %v2693_v4, %v956_v55  ;;  %v709_v59 = vpop.f32.mrf.mxu0 }
 0x179   :  { %2126 = vst [vmem:[#allocation3 + $0x1a0] sm:$0xff] %v1998_v52  ;;  %v1614_v60 = vadd.f32 %v2695_v5, %v1480_v53  ;;  %v1418_v61 = vmul.f32 %v2688_v2, %v709_v59  ;;  %v878_v63 = vpop.f32.mrf.mxu1 }
 0x17a   :  { %2127 = vst [vmem:[#allocation3 + $0x1a8] sm:$0xff] %v1999_v56  ;;  %v1615_v0 = vadd.f32 %v2703_v9, %v1481_v57  ;;  %v1419_v1 = vmul.f32 %v2693_v4, %v878_v63  ;;  %v1687_v63 = vld [vmem:[%s3199_s4 + $0x1e8] sm:$0xff] }
 0x17b   :  { %v1934_v6 = vadd.f32 %v1806_v54, %v1614_v60  ;;  %v1552_v7 = vadd.f32 %v2695_v5, %v1418_v61  ;;  %v1748_v54 = vunpack.c.l.bf16 %v1655_v43 }
 0x17c   :  { %v1935_v8 = vadd.f32 %v1807_v58, %v1615_v0  ;;  %v1553_v10 = vadd.f32 %v2703_v9, %v1419_v1  ;;  %v1749_v58 = vunpack.c.h.bf16 %v1655_v43 }
 0x17d   :  { %v2062_v12 = vmax.f32 %v1934_v6, 0.0  ;;  %v1872_v13 = vadd.f32 %v1744_v62, %v1552_v7 }
 0x17e   :  { %v2063_v14 = vmax.f32 %v1935_v8, 0.0  ;;  %v1873_v15 = vadd.f32 %v1745_v3, %v1553_v10  ;;  %v789_v16 = vpop.f32.mrf.mxu2  ;;  %v1656_v8 = vld [vmem:[%s3199_s4 + $0xf0] sm:$0xff] }
 0x17f   :  { %2190 = vst [vmem:[#allocation3 + $0x3a0] sm:$0xff] %v2062_v12  ;;  %v2000_v18 = vmax.f32 %v1872_v13, 0.0  ;;  %v1482_v19 = vmul.f32 %v2688_v2, %v789_v16  ;;  %v958_v21 = vpop.f32.mrf.mxu3  ;;  %v1812_v12 = vunpack.c.l.bf16 %v1687_v63  ;;  %v1813_v16 = vunpack.c.h.bf16 %v1687_v63 }
 0x180   :  { %2191 = vst [vmem:[#allocation3 + $0x3a8] sm:$0xff] %v2063_v14  ;;  %v2001_v22 = vmax.f32 %v1873_v15, 0.0  ;;  %v1483_v23 = vmul.f32 %v2693_v4, %v958_v21  ;;  %v712_v25 = vpop.f32.mrf.mxu0 }
 0x181   :  { %2128 = vst [vmem:[#allocation3 + $0x1b0] sm:$0xff] %v2000_v18  ;;  %v1616_v26 = vadd.f32 %v2695_v5, %v1482_v19  ;;  %v1420_v27 = vmul.f32 %v2688_v2, %v712_v25  ;;  %v881_v29 = vpop.f32.mrf.mxu1 }
 0x182   :  { %2129 = vst [vmem:[#allocation3 + $0x1b8] sm:$0xff] %v2001_v22  ;;  %v1617_v30 = vadd.f32 %v2703_v9, %v1483_v23  ;;  %v1421_v31 = vmul.f32 %v2693_v4, %v881_v29  ;;  %v1688_v29 = vld [vmem:[%s3199_s4 + $0x1f0] sm:$0xff] }
 0x183   :  { %v1936_v33 = vadd.f32 %v1808_v20, %v1616_v26  ;;  %v1554_v34 = vadd.f32 %v2695_v5, %v1420_v27  ;;  %v1750_v20 = vunpack.c.l.bf16 %v1656_v8 }
 0x184   :  { %v1937_v35 = vadd.f32 %v1809_v24, %v1617_v30  ;;  %v1555_v36 = vadd.f32 %v2703_v9, %v1421_v31  ;;  %v1751_v24 = vunpack.c.h.bf16 %v1656_v8 }
 0x185   :  { %v2064_v38 = vmax.f32 %v1936_v33, 0.0  ;;  %v1874_v39 = vadd.f32 %v1746_v28, %v1554_v34 }
 0x186   :  { %v2065_v40 = vmax.f32 %v1937_v35, 0.0  ;;  %v1875_v41 = vadd.f32 %v1747_v32, %v1555_v36  ;;  %v792_v42 = vpop.f32.mrf.mxu2  ;;  %v1657_v35 = vld [vmem:[%s3199_s4 + $0xf8] sm:$0xff] }
 0x187   :  { %2192 = vst [vmem:[#allocation3 + $0x3b0] sm:$0xff] %v2064_v38  ;;  %v2002_v44 = vmax.f32 %v1874_v39, 0.0  ;;  %v1484_v45 = vmul.f32 %v2688_v2, %v792_v42  ;;  %v961_v47 = vpop.f32.mrf.mxu3  ;;  %v1814_v38 = vunpack.c.l.bf16 %v1688_v29  ;;  %v1815_v42 = vunpack.c.h.bf16 %v1688_v29 }
 0x188   :  { %2193 = vst [vmem:[#allocation3 + $0x3b8] sm:$0xff] %v2065_v40  ;;  %v2003_v48 = vmax.f32 %v1875_v41, 0.0  ;;  %v1485_v49 = vmul.f32 %v2693_v4, %v961_v47  ;;  %v714_v51 = vpop.f32.mrf.mxu0 }
 0x189   :  { %2130 = vst [vmem:[#allocation3 + $0x1c0] sm:$0xff] %v2002_v44  ;;  %v1618_v52 = vadd.f32 %v2695_v5, %v1484_v45  ;;  %v1422_v53 = vmul.f32 %v2688_v2, %v714_v51  ;;  %v883_v55 = vpop.f32.mrf.mxu1 }
 0x18a   :  { %2131 = vst [vmem:[#allocation3 + $0x1c8] sm:$0xff] %v2003_v48  ;;  %v1619_v56 = vadd.f32 %v2703_v9, %v1485_v49  ;;  %v1423_v57 = vmul.f32 %v2693_v4, %v883_v55  ;;  %v1689_v55 = vld [vmem:[%s3199_s4 + $0x1f8] sm:$0xff]  ;;  %s2505_s4 = smov [#allocation3]  }
 0x18b   :  { %v1938_v59 = vadd.f32 %v1810_v46, %v1618_v52  ;;  %v1556_v60 = vadd.f32 %v2695_v5, %v1422_v53  ;;  %v1752_v46 = vunpack.c.l.bf16 %v1657_v35  ;;  %v1816_v63 = vunpack.c.l.bf16 %v1689_v55  ;;  %s2206_s6 = sshll.u32 %s2505_s4, 4  ;;  %s2207_s6 = int_to_ptr.vmem [resolvable:$true] %s2206_s6 }
 0x18c   :  { %v1939_v61 = vadd.f32 %v1811_v50, %v1619_v56  ;;  %v1557_v62 = vadd.f32 %v2703_v9, %v1423_v57  ;;  %v1753_v50 = vunpack.c.h.bf16 %v1657_v35 }
 0x18d   :  { %v2066_v0 = vmax.f32 %v1938_v59, 0.0  ;;  %v1876_v1 = vadd.f32 %v1748_v54, %v1556_v60 }
 0x18e   :  { %v2067_v3 = vmax.f32 %v1939_v61, 0.0  ;;  %v1877_v6 = vadd.f32 %v1749_v58, %v1557_v62  ;;  %v794_v7 = vpop.f32.mrf.mxu2 }
 0x18f   :  { %2194 = vst [vmem:[#allocation3 + $0x3c0] sm:$0xff] %v2066_v0  ;;  %v2004_v10 = vmax.f32 %v1876_v1, 0.0  ;;  %v1486_v11 = vmul.f32 %v2688_v2, %v794_v7  ;;  %v963_v13 = vpop.f32.mrf.mxu3 }
 0x190   :  { %2195 = vst [vmem:[#allocation3 + $0x3c8] sm:$0xff] %v2067_v3  ;;  %v2005_v14 = vmax.f32 %v1877_v6, 0.0  ;;  %v1487_v15 = vmul.f32 %v2693_v4, %v963_v13  ;;  %v717_v17 = vpop.f32.mrf.mxu0  ;;  %v1817_v6 = vunpack.c.h.bf16 %v1689_v55 }
 0x191   :  { %2132 = vst [vmem:[#allocation3 + $0x1d0] sm:$0xff] %v2004_v10  ;;  %v1620_v18 = vadd.f32 %v2695_v5, %v1486_v11  ;;  %v1424_v19 = vmul.f32 %v2688_v2, %v717_v17  ;;  %v886_v21 = vpop.f32.mrf.mxu1 }
 0x192   :  { %2133 = vst [vmem:[#allocation3 + $0x1d8] sm:$0xff] %v2005_v14  ;;  %v1621_v22 = vadd.f32 %v2703_v9, %v1487_v15  ;;  %v1425_v23 = vmul.f32 %v2693_v4, %v886_v21 }
 0x193   :  { %v1940_v25 = vadd.f32 %v1812_v12, %v1620_v18  ;;  %v1558_v26 = vadd.f32 %v2695_v5, %v1424_v19 }
 0x194   :  { %v1941_v27 = vadd.f32 %v1813_v16, %v1621_v22  ;;  %v1559_v28 = vadd.f32 %v2703_v9, %v1425_v23 }
 0x195   :  { %v2068_v30 = vmax.f32 %v1940_v25, 0.0  ;;  %v1878_v31 = vadd.f32 %v1750_v20, %v1558_v26 }
 0x196   :  { %v2069_v32 = vmax.f32 %v1941_v27, 0.0  ;;  %v1879_v33 = vadd.f32 %v1751_v24, %v1559_v28  ;;  %v797_v34 = vpop.f32.mrf.mxu2 }
 0x197   :  { %2196 = vst [vmem:[#allocation3 + $0x3d0] sm:$0xff] %v2068_v30  ;;  %v2006_v36 = vmax.f32 %v1878_v31, 0.0  ;;  %v1488_v37 = vmul.f32 %v2688_v2, %v797_v34  ;;  %v966_v39 = vpop.f32.mrf.mxu3 }
 0x198   :  { %2197 = vst [vmem:[#allocation3 + $0x3d8] sm:$0xff] %v2069_v32  ;;  %v2007_v40 = vmax.f32 %v1879_v33, 0.0  ;;  %v1489_v41 = vmul.f32 %v2693_v4, %v966_v39  ;;  %v719_v43 = vpop.f32.mrf.mxu0 }
 0x199   :  { %2134 = vst [vmem:[#allocation3 + $0x1e0] sm:$0xff] %v2006_v36  ;;  %v1622_v44 = vadd.f32 %v2695_v5, %v1488_v37  ;;  %v1426_v45 = vmul.f32 %v2688_v2, %v719_v43  ;;  %v888_v47 = vpop.f32.mrf.mxu1 }
 0x19a   :  { %2135 = vst [vmem:[#allocation3 + $0x1e8] sm:$0xff] %v2007_v40  ;;  %v1623_v48 = vadd.f32 %v2703_v9, %v1489_v41  ;;  %v1427_v49 = vmul.f32 %v2693_v4, %v888_v47 }
 0x19b   :  { %v1942_v51 = vadd.f32 %v1814_v38, %v1622_v44  ;;  %v1560_v52 = vadd.f32 %v2695_v5, %v1426_v45 }
 0x19c   :  { %v1943_v53 = vadd.f32 %v1815_v42, %v1623_v48  ;;  %v1561_v54 = vadd.f32 %v2703_v9, %v1427_v49 }
 0x19d   :  { %v2070_v56 = vmax.f32 %v1942_v51, 0.0  ;;  %v1880_v57 = vadd.f32 %v1752_v46, %v1560_v52 }
 0x19e   :  { %v2071_v58 = vmax.f32 %v1943_v53, 0.0  ;;  %v1881_v59 = vadd.f32 %v1753_v50, %v1561_v54  ;;  %v799_v60 = vpop.f32.mrf.mxu2 }
 0x19f   :  { %2198 = vst [vmem:[#allocation3 + $0x3e0] sm:$0xff] %v2070_v56  ;;  %v2008_v61 = vmax.f32 %v1880_v57, 0.0  ;;  %v1490_v62 = vmul.f32 %v2688_v2, %v799_v60  ;;  %v968_v0 = vpop.f32.mrf.mxu3 }
 0x1a0   :  { %2199 = vst [vmem:[#allocation3 + $0x3e8] sm:$0xff] %v2071_v58  ;;  %v2009_v1 = vmax.f32 %v1881_v59, 0.0  ;;  %v1491_v3 = vmul.f32 %v2693_v4, %v968_v0 }
 0x1a1   :  { %2136 = vst [vmem:[#allocation3 + $0x1f0] sm:$0xff] %v2008_v61  ;;  %v1624_v7 = vadd.f32 %v2695_v5, %v1490_v62 }
 0x1a2   :  { %2137 = vst [vmem:[#allocation3 + $0x1f8] sm:$0xff] %v2009_v1  ;;  %v1625_v8 = vadd.f32 %v2703_v9, %v1491_v3 }
 0x1a3   :  { %v1944_v2 = vadd.f32 %v1816_v63, %v1624_v7 }
 0x1a4   :  { %v1945_v10 = vadd.f32 %v1817_v6, %v1625_v8 }
 0x1a5   :  { %v2072_v11 = vmax.f32 %v1944_v2, 0.0 }
 0x1a6   :  { %v2073_v12 = vmax.f32 %v1945_v10, 0.0 }
 0x1a7   :  { %2200 = vst [vmem:[#allocation3 + $0x3f0] sm:$0xff] %v2072_v11 }
 0x1a8   :  { %2201 = vst [vmem:[#allocation3 + $0x3f8] sm:$0xff] %v2073_v12 }
 0x1a9   :  { %2214 = dma.vmem_to_hbm [thread:$0]  %s2207_s6, 16384, %s2209_s9, [#allocation4], %s2506_s10, %s2506_s10, %s2507_s1  }
 0x1aa   :  { %2503 = dma.done.wait [#allocation4], 16384  }
 0x1ab   :  { %2504 = vsyncadd [#allocation4], 4294950912 }
 0x1ac   :  { %2219 = vsyncpa [#allocation4], 1 }

</bundles_post_ra>
